<compile_context>
chip_gen: v7x
topology: tpu7x:2x2x1
jax: 0.10.0
libtpu: 0.0.40
codegen_flags: <defaults>
</compile_context>

<pallas_src>
import functools

import jax
import jax.numpy as jnp
import numpy as np
from jax import lax
from jax.experimental import pallas as pl
from jax.experimental.pallas import tpu as pltpu

_LANE = 128


def _default_vmem_limit():
    # Half the physical VMEM, clamped to [32 MiB, 64 MiB]:
    #   v5e/v6e (128 MiB physical) -> 64 MiB; v7x (64 MiB physical) -> 32 MiB.
    try:
        cap = int(pltpu.get_tpu_info().vmem_capacity_bytes)
        return max(32 * 1024 * 1024, min(cap // 2, 64 * 1024 * 1024))
    except Exception:  # pragma: no cover - conservative fallback
        return 32 * 1024 * 1024


_VMEM_LIMIT_BYTES = _default_vmem_limit()


def _round_up(x, m):
    return ((x + m - 1) // m) * m


def _pad2d(x, rows, cols):
    if x.shape == (rows, cols):
        return x                                   # skip no-op pad copies
    return jnp.pad(x, ((0, rows - x.shape[0]), (0, cols - x.shape[1])))


# ----------------------------------------------------------------------------
# Fused MLP kernel:
#   (split) Linear -> ReLU -> Linear -> ReLU -> Linear -> LayerNorm -> +res
# ----------------------------------------------------------------------------
def _make_mlp_kernel(n_in, res_idx, h_real, h_pad, mm_dtype, n_out):
    """refs = x_0..x_{n_in-1}, w1_0..w1_{n_in-1}, b1, w2, b2, w3, b3,
              gamma, beta, outs...
    The concat of the x chunks is fused into the first matmul (split W1);
    the residual is x_{res_idx} (kept f32) and rides in an open row tile."""

    def kernel(*refs):
        xs = refs[:n_in]
        w1s = refs[n_in:2 * n_in]
        b1, w2, b2, w3, b3, g, beta = refs[2 * n_in:2 * n_in + 7]
        outs = refs[2 * n_in + 7:]

        # layer 1: sum of per-chunk matmuls == matmul of the concatenation.
        h = None
        for x_ref, w_ref in zip(xs, w1s):
            p = jnp.dot(x_ref[...].astype(mm_dtype), w_ref[...],
                        preferred_element_type=jnp.float32)
            h = p if h is None else h + p
        h = jnp.maximum(h + b1[...], 0.0)
        h = jnp.maximum(
            jnp.dot(h.astype(mm_dtype), w2[...],
                    preferred_element_type=jnp.float32) + b2[...], 0.0)
        h = jnp.dot(h.astype(mm_dtype), w3[...],
                    preferred_element_type=jnp.float32) + b3[...]

        # LayerNorm over the real channels (lanes >= h_real hold zero padding,
        # so they contribute 0 to the sums; re-mask after centering).
        inv_h = jnp.float32(1.0 / h_real)
        mu = jnp.sum(h, axis=-1, keepdims=True) * inv_h
        c = h - mu
        if h_real != h_pad:
            lane = lax.broadcasted_iota(jnp.int32, (1, h_pad), 1)
            c = c * (lane < h_real).astype(jnp.float32)
        var = jnp.sum(c * c, axis=-1, keepdims=True) * inv_h
        y = c * lax.rsqrt(var + 1e-5) * g[...] + beta[...]

        res = xs[res_idx][...].astype(jnp.float32)   # f32 residual, fused add
        if n_out == 2:
            outs[0][...] = y.astype(outs[0].dtype)            # pre-residual
            outs[1][...] = (y + res).astype(outs[1].dtype)    # post-residual
        else:
            outs[0][...] = (y + res).astype(outs[0].dtype)

    return kernel


def mlp_forward(x_list, pp, *, h_real, res_idx, row_tile, mm_dtype,
                out_dtypes):
    """x_list: list of [R, Hp] chunks (R % row_tile == 0); mixed dtypes OK,
    the chunk at res_idx must be f32.  Returns one output per out_dtypes."""
    n_in = len(x_list)
    R, Hp = x_list[0].shape
    assert R % row_tile == 0
    n_out = len(out_dtypes)

    # Dtype-aware VMEM budget: double-buffered row blocks (weights are tiny).
    bytes_per_step = sum(row_tile * Hp * x.dtype.itemsize for x in x_list)
    bytes_per_step += sum(row_tile * Hp * jnp.dtype(d).itemsize
                          for d in out_dtypes)
    est = 2 * bytes_per_step
    if est > _VMEM_LIMIT_BYTES // 2:
        raise ValueError(
            f"row_tile={row_tile} needs ~{est >> 20} MiB VMEM for row blocks; "
            f"reduce row_tile to stay under {_VMEM_LIMIT_BYTES >> 20} MiB")

    row_spec = pl.BlockSpec((row_tile, Hp), lambda i: (i, 0))
    full = lambda i: (0, 0)
    consts = [pp["b1"], pp["w2"], pp["b2"], pp["w3"], pp["b3"],
              pp["gamma"], pp["beta"]]
    in_specs = ([row_spec] * n_in
                + [pl.BlockSpec(w.shape, full) for w in pp["w1"]]
                + [pl.BlockSpec(c.shape, full) for c in consts])
    out_shape = tuple(jax.ShapeDtypeStruct((R, Hp), d) for d in out_dtypes)
    out_specs = tuple(row_spec for _ in range(n_out))

    kernel = _make_mlp_kernel(n_in, res_idx, h_real, Hp, mm_dtype, n_out)
    return pl.pallas_call(
        kernel,
        out_shape=out_shape,
        grid_spec=pltpu.PrefetchScalarGridSpec(
            num_scalar_prefetch=0,
            grid=(R // row_tile,),
            in_specs=in_specs,
            out_specs=out_specs,
        ),
        compiler_params=pltpu.CompilerParams(
            dimension_semantics=("parallel",),
            vmem_limit_bytes=_VMEM_LIMIT_BYTES),
    )(*x_list, *pp["w1"], *consts)


# ----------------------------------------------------------------------------
# scatter_add(edge_features, receivers, dim=0) — tiled bf16 one-hot MXU matmul
# ----------------------------------------------------------------------------
def _scatter_add_kernel(recv_ref, edge_ref, out_ref, acc_ref, *, mm_dtype):
    e_step = pl.program_id(1)

    @pl.when(e_step == 0)
    def _():
        acc_ref[...] = jnp.zeros_like(acc_ref)

    tn = acc_ref.shape[0]
    te = edge_ref.shape[0]
    node_ids = pl.program_id(0) * tn + lax.broadcasted_iota(
        jnp.int32, (tn, te), 0)
    # recv_ref is (1, te) lane-major; padded edges carry -1 and never match.
    # One-hot values (0/1) are exact in bf16 -> MXU-native matmul on all
    # generations; accumulation stays f32.
    onehot = (node_ids == recv_ref[...]).astype(mm_dtype)          # (tn, te)
    acc_ref[...] += jnp.dot(onehot, edge_ref[...],
                            preferred_element_type=jnp.float32)

    @pl.when(e_step == pl.num_programs(1) - 1)
    def _():
        out_ref[...] = acc_ref[...].astype(out_ref.dtype)


def _scatter_vmem_bytes(node_tile, edge_tile, Hp, edge_isz, out_isz):
    acc = node_tile * Hp * 4                      # f32 accumulator scratch
    out_db = 2 * node_tile * Hp * out_isz         # double-buffered output
    edge_db = 2 * edge_tile * Hp * edge_isz       # double-buffered edges
    recv_db = 2 * edge_tile * 4                   # double-buffered receivers
    return acc + out_db + edge_db + recv_db


def _largest_divisor_multiple(total, base, cap):
    """Largest multiple of `base` that divides `total` and is <= cap."""
    best, t = base, base
    while t <= min(total, cap):
        if total % t == 0:
            best = t
        t += base
    return best


def _pick_node_tile(Np, edge_tile, Hp, row_tile, edge_isz, out_isz):
    # Bigger node tiles cut edge re-streaming (edges are re-read once per
    # node tile).  Keep >=2 parallel node tiles when Np allows (v7x megacore)
    # and stay inside the scatter VMEM budget.
    if Np <= row_tile:
        cap = Np
    else:
        cap = max(row_tile, ((Np // 2) // row_tile) * row_tile)
    best, t = row_tile, row_tile
    while t <= cap:
        if (Np % t == 0 and
                _scatter_vmem_bytes(t, edge_tile, Hp, edge_isz, out_isz)
                <= _VMEM_LIMIT_BYTES // 2):
            best = t
        t += row_tile
    return best


def scatter_add(edge_feats, recv_row, num_nodes_pad, *, row_tile, mm_dtype,
                out_dtype):
    """edge_feats: [Ep, Hp] (mm_dtype); recv_row: [1, Ep] int32 (padding=-1)."""
    # TODO(synk): for production meshes (E~1e5, N~1e4+) replace the one-hot
    # matmul (O(E*N*H) MXU work even when tiled) with a sorted segment-sum
    # kernel driven by scalar-prefetched per-node offsets.
    Ep, Hp = edge_feats.shape
    edge_tile = _largest_divisor_multiple(Ep, row_tile, 2048)
    node_tile = _pick_node_tile(num_nodes_pad, edge_tile, Hp, row_tile,
                                edge_feats.dtype.itemsize,
                                jnp.dtype(out_dtype).itemsize)
    grid = (num_nodes_pad // node_tile, Ep // edge_tile)
    kernel = functools.partial(_scatter_add_kernel, mm_dtype=mm_dtype)
    return pl.pallas_call(
        kernel,
        out_shape=jax.ShapeDtypeStruct((num_nodes_pad, Hp), out_dtype),
        grid_spec=pltpu.PrefetchScalarGridSpec(
            num_scalar_prefetch=0,
            grid=grid,
            in_specs=[pl.BlockSpec((1, edge_tile), lambda n, e: (0, e)),
                      pl.BlockSpec((edge_tile, Hp), lambda n, e: (e, 0))],
            out_specs=pl.BlockSpec((node_tile, Hp), lambda n, e: (n, 0)),
            scratch_shapes=[pltpu.VMEM((node_tile, Hp), jnp.float32)],
        ),
        compiler_params=pltpu.CompilerParams(
            dimension_semantics=("parallel", "arbitrary"),
            vmem_limit_bytes=_VMEM_LIMIT_BYTES),
    )(recv_row, edge_feats)


# ----------------------------------------------------------------------------
# Parameter packing (done ONCE, outside the jitted step)
# ----------------------------------------------------------------------------
def _prep_mlp_params(p, chunk_dims, h_pad, mm_dtype):
    w1_chunks, off = [], 0
    for d in chunk_dims:
        w1_chunks.append(
            _pad2d(p["w1"][off:off + d], h_pad, h_pad).astype(mm_dtype))
        off += d
    padw = lambda w: _pad2d(w, h_pad, h_pad).astype(mm_dtype)
    padv = lambda v: _pad2d(v, 1, h_pad)              # biases / LN stay f32
    return dict(w1=tuple(w1_chunks),
                b1=padv(p["b1"]), w2=padw(p["w2"]), b2=padv(p["b2"]),
                w3=padw(p["w3"]), b3=padv(p["b3"]),
                gamma=padv(p["gamma"]), beta=padv(p["beta"]))


def prepare_graphnet_params(params, hidden_dim, mm_dtype=jnp.bfloat16):
    """Pad to 128 lanes, split W1 per concat chunk, cast matmul weights to
    bf16.  NOTE: the kernel's LayerNorm lane-masking relies on gamma/beta/b3
    being zero-padded here — keep that invariant."""
    H, Hp = hidden_dim, _round_up(hidden_dim, _LANE)
    return dict(
        mlp_edge=_prep_mlp_params(params["mlp_edge"], (H, H, H), Hp, mm_dtype),
        mlp_node=_prep_mlp_params(params["mlp_node"], (H, H), Hp, mm_dtype),
    )


# ----------------------------------------------------------------------------
# GraphNetBlock forward
# ----------------------------------------------------------------------------
def graphnet_block(edge_idx, node_features, edge_features, prepped, *,
                   row_tile=1024, mm_dtype=jnp.bfloat16):
    senders, receivers = edge_idx
    N, H = node_features.shape
    E = edge_features.shape[0]
    Hp = _round_up(H, _LANE)
    Np = _round_up(N, row_tile)
    Ep = _round_up(E, row_tile)

    node_p = _pad2d(node_features, Np, Hp)
    edge_p = _pad2d(edge_features, Ep, Hp)
    send_p = senders.astype(jnp.int32)
    recv_i = receivers.astype(jnp.int32)
    if Ep != E:
        send_p = jnp.pad(send_p, (0, Ep - E))
        # Padded edges get receiver -1 so they never hit the scatter.
        recv_row = jnp.pad(recv_i, (0, Ep - E), constant_values=-1)
    else:
        recv_row = recv_i
    recv_p = jnp.where(recv_row < 0, 0, recv_row)
    recv_row = recv_row.reshape(1, Ep)

    # Gather is plain-JAX glue; non-residual MXU operand chunks are stored
    # bf16 at the HBM boundary to halve their write+read traffic.
    # TODO(synk): fuse the row gathers into the edge-MLP kernel via scalar-
    # prefetched sender/receiver ids + a pl.ANY node ref with async-copy rows.
    sender_f = node_p[send_p].astype(mm_dtype)
    receiver_f = node_p[recv_p].astype(mm_dtype)

    # Edge update: concat fused into split-W1; dual output — pre-residual
    # (bf16) for the scatter (matches the PyTorch op order) and post-residual
    # (f32) as the block's edge output.
    edge_pre, edge_post = mlp_forward(
        [sender_f, receiver_f, edge_p], prepped["mlp_edge"], h_real=H,
        res_idx=2, row_tile=row_tile, mm_dtype=mm_dtype,
        out_dtypes=(mm_dtype, jnp.float32))

    acc = scatter_add(edge_pre, recv_row, Np, row_tile=row_tile,
                      mm_dtype=mm_dtype, out_dtype=mm_dtype)

    # Node update: concat fused; node residual (f32) fused into the kernel.
    (node_post,) = mlp_forward(
        [node_p, acc], prepped["mlp_node"], h_real=H, res_idx=0,
        row_tile=row_tile, mm_dtype=mm_dtype, out_dtypes=(jnp.float32,))

    return node_post[:N, :H], edge_post[:E, :H]


# ----------------------------------------------------------------------------
# Parameter init (PyTorch-Linear-like uniform) + pure-JAX reference
# ----------------------------------------------------------------------------
def init_mlp_params(key, d_in, hidden, d_out):
    ks = jax.random.split(key, 6)

    def linear(kw, kb, fi, fo):
        bound = 1.0 / np.sqrt(fi)
        w = jax.random.uniform(kw, (fi, fo), jnp.float32, -bound, bound)
        b = jax.random.uniform(kb, (1, fo), jnp.float32, -bound, bound)
        return w, b

    w1, b1 = linear(ks[0], ks[1], d_in, hidden)
    w2, b2 = linear(ks[2], ks[3], hidden, hidden)
    w3, b3 = linear(ks[4], ks[5], hidden, d_out)
    return dict(w1=w1, b1=b1, w2=w2, b2=b2, w3=w3, b3=b3,
                gamma=jnp.ones((1, d_out), jnp.float32),
                beta=jnp.zeros((1, d_out), jnp.float32))


def _mm(x, w, mm_dtype):
    # Mirror the kernel's matmul precision: mm_dtype operands, f32 accumulate.
    return jnp.dot(x.astype(mm_dtype).astype(jnp.float32),
                   w.astype(mm_dtype).astype(jnp.float32),
                   preferred_element_type=jnp.float32)


def mlp_ref(x, p, mm_dtype):
    h = jax.nn.relu(_mm(x, p["w1"], mm_dtype) + p["b1"])
    h = jax.nn.relu(_mm(h, p["w2"], mm_dtype) + p["b2"])
    h = _mm(h, p["w3"], mm_dtype) + p["b3"]
    mu = h.mean(-1, keepdims=True)
    var = ((h - mu) ** 2).mean(-1, keepdims=True)
    return (h - mu) / jnp.sqrt(var + 1e-5) * p["gamma"] + p["beta"]


def graphnet_block_ref(edge_idx, node_f, edge_f, params,
                       mm_dtype=jnp.bfloat16):
    senders, receivers = edge_idx
    N = node_f.shape[0]
    e_in = jnp.concatenate([node_f[senders], node_f[receivers], edge_f], -1)
    new_e = mlp_ref(e_in, params["mlp_edge"], mm_dtype)
    # Mirror the kernel's inter-kernel precision: the scatter consumes the
    # edge MLP output in mm_dtype (one-hot itself is exact in bf16).
    new_e_q = new_e.astype(mm_dtype).astype(jnp.float32)
    acc = jax.ops.segment_sum(new_e_q, receivers, num_segments=N)
    n_in = jnp.concatenate([node_f, acc], -1)
    new_n = mlp_ref(n_in, params["mlp_node"], mm_dtype)
    return new_n + node_f, new_e + edge_f


if __name__ == "__main__":
    H = 32     # hidden_dim
    N = 80     # nodes
    E = 300    # edges (padded internally -> exercises tiling + masking)

    key = jax.random.PRNGKey(0)
    k_node, k_edge, k_s, k_r, k_pn, k_pe = jax.random.split(key, 6)

    node_features = jax.random.normal(k_node, (N, H), jnp.float32)
    edge_features = jax.random.normal(k_edge, (E, H), jnp.float32)
    senders = jax.random.randint(k_s, (E,), 0, N, jnp.int32)
    receivers = jax.random.randint(k_r, (E,), 0, N, jnp.int32)

    params = dict(
        mlp_node=init_mlp_params(k_pn, 2 * H, H, H),
        mlp_edge=init_mlp_params(k_pe, 3 * H, H, H),
    )

    # Parameter packing (pad + bf16 cast) hoisted out of the jitted step.
    prepped = prepare_graphnet_params(params, H, jnp.bfloat16)

    # Small row_tile for the toy sizes so the multi-tile/padding paths run;
    # production default is row_tile=1024.
    fwd = jax.jit(functools.partial(graphnet_block, row_tile=128,
                                    mm_dtype=jnp.bfloat16))
    new_node, new_edge = fwd((senders, receivers), node_features,
                             edge_features, prepped)
    jax.block_until_ready((new_node, new_edge))

    ref_node, ref_edge = graphnet_block_ref(
        (senders, receivers), node_features, edge_features, params,
        mm_dtype=jnp.bfloat16)
    np.testing.assert_allclose(np.asarray(new_node), np.asarray(ref_node),
                               rtol=5e-3, atol=5e-3)
    np.testing.assert_allclose(np.asarray(new_edge), np.asarray(ref_edge),
                               rtol=5e-3, atol=5e-3)
    print("KERNEL_OK")
</pallas_src>

<mosaic_0001>
module attributes {stable_mosaic.version = 11 : i64} {
  func.func @kernel(%arg0: i32, %arg1: memref<128x128xbf16, #tpu.memory_space<vmem>>, %arg2: memref<128x128xbf16, #tpu.memory_space<vmem>>, %arg3: memref<128x128xf32, #tpu.memory_space<vmem>>, %arg4: memref<128x128xbf16, #tpu.memory_space<vmem>>, %arg5: memref<128x128xbf16, #tpu.memory_space<vmem>>, %arg6: memref<128x128xbf16, #tpu.memory_space<vmem>>, %arg7: memref<1x128xf32, #tpu.memory_space<vmem>>, %arg8: memref<128x128xbf16, #tpu.memory_space<vmem>>, %arg9: memref<1x128xf32, #tpu.memory_space<vmem>>, %arg10: memref<128x128xbf16, #tpu.memory_space<vmem>>, %arg11: memref<1x128xf32, #tpu.memory_space<vmem>>, %arg12: memref<1x128xf32, #tpu.memory_space<vmem>>, %arg13: memref<1x128xf32, #tpu.memory_space<vmem>>, %arg14: memref<128x128xbf16, #tpu.memory_space<vmem>>, %arg15: memref<128x128xf32, #tpu.memory_space<vmem>>) attributes {dimension_semantics = [#tpu.dimension_semantics<parallel>], iteration_bounds = array<i64: 3>, scalar_prefetch = 0 : i64, scratch_operands = 0 : i64, tpu.core_type = #tpu.core_type<tc>, window_params = [{transform_indices = @transform_0, window_bounds = array<i64: 128, 128>}, {transform_indices = @transform_1, window_bounds = array<i64: 128, 128>}, {transform_indices = @transform_2, window_bounds = array<i64: 128, 128>}, {pipeline_mode = #tpu.pipeline_mode<synchronous>, transform_indices = @transform_3, window_bounds = array<i64: 128, 128>}, {pipeline_mode = #tpu.pipeline_mode<synchronous>, transform_indices = @transform_4, window_bounds = array<i64: 128, 128>}, {pipeline_mode = #tpu.pipeline_mode<synchronous>, transform_indices = @transform_5, window_bounds = array<i64: 128, 128>}, {pipeline_mode = #tpu.pipeline_mode<synchronous>, transform_indices = @transform_6, window_bounds = array<i64: 1, 128>}, {pipeline_mode = #tpu.pipeline_mode<synchronous>, transform_indices = @transform_7, window_bounds = array<i64: 128, 128>}, {pipeline_mode = #tpu.pipeline_mode<synchronous>, transform_indices = @transform_8, window_bounds = array<i64: 1, 128>}, {pipeline_mode = #tpu.pipeline_mode<synchronous>, transform_indices = @transform_9, window_bounds = array<i64: 128, 128>}, {pipeline_mode = #tpu.pipeline_mode<synchronous>, transform_indices = @transform_10, window_bounds = array<i64: 1, 128>}, {pipeline_mode = #tpu.pipeline_mode<synchronous>, transform_indices = @transform_11, window_bounds = array<i64: 1, 128>}, {pipeline_mode = #tpu.pipeline_mode<synchronous>, transform_indices = @transform_12, window_bounds = array<i64: 1, 128>}, {transform_indices = @transform_13, window_bounds = array<i64: 128, 128>}, {transform_indices = @transform_14, window_bounds = array<i64: 128, 128>}]} {
    %c0 = arith.constant 0 : index
    %c0_0 = arith.constant 0 : index
    %0 = vector.load %arg1[%c0, %c0_0] : memref<128x128xbf16, #tpu.memory_space<vmem>>, vector<128x128xbf16>
    %c0_1 = arith.constant 0 : index
    %c0_2 = arith.constant 0 : index
    %1 = vector.load %arg4[%c0_1, %c0_2] : memref<128x128xbf16, #tpu.memory_space<vmem>>, vector<128x128xbf16>
    %cst = arith.constant dense<0.000000e+00> : vector<128x128xf32>
    %2 = tpu.matmul %0, %1, %cst {dimension_numbers = #tpu.dot_dimension_numbers<[1], [0], [0], [1], [0, 0, 1, 1], [], []>} : vector<128x128xbf16>, vector<128x128xbf16>, vector<128x128xf32> -> vector<128x128xf32>
    %c0_3 = arith.constant 0 : index
    %c0_4 = arith.constant 0 : index
    %3 = vector.load %arg2[%c0_3, %c0_4] : memref<128x128xbf16, #tpu.memory_space<vmem>>, vector<128x128xbf16>
    %c0_5 = arith.constant 0 : index
    %c0_6 = arith.constant 0 : index
    %4 = vector.load %arg5[%c0_5, %c0_6] : memref<128x128xbf16, #tpu.memory_space<vmem>>, vector<128x128xbf16>
    %cst_7 = arith.constant dense<0.000000e+00> : vector<128x128xf32>
    %5 = tpu.matmul %3, %4, %cst_7 {dimension_numbers = #tpu.dot_dimension_numbers<[1], [0], [0], [1], [0, 0, 1, 1], [], []>} : vector<128x128xbf16>, vector<128x128xbf16>, vector<128x128xf32> -> vector<128x128xf32>
    %6 = arith.addf %2, %5 : vector<128x128xf32>
    %c0_8 = arith.constant 0 : index
    %c0_9 = arith.constant 0 : index
    %7 = vector.load %arg3[%c0_8, %c0_9] : memref<128x128xf32, #tpu.memory_space<vmem>>, vector<128x128xf32>
    %8 = arith.truncf %7 : vector<128x128xf32> to vector<128x128xbf16>
    %c0_10 = arith.constant 0 : index
    %c0_11 = arith.constant 0 : index
    %9 = vector.load %arg6[%c0_10, %c0_11] : memref<128x128xbf16, #tpu.memory_space<vmem>>, vector<128x128xbf16>
    %cst_12 = arith.constant dense<0.000000e+00> : vector<128x128xf32>
    %10 = tpu.matmul %8, %9, %cst_12 {dimension_numbers = #tpu.dot_dimension_numbers<[1], [0], [0], [1], [0, 0, 1, 1], [], []>} : vector<128x128xbf16>, vector<128x128xbf16>, vector<128x128xf32> -> vector<128x128xf32>
    %11 = arith.addf %6, %10 : vector<128x128xf32>
    %c0_13 = arith.constant 0 : index
    %c0_14 = arith.constant 0 : index
    %12 = vector.load %arg7[%c0_13, %c0_14] : memref<1x128xf32, #tpu.memory_space<vmem>>, vector<1x128xf32>
    %13 = vector.broadcast %12 : vector<1x128xf32> to vector<128x128xf32>
    %14 = arith.addf %11, %13 : vector<128x128xf32>
    %cst_15 = arith.constant 0.000000e+00 : f32
    %15 = vector.broadcast %cst_15 : f32 to vector<128x128xf32>
    %16 = arith.maximumf %14, %15 : vector<128x128xf32>
    %17 = arith.truncf %16 : vector<128x128xf32> to vector<128x128xbf16>
    %c0_16 = arith.constant 0 : index
    %c0_17 = arith.constant 0 : index
    %18 = vector.load %arg8[%c0_16, %c0_17] : memref<128x128xbf16, #tpu.memory_space<vmem>>, vector<128x128xbf16>
    %cst_18 = arith.constant dense<0.000000e+00> : vector<128x128xf32>
    %19 = tpu.matmul %17, %18, %cst_18 {dimension_numbers = #tpu.dot_dimension_numbers<[1], [0], [0], [1], [0, 0, 1, 1], [], []>} : vector<128x128xbf16>, vector<128x128xbf16>, vector<128x128xf32> -> vector<128x128xf32>
    %c0_19 = arith.constant 0 : index
    %c0_20 = arith.constant 0 : index
    %20 = vector.load %arg9[%c0_19, %c0_20] : memref<1x128xf32, #tpu.memory_space<vmem>>, vector<1x128xf32>
    %21 = vector.broadcast %20 : vector<1x128xf32> to vector<128x128xf32>
    %22 = arith.addf %19, %21 : vector<128x128xf32>
    %cst_21 = arith.constant 0.000000e+00 : f32
    %23 = vector.broadcast %cst_21 : f32 to vector<128x128xf32>
    %24 = arith.maximumf %22, %23 : vector<128x128xf32>
    %25 = arith.truncf %24 : vector<128x128xf32> to vector<128x128xbf16>
    %c0_22 = arith.constant 0 : index
    %c0_23 = arith.constant 0 : index
    %26 = vector.load %arg10[%c0_22, %c0_23] : memref<128x128xbf16, #tpu.memory_space<vmem>>, vector<128x128xbf16>
    %cst_24 = arith.constant dense<0.000000e+00> : vector<128x128xf32>
    %27 = tpu.matmul %25, %26, %cst_24 {dimension_numbers = #tpu.dot_dimension_numbers<[1], [0], [0], [1], [0, 0, 1, 1], [], []>} : vector<128x128xbf16>, vector<128x128xbf16>, vector<128x128xf32> -> vector<128x128xf32>
    %c0_25 = arith.constant 0 : index
    %c0_26 = arith.constant 0 : index
    %28 = vector.load %arg11[%c0_25, %c0_26] : memref<1x128xf32, #tpu.memory_space<vmem>>, vector<1x128xf32>
    %29 = vector.broadcast %28 : vector<1x128xf32> to vector<128x128xf32>
    %30 = arith.addf %27, %29 : vector<128x128xf32>
    %cst_27 = arith.constant dense<0.000000e+00> : vector<128xf32>
    %31 = vector.multi_reduction <add>, %30, %cst_27 [1] : vector<128x128xf32> to vector<128xf32>
    %32 = vector.shape_cast %31 : vector<128xf32> to vector<128x1xf32>
    %cst_28 = arith.constant 3.125000e-02 : f32
    %33 = vector.broadcast %cst_28 : f32 to vector<128x1xf32>
    %34 = arith.mulf %32, %33 : vector<128x1xf32>
    %35 = vector.broadcast %34 : vector<128x1xf32> to vector<128x128xf32>
    %36 = arith.subf %30, %35 : vector<128x128xf32>
    %37 = tpu.iota {dimensions = array<i32: 1>} : vector<1x128xi32>
    %c32_i32 = arith.constant 32 : i32
    %38 = vector.broadcast %c32_i32 : i32 to vector<1x128xi32>
    %39 = arith.cmpi slt, %37, %38 : vector<1x128xi32>
    %40 = arith.extui %39 : vector<1x128xi1> to vector<1x128xi32>
    %41 = arith.sitofp %40 : vector<1x128xi32> to vector<1x128xf32>
    %42 = vector.broadcast %41 : vector<1x128xf32> to vector<128x128xf32>
    %43 = arith.mulf %36, %42 : vector<128x128xf32>
    %44 = arith.mulf %43, %43 : vector<128x128xf32>
    %cst_29 = arith.constant dense<0.000000e+00> : vector<128xf32>
    %45 = vector.multi_reduction <add>, %44, %cst_29 [1] : vector<128x128xf32> to vector<128xf32>
    %46 = vector.shape_cast %45 : vector<128xf32> to vector<128x1xf32>
    %cst_30 = arith.constant 3.125000e-02 : f32
    %47 = vector.broadcast %cst_30 : f32 to vector<128x1xf32>
    %48 = arith.mulf %46, %47 : vector<128x1xf32>
    %cst_31 = arith.constant 9.99999974E-6 : f32
    %49 = vector.broadcast %cst_31 : f32 to vector<128x1xf32>
    %50 = arith.addf %48, %49 : vector<128x1xf32>
    %51 = math.rsqrt %50 : vector<128x1xf32>
    %52 = vector.broadcast %51 : vector<128x1xf32> to vector<128x128xf32>
    %53 = arith.mulf %43, %52 : vector<128x128xf32>
    %c0_32 = arith.constant 0 : index
    %c0_33 = arith.constant 0 : index
    %54 = vector.load %arg12[%c0_32, %c0_33] : memref<1x128xf32, #tpu.memory_space<vmem>>, vector<1x128xf32>
    %55 = vector.broadcast %54 : vector<1x128xf32> to vector<128x128xf32>
    %56 = arith.mulf %53, %55 : vector<128x128xf32>
    %c0_34 = arith.constant 0 : index
    %c0_35 = arith.constant 0 : index
    %57 = vector.load %arg13[%c0_34, %c0_35] : memref<1x128xf32, #tpu.memory_space<vmem>>, vector<1x128xf32>
    %58 = vector.broadcast %57 : vector<1x128xf32> to vector<128x128xf32>
    %59 = arith.addf %56, %58 : vector<128x128xf32>
    %c0_36 = arith.constant 0 : index
    %c0_37 = arith.constant 0 : index
    %60 = vector.load %arg3[%c0_36, %c0_37] : memref<128x128xf32, #tpu.memory_space<vmem>>, vector<128x128xf32>
    %61 = arith.truncf %59 : vector<128x128xf32> to vector<128x128xbf16>
    %c0_38 = arith.constant 0 : index
    %c0_39 = arith.constant 0 : index
    %62 = vector.load %arg14[%c0_38, %c0_39] : memref<128x128xbf16, #tpu.memory_space<vmem>>, vector<128x128xbf16>
    tpu.vector_store %arg14[%c0_38, %c0_39], %61 {strides = array<i32>} : memref<128x128xbf16, #tpu.memory_space<vmem>>, vector<128x128xbf16>,
    %63 = arith.addf %59, %60 : vector<128x128xf32>
    %c0_40 = arith.constant 0 : index
    %c0_41 = arith.constant 0 : index
    %64 = vector.load %arg15[%c0_40, %c0_41] : memref<128x128xf32, #tpu.memory_space<vmem>>, vector<128x128xf32>
    tpu.vector_store %arg15[%c0_40, %c0_41], %63 {strides = array<i32>} : memref<128x128xf32, #tpu.memory_space<vmem>>, vector<128x128xf32>,
    return
  }
  func.func @transform_0(%arg0: i32) -> (i32, i32) {
    %c0_i32 = arith.constant 0 : i32
    %c0_i32_0 = arith.constant 0 : i32
    return %arg0, %c0_i32 : i32, i32
  }
  func.func @transform_1(%arg0: i32) -> (i32, i32) {
    %c0_i32 = arith.constant 0 : i32
    %c0_i32_0 = arith.constant 0 : i32
    return %arg0, %c0_i32 : i32, i32
  }
  func.func @transform_2(%arg0: i32) -> (i32, i32) {
    %c0_i32 = arith.constant 0 : i32
    %c0_i32_0 = arith.constant 0 : i32
    return %arg0, %c0_i32 : i32, i32
  }
  func.func @transform_3(%arg0: i32) -> (i32, i32) {
    %c0_i32 = arith.constant 0 : i32
    %c0_i32_0 = arith.constant 0 : i32
    %c0_i32_1 = arith.constant 0 : i32
    return %c0_i32, %c0_i32_0 : i32, i32
  }
  func.func @transform_4(%arg0: i32) -> (i32, i32) {
    %c0_i32 = arith.constant 0 : i32
    %c0_i32_0 = arith.constant 0 : i32
    %c0_i32_1 = arith.constant 0 : i32
    return %c0_i32, %c0_i32_0 : i32, i32
  }
  func.func @transform_5(%arg0: i32) -> (i32, i32) {
    %c0_i32 = arith.constant 0 : i32
    %c0_i32_0 = arith.constant 0 : i32
    %c0_i32_1 = arith.constant 0 : i32
    return %c0_i32, %c0_i32_0 : i32, i32
  }
  func.func @transform_6(%arg0: i32) -> (i32, i32) {
    %c0_i32 = arith.constant 0 : i32
    %c0_i32_0 = arith.constant 0 : i32
    %c0_i32_1 = arith.constant 0 : i32
    return %c0_i32, %c0_i32_0 : i32, i32
  }
  func.func @transform_7(%arg0: i32) -> (i32, i32) {
    %c0_i32 = arith.constant 0 : i32
    %c0_i32_0 = arith.constant 0 : i32
    %c0_i32_1 = arith.constant 0 : i32
    return %c0_i32, %c0_i32_0 : i32, i32
  }
  func.func @transform_8(%arg0: i32) -> (i32, i32) {
    %c0_i32 = arith.constant 0 : i32
    %c0_i32_0 = arith.constant 0 : i32
    %c0_i32_1 = arith.constant 0 : i32
    return %c0_i32, %c0_i32_0 : i32, i32
  }
  func.func @transform_9(%arg0: i32) -> (i32, i32) {
    %c0_i32 = arith.constant 0 : i32
    %c0_i32_0 = arith.constant 0 : i32
    %c0_i32_1 = arith.constant 0 : i32
    return %c0_i32, %c0_i32_0 : i32, i32
  }
  func.func @transform_10(%arg0: i32) -> (i32, i32) {
    %c0_i32 = arith.constant 0 : i32
    %c0_i32_0 = arith.constant 0 : i32
    %c0_i32_1 = arith.constant 0 : i32
    return %c0_i32, %c0_i32_0 : i32, i32
  }
  func.func @transform_11(%arg0: i32) -> (i32, i32) {
    %c0_i32 = arith.constant 0 : i32
    %c0_i32_0 = arith.constant 0 : i32
    %c0_i32_1 = arith.constant 0 : i32
    return %c0_i32, %c0_i32_0 : i32, i32
  }
  func.func @transform_12(%arg0: i32) -> (i32, i32) {
    %c0_i32 = arith.constant 0 : i32
    %c0_i32_0 = arith.constant 0 : i32
    %c0_i32_1 = arith.constant 0 : i32
    return %c0_i32, %c0_i32_0 : i32, i32
  }
  func.func @transform_13(%arg0: i32) -> (i32, i32) {
    %c0_i32 = arith.constant 0 : i32
    %c0_i32_0 = arith.constant 0 : i32
    return %arg0, %c0_i32 : i32, i32
  }
  func.func @transform_14(%arg0: i32) -> (i32, i32) {
    %c0_i32 = arith.constant 0 : i32
    %c0_i32_0 = arith.constant 0 : i32
    return %arg0, %c0_i32 : i32, i32
  }
}

module attributes {stable_mosaic.version = 11 : i64} {
  func.func @_scatter_add_kernel(%arg0: i32, %arg1: i32, %arg2: memref<1x384xi32, #tpu.memory_space<vmem>>, %arg3: memref<384x128xbf16, #tpu.memory_space<vmem>>, %arg4: memref<128x128xbf16, #tpu.memory_space<vmem>>, %arg5: memref<128x128xf32, #tpu.memory_space<vmem>>) attributes {dimension_semantics = [#tpu.dimension_semantics<parallel>, #tpu.dimension_semantics<arbitrary>], iteration_bounds = array<i64: 1, 1>, scalar_prefetch = 0 : i64, scratch_operands = 1 : i64, tpu.core_type = #tpu.core_type<tc>, window_params = [{transform_indices = @transform_0, window_bounds = array<i64: 1, 384>}, {transform_indices = @transform_1, window_bounds = array<i64: 384, 128>}, {transform_indices = @transform_2, window_bounds = array<i64: 128, 128>}]} {
    %c0_i32 = arith.constant 0 : i32
    %0 = arith.cmpi eq, %arg1, %c0_i32 : i32
    %1 = arith.extui %0 : i1 to i32
    %c0_i32_0 = arith.constant 0 : i32
    %2 = arith.cmpi ne, %1, %c0_i32_0 : i32
    scf.if %2 {
      %cst_10 = arith.constant 0.000000e+00 : f32
      %21 = vector.broadcast %cst_10 : f32 to vector<128x128xf32>
      %c0_11 = arith.constant 0 : index
      %c0_12 = arith.constant 0 : index
      %22 = vector.load %arg5[%c0_11, %c0_12] : memref<128x128xf32, #tpu.memory_space<vmem>>, vector<128x128xf32>
      tpu.vector_store %arg5[%c0_11, %c0_12], %21 {strides = array<i32>} : memref<128x128xf32, #tpu.memory_space<vmem>>, vector<128x128xf32>,
    } else {
    }
    %c128_i32 = arith.constant 128 : i32
    %3 = arith.muli %arg0, %c128_i32 : i32
    %4 = tpu.iota {dimensions = array<i32: 0>} : vector<128x384xi32>
    %5 = vector.broadcast %3 : i32 to vector<128x384xi32>
    %6 = arith.addi %5, %4 : vector<128x384xi32>
    %c0 = arith.constant 0 : index
    %c0_1 = arith.constant 0 : index
    %7 = vector.load %arg2[%c0, %c0_1] : memref<1x384xi32, #tpu.memory_space<vmem>>, vector<1x384xi32>
    %8 = vector.broadcast %7 : vector<1x384xi32> to vector<128x384xi32>
    %9 = arith.cmpi eq, %6, %8 : vector<128x384xi32>
    %10 = arith.extui %9 : vector<128x384xi1> to vector<128x384xi32>
    %11 = arith.sitofp %10 : vector<128x384xi32> to vector<128x384xf32>
    %12 = arith.truncf %11 : vector<128x384xf32> to vector<128x384xbf16>
    %c0_2 = arith.constant 0 : index
    %c0_3 = arith.constant 0 : index
    %13 = vector.load %arg5[%c0_2, %c0_3] : memref<128x128xf32, #tpu.memory_space<vmem>>, vector<128x128xf32>
    %c0_4 = arith.constant 0 : index
    %c0_5 = arith.constant 0 : index
    %14 = vector.load %arg3[%c0_4, %c0_5] : memref<384x128xbf16, #tpu.memory_space<vmem>>, vector<384x128xbf16>
    %cst = arith.constant dense<0.000000e+00> : vector<128x128xf32>
    %15 = tpu.matmul %12, %14, %cst {dimension_numbers = #tpu.dot_dimension_numbers<[1], [0], [0], [1], [0, 0, 1, 1], [], []>} : vector<128x384xbf16>, vector<384x128xbf16>, vector<128x128xf32> -> vector<128x128xf32>
    %16 = arith.addf %13, %15 : vector<128x128xf32>
    %c0_6 = arith.constant 0 : index
    %c0_7 = arith.constant 0 : index
    %17 = vector.load %arg5[%c0_6, %c0_7] : memref<128x128xf32, #tpu.memory_space<vmem>>, vector<128x128xf32>
    tpu.vector_store %arg5[%c0_6, %c0_7], %16 {strides = array<i32>} : memref<128x128xf32, #tpu.memory_space<vmem>>, vector<128x128xf32>,
    %c0_i32_8 = arith.constant 0 : i32
    %18 = arith.cmpi eq, %arg1, %c0_i32_8 : i32
    %19 = arith.extui %18 : i1 to i32
    %c0_i32_9 = arith.constant 0 : i32
    %20 = arith.cmpi ne, %19, %c0_i32_9 : i32
    scf.if %20 {
      %c0_10 = arith.constant 0 : index
      %c0_11 = arith.constant 0 : index
      %21 = vector.load %arg5[%c0_10, %c0_11] : memref<128x128xf32, #tpu.memory_space<vmem>>, vector<128x128xf32>
      %22 = arith.truncf %21 : vector<128x128xf32> to vector<128x128xbf16>
      %c0_12 = arith.constant 0 : index
      %c0_13 = arith.constant 0 : index
      %23 = vector.load %arg4[%c0_12, %c0_13] : memref<128x128xbf16, #tpu.memory_space<vmem>>, vector<128x128xbf16>
      tpu.vector_store %arg4[%c0_12, %c0_13], %22 {strides = array<i32>} : memref<128x128xbf16, #tpu.memory_space<vmem>>, vector<128x128xbf16>,
    } else {
    }
    return
  }
  func.func @transform_0(%arg0: i32, %arg1: i32) -> (i32, i32) {
    %c0_i32 = arith.constant 0 : i32
    %c0_i32_0 = arith.constant 0 : i32
    return %c0_i32, %arg1 : i32, i32
  }
  func.func @transform_1(%arg0: i32, %arg1: i32) -> (i32, i32) {
    %c0_i32 = arith.constant 0 : i32
    %c0_i32_0 = arith.constant 0 : i32
    return %arg1, %c0_i32 : i32, i32
  }
  func.func @transform_2(%arg0: i32, %arg1: i32) -> (i32, i32) {
    %c0_i32 = arith.constant 0 : i32
    %c0_i32_0 = arith.constant 0 : i32
    return %arg0, %c0_i32 : i32, i32
  }
}

module attributes {stable_mosaic.version = 11 : i64} {
  func.func @kernel(%arg0: i32, %arg1: memref<128x128xf32, #tpu.memory_space<vmem>>, %arg2: memref<128x128xbf16, #tpu.memory_space<vmem>>, %arg3: memref<128x128xbf16, #tpu.memory_space<vmem>>, %arg4: memref<128x128xbf16, #tpu.memory_space<vmem>>, %arg5: memref<1x128xf32, #tpu.memory_space<vmem>>, %arg6: memref<128x128xbf16, #tpu.memory_space<vmem>>, %arg7: memref<1x128xf32, #tpu.memory_space<vmem>>, %arg8: memref<128x128xbf16, #tpu.memory_space<vmem>>, %arg9: memref<1x128xf32, #tpu.memory_space<vmem>>, %arg10: memref<1x128xf32, #tpu.memory_space<vmem>>, %arg11: memref<1x128xf32, #tpu.memory_space<vmem>>, %arg12: memref<128x128xf32, #tpu.memory_space<vmem>>) attributes {dimension_semantics = [#tpu.dimension_semantics<parallel>], iteration_bounds = array<i64: 1>, scalar_prefetch = 0 : i64, scratch_operands = 0 : i64, tpu.core_type = #tpu.core_type<tc>, window_params = [{transform_indices = @transform_0, window_bounds = array<i64: 128, 128>}, {transform_indices = @transform_1, window_bounds = array<i64: 128, 128>}, {pipeline_mode = #tpu.pipeline_mode<synchronous>, transform_indices = @transform_2, window_bounds = array<i64: 128, 128>}, {pipeline_mode = #tpu.pipeline_mode<synchronous>, transform_indices = @transform_3, window_bounds = array<i64: 128, 128>}, {pipeline_mode = #tpu.pipeline_mode<synchronous>, transform_indices = @transform_4, window_bounds = array<i64: 1, 128>}, {pipeline_mode = #tpu.pipeline_mode<synchronous>, transform_indices = @transform_5, window_bounds = array<i64: 128, 128>}, {pipeline_mode = #tpu.pipeline_mode<synchronous>, transform_indices = @transform_6, window_bounds = array<i64: 1, 128>}, {pipeline_mode = #tpu.pipeline_mode<synchronous>, transform_indices = @transform_7, window_bounds = array<i64: 128, 128>}, {pipeline_mode = #tpu.pipeline_mode<synchronous>, transform_indices = @transform_8, window_bounds = array<i64: 1, 128>}, {pipeline_mode = #tpu.pipeline_mode<synchronous>, transform_indices = @transform_9, window_bounds = array<i64: 1, 128>}, {pipeline_mode = #tpu.pipeline_mode<synchronous>, transform_indices = @transform_10, window_bounds = array<i64: 1, 128>}, {transform_indices = @transform_11, window_bounds = array<i64: 128, 128>}]} {
    %c0 = arith.constant 0 : index
    %c0_0 = arith.constant 0 : index
    %0 = vector.load %arg1[%c0, %c0_0] : memref<128x128xf32, #tpu.memory_space<vmem>>, vector<128x128xf32>
    %1 = arith.truncf %0 : vector<128x128xf32> to vector<128x128xbf16>
    %c0_1 = arith.constant 0 : index
    %c0_2 = arith.constant 0 : index
    %2 = vector.load %arg3[%c0_1, %c0_2] : memref<128x128xbf16, #tpu.memory_space<vmem>>, vector<128x128xbf16>
    %cst = arith.constant dense<0.000000e+00> : vector<128x128xf32>
    %3 = tpu.matmul %1, %2, %cst {dimension_numbers = #tpu.dot_dimension_numbers<[1], [0], [0], [1], [0, 0, 1, 1], [], []>} : vector<128x128xbf16>, vector<128x128xbf16>, vector<128x128xf32> -> vector<128x128xf32>
    %c0_3 = arith.constant 0 : index
    %c0_4 = arith.constant 0 : index
    %4 = vector.load %arg2[%c0_3, %c0_4] : memref<128x128xbf16, #tpu.memory_space<vmem>>, vector<128x128xbf16>
    %c0_5 = arith.constant 0 : index
    %c0_6 = arith.constant 0 : index
    %5 = vector.load %arg4[%c0_5, %c0_6] : memref<128x128xbf16, #tpu.memory_space<vmem>>, vector<128x128xbf16>
    %cst_7 = arith.constant dense<0.000000e+00> : vector<128x128xf32>
    %6 = tpu.matmul %4, %5, %cst_7 {dimension_numbers = #tpu.dot_dimension_numbers<[1], [0], [0], [1], [0, 0, 1, 1], [], []>} : vector<128x128xbf16>, vector<128x128xbf16>, vector<128x128xf32> -> vector<128x128xf32>
    %7 = arith.addf %3, %6 : vector<128x128xf32>
    %c0_8 = arith.constant 0 : index
    %c0_9 = arith.constant 0 : index
    %8 = vector.load %arg5[%c0_8, %c0_9] : memref<1x128xf32, #tpu.memory_space<vmem>>, vector<1x128xf32>
    %9 = vector.broadcast %8 : vector<1x128xf32> to vector<128x128xf32>
    %10 = arith.addf %7, %9 : vector<128x128xf32>
    %cst_10 = arith.constant 0.000000e+00 : f32
    %11 = vector.broadcast %cst_10 : f32 to vector<128x128xf32>
    %12 = arith.maximumf %10, %11 : vector<128x128xf32>
    %13 = arith.truncf %12 : vector<128x128xf32> to vector<128x128xbf16>
    %c0_11 = arith.constant 0 : index
    %c0_12 = arith.constant 0 : index
    %14 = vector.load %arg6[%c0_11, %c0_12] : memref<128x128xbf16, #tpu.memory_space<vmem>>, vector<128x128xbf16>
    %cst_13 = arith.constant dense<0.000000e+00> : vector<128x128xf32>
    %15 = tpu.matmul %13, %14, %cst_13 {dimension_numbers = #tpu.dot_dimension_numbers<[1], [0], [0], [1], [0, 0, 1, 1], [], []>} : vector<128x128xbf16>, vector<128x128xbf16>, vector<128x128xf32> -> vector<128x128xf32>
    %c0_14 = arith.constant 0 : index
    %c0_15 = arith.constant 0 : index
    %16 = vector.load %arg7[%c0_14, %c0_15] : memref<1x128xf32, #tpu.memory_space<vmem>>, vector<1x128xf32>
    %17 = vector.broadcast %16 : vector<1x128xf32> to vector<128x128xf32>
    %18 = arith.addf %15, %17 : vector<128x128xf32>
    %cst_16 = arith.constant 0.000000e+00 : f32
    %19 = vector.broadcast %cst_16 : f32 to vector<128x128xf32>
    %20 = arith.maximumf %18, %19 : vector<128x128xf32>
    %21 = arith.truncf %20 : vector<128x128xf32> to vector<128x128xbf16>
    %c0_17 = arith.constant 0 : index
    %c0_18 = arith.constant 0 : index
    %22 = vector.load %arg8[%c0_17, %c0_18] : memref<128x128xbf16, #tpu.memory_space<vmem>>, vector<128x128xbf16>
    %cst_19 = arith.constant dense<0.000000e+00> : vector<128x128xf32>
    %23 = tpu.matmul %21, %22, %cst_19 {dimension_numbers = #tpu.dot_dimension_numbers<[1], [0], [0], [1], [0, 0, 1, 1], [], []>} : vector<128x128xbf16>, vector<128x128xbf16>, vector<128x128xf32> -> vector<128x128xf32>
    %c0_20 = arith.constant 0 : index
    %c0_21 = arith.constant 0 : index
    %24 = vector.load %arg9[%c0_20, %c0_21] : memref<1x128xf32, #tpu.memory_space<vmem>>, vector<1x128xf32>
    %25 = vector.broadcast %24 : vector<1x128xf32> to vector<128x128xf32>
    %26 = arith.addf %23, %25 : vector<128x128xf32>
    %cst_22 = arith.constant dense<0.000000e+00> : vector<128xf32>
    %27 = vector.multi_reduction <add>, %26, %cst_22 [1] : vector<128x128xf32> to vector<128xf32>
    %28 = vector.shape_cast %27 : vector<128xf32> to vector<128x1xf32>
    %cst_23 = arith.constant 3.125000e-02 : f32
    %29 = vector.broadcast %cst_23 : f32 to vector<128x1xf32>
    %30 = arith.mulf %28, %29 : vector<128x1xf32>
    %31 = vector.broadcast %30 : vector<128x1xf32> to vector<128x128xf32>
    %32 = arith.subf %26, %31 : vector<128x128xf32>
    %33 = tpu.iota {dimensions = array<i32: 1>} : vector<1x128xi32>
    %c32_i32 = arith.constant 32 : i32
    %34 = vector.broadcast %c32_i32 : i32 to vector<1x128xi32>
    %35 = arith.cmpi slt, %33, %34 : vector<1x128xi32>
    %36 = arith.extui %35 : vector<1x128xi1> to vector<1x128xi32>
    %37 = arith.sitofp %36 : vector<1x128xi32> to vector<1x128xf32>
    %38 = vector.broadcast %37 : vector<1x128xf32> to vector<128x128xf32>
    %39 = arith.mulf %32, %38 : vector<128x128xf32>
    %40 = arith.mulf %39, %39 : vector<128x128xf32>
    %cst_24 = arith.constant dense<0.000000e+00> : vector<128xf32>
    %41 = vector.multi_reduction <add>, %40, %cst_24 [1] : vector<128x128xf32> to vector<128xf32>
    %42 = vector.shape_cast %41 : vector<128xf32> to vector<128x1xf32>
    %cst_25 = arith.constant 3.125000e-02 : f32
    %43 = vector.broadcast %cst_25 : f32 to vector<128x1xf32>
    %44 = arith.mulf %42, %43 : vector<128x1xf32>
    %cst_26 = arith.constant 9.99999974E-6 : f32
    %45 = vector.broadcast %cst_26 : f32 to vector<128x1xf32>
    %46 = arith.addf %44, %45 : vector<128x1xf32>
    %47 = math.rsqrt %46 : vector<128x1xf32>
    %48 = vector.broadcast %47 : vector<128x1xf32> to vector<128x128xf32>
    %49 = arith.mulf %39, %48 : vector<128x128xf32>
    %c0_27 = arith.constant 0 : index
    %c0_28 = arith.constant 0 : index
    %50 = vector.load %arg10[%c0_27, %c0_28] : memref<1x128xf32, #tpu.memory_space<vmem>>, vector<1x128xf32>
    %51 = vector.broadcast %50 : vector<1x128xf32> to vector<128x128xf32>
    %52 = arith.mulf %49, %51 : vector<128x128xf32>
    %c0_29 = arith.constant 0 : index
    %c0_30 = arith.constant 0 : index
    %53 = vector.load %arg11[%c0_29, %c0_30] : memref<1x128xf32, #tpu.memory_space<vmem>>, vector<1x128xf32>
    %54 = vector.broadcast %53 : vector<1x128xf32> to vector<128x128xf32>
    %55 = arith.addf %52, %54 : vector<128x128xf32>
    %c0_31 = arith.constant 0 : index
    %c0_32 = arith.constant 0 : index
    %56 = vector.load %arg1[%c0_31, %c0_32] : memref<128x128xf32, #tpu.memory_space<vmem>>, vector<128x128xf32>
    %57 = arith.addf %55, %56 : vector<128x128xf32>
    %c0_33 = arith.constant 0 : index
    %c0_34 = arith.constant 0 : index
    %58 = vector.load %arg12[%c0_33, %c0_34] : memref<128x128xf32, #tpu.memory_space<vmem>>, vector<128x128xf32>
    tpu.vector_store %arg12[%c0_33, %c0_34], %57 {strides = array<i32>} : memref<128x128xf32, #tpu.memory_space<vmem>>, vector<128x128xf32>,
    return
  }
  func.func @transform_0(%arg0: i32) -> (i32, i32) {
    %c0_i32 = arith.constant 0 : i32
    %c0_i32_0 = arith.constant 0 : i32
    return %arg0, %c0_i32 : i32, i32
  }
  func.func @transform_1(%arg0: i32) -> (i32, i32) {
    %c0_i32 = arith.constant 0 : i32
    %c0_i32_0 = arith.constant 0 : i32
    return %arg0, %c0_i32 : i32, i32
  }
  func.func @transform_2(%arg0: i32) -> (i32, i32) {
    %c0_i32 = arith.constant 0 : i32
    %c0_i32_0 = arith.constant 0 : i32
    %c0_i32_1 = arith.constant 0 : i32
    return %c0_i32, %c0_i32_0 : i32, i32
  }
  func.func @transform_3(%arg0: i32) -> (i32, i32) {
    %c0_i32 = arith.constant 0 : i32
    %c0_i32_0 = arith.constant 0 : i32
    %c0_i32_1 = arith.constant 0 : i32
    return %c0_i32, %c0_i32_0 : i32, i32
  }
  func.func @transform_4(%arg0: i32) -> (i32, i32) {
    %c0_i32 = arith.constant 0 : i32
    %c0_i32_0 = arith.constant 0 : i32
    %c0_i32_1 = arith.constant 0 : i32
    return %c0_i32, %c0_i32_0 : i32, i32
  }
  func.func @transform_5(%arg0: i32) -> (i32, i32) {
    %c0_i32 = arith.constant 0 : i32
    %c0_i32_0 = arith.constant 0 : i32
    %c0_i32_1 = arith.constant 0 : i32
    return %c0_i32, %c0_i32_0 : i32, i32
  }
  func.func @transform_6(%arg0: i32) -> (i32, i32) {
    %c0_i32 = arith.constant 0 : i32
    %c0_i32_0 = arith.constant 0 : i32
    %c0_i32_1 = arith.constant 0 : i32
    return %c0_i32, %c0_i32_0 : i32, i32
  }
  func.func @transform_7(%arg0: i32) -> (i32, i32) {
    %c0_i32 = arith.constant 0 : i32
    %c0_i32_0 = arith.constant 0 : i32
    %c0_i32_1 = arith.constant 0 : i32
    return %c0_i32, %c0_i32_0 : i32, i32
  }
  func.func @transform_8(%arg0: i32) -> (i32, i32) {
    %c0_i32 = arith.constant 0 : i32
    %c0_i32_0 = arith.constant 0 : i32
    %c0_i32_1 = arith.constant 0 : i32
    return %c0_i32, %c0_i32_0 : i32, i32
  }
  func.func @transform_9(%arg0: i32) -> (i32, i32) {
    %c0_i32 = arith.constant 0 : i32
    %c0_i32_0 = arith.constant 0 : i32
    %c0_i32_1 = arith.constant 0 : i32
    return %c0_i32, %c0_i32_0 : i32, i32
  }
  func.func @transform_10(%arg0: i32) -> (i32, i32) {
    %c0_i32 = arith.constant 0 : i32
    %c0_i32_0 = arith.constant 0 : i32
    %c0_i32_1 = arith.constant 0 : i32
    return %c0_i32, %c0_i32_0 : i32, i32
  }
  func.func @transform_11(%arg0: i32) -> (i32, i32) {
    %c0_i32 = arith.constant 0 : i32
    %c0_i32_0 = arith.constant 0 : i32
    return %arg0, %c0_i32 : i32, i32
  }
}

</mosaic_0001>

<bundles_post_ra>
// kernel: graphnet_block.4
= control target key start
LH: loop header
LB: loop body
LE: loop exit
PB: predicated region body
PF: predicated region fallthrough
CT: control target
= control target key end

     0   :  { %v33_v13 = vlaneseq  ;;  %v1121_v36 = vmov 1.0|1.0   ;;  %s1337_s1 = inlined_call_operand.vmem [shape: bf16[384,128], index: 1, kind: input, shape index: {}]   ;;  %s1338_s0 = inlined_call_operand.vmem [shape: s32[1,384], index: 0, kind: input, shape index: {}]   ;;  %s1339_s2 = inlined_call_operand.vmem [shape: bf16[128,128], index: 2, kind: output, shape index: {}]  }
   0x1   :  { %v1097_v0 = vld [vmem:[%s1337_s1 + $0x40] sm:$0xff]   ;;  %v1100_v3 = vld [vmem:[%s1337_s1 + $0x48] sm:$0xff]   ;;  %v1103_v6 = vld [vmem:[%s1337_s1 + $0x50] sm:$0xff]  }
   0x2   :  { %v1098_v1 = vld [vmem:[%s1337_s1] sm:$0xff]   ;;  %984 = vmatprep.subr.bf16.mxu0 %v1097_v0  ;;  %v1101_v4 = vld [vmem:[%s1337_s1 + $0x8] sm:$0xff]   ;;  %v1104_v7 = vld [vmem:[%s1337_s1 + $0x10] sm:$0xff]   ;;  %v1185_v17 = vshrl.u32 %v33_v13, 7 }
   0x3   :  { %v1099_v2 = vld [vmem:[%s1337_s1 + $0x80] sm:$0xff]   ;;  %985 = vmatpush3.bf16.msra.mxu0 %v1098_v1  ;;  %v1102_v5 = vld [vmem:[%s1337_s1 + $0x88] sm:$0xff]   ;;  %v1105_v8 = vld [vmem:[%s1337_s1 + $0x90] sm:$0xff]  }
   0x4   :  { %1064 = vmatprep.subr.bf16.mxu1 %v1099_v2  ;;  %986 = vmatprep.subr.bf16.mxu0 %v1100_v3  ;;  %v1106_v9 = vld [vmem:[%s1337_s1 + $0x58] sm:$0xff]   ;;  %v1109_v12 = vld [vmem:[%s1337_s1 + $0x60] sm:$0xff]   ;;  %v1112_v16 = vld [vmem:[%s1337_s1 + $0x68] sm:$0xff]   ;;  %v74_v21 = vsub.s32 1, %v1185_v17  ;;  %v70_v22 = vsub.s32 0, %v1185_v17  ;;  %v78_v23 = vsub.s32 2, %v1185_v17 }
   0x5   :  { %1065 = vmatpush3.bf16.msra.mxu1 %v1099_v2  ;;  %v1107_v10 = vld [vmem:[%s1337_s1 + $0x18] sm:$0xff]   ;;  %v1111_v14 = vld [vmem:[%s1337_s1 + $0xa0] sm:$0xff]   ;;  %v1114_v18 = vld [vmem:[%s1337_s1 + $0xa8] sm:$0xff]   ;;  %v35_v26 = vadd.s32 8, %v1185_v17  ;;  %v36_v33 = vadd.s32 16, %v1185_v17  ;;  %v37_v34 = vadd.s32 24, %v1185_v17 }
   0x6   :  { %1066 = vmatprep.subr.bf16.mxu1 %v1102_v5  ;;  %v1108_v11 = vld [vmem:[%s1337_s1 + $0x98] sm:$0xff]   ;;  %v1110_v15 = vld [vmem:[%s1337_s1 + $0x20] sm:$0xff]   ;;  %v1113_v19 = vld [vmem:[%s1337_s1 + $0x28] sm:$0xff]   ;;  %v38_v37 = vadd.s32 32, %v1185_v17  ;;  %v39_v38 = vadd.s32 40, %v1185_v17  ;;  %v40_v39 = vadd.s32 48, %v1185_v17 }
   0x7   :  { %987 = vmatpush3.bf16.msra.mxu0 %v1101_v4  ;;  %v1115_v20 = vld [vmem:[%s1337_s1 + $0x70] sm:$0xff]   ;;  %v1118_v27 = vld [vmem:[%s1337_s1 + $0x78] sm:$0xff]   ;;  %v67_v28 = vld [vmem:[%s1338_s0] sm:$0x7]  ;;  %v41_v40 = vadd.s32 56, %v1185_v17  ;;  %v42_v41 = vadd.s32 64, %v1185_v17 }
   0x8   :  { %988 = vmatprep.subr.bf16.mxu0 %v1103_v6  ;;  %v1117_v24 = vld [vmem:[%s1337_s1 + $0xb0] sm:$0xff]   ;;  %v1212_v29 = vrot.slane %v67_v28, %v74_v21  ;;  %v1214_v30 = vrot.slane %v67_v28, %v70_v22  ;;  %v1216_v31 = vrot.slane %v67_v28, %v78_v23  ;;  %v1120_v32 = vld [vmem:[%s1337_s1 + $0xb8] sm:$0xff]   ;;  %v43_v42 = vadd.s32 72, %v1185_v17 }
   0x9   :  { %1067 = vmatpush3.bf16.msra.mxu1 %v1102_v5  ;;  %v1116_v25 = vld [vmem:[%s1337_s1 + $0x30] sm:$0xff]   ;;  %v1119_v35 = vld [vmem:[%s1337_s1 + $0x38] sm:$0xff]   ;;  %v44_v43 = vadd.s32 80, %v1185_v17  ;;  %v45_v44 = vadd.s32 88, %v1185_v17  ;;  %v46_v45 = vadd.s32 96, %v1185_v17  ;;  %v47_v46 = vadd.s32 104, %v1185_v17 }
   0xa   :  { %1068 = vmatprep.subr.bf16.mxu1 %v1105_v8  ;;  %vm81_vm0 = vcmp.eq.s32.totalorder %v1185_v17, %v1212_v29  ;;  %vm84_vm1 = vcmp.eq.s32.totalorder %v35_v26, %v1212_v29  ;;  %vm80_vm3 = vcmp.eq.s32.totalorder %v1185_v17, %v1214_v30  ;;  %vm83_vm4 = vcmp.eq.s32.totalorder %v35_v26, %v1214_v30 }
   0xb   :  { %989 = vmatpush3.bf16.msra.mxu0 %v1104_v7  ;;  %vm857_vm2 = vmpackc.low %vm84_vm1, %vm81_vm0  ;;  %vm82_vm5 = vcmp.eq.s32.totalorder %v1185_v17, %v1216_v31  ;;  %vm85_vm6 = vcmp.eq.s32.totalorder %v35_v26, %v1216_v31  ;;  %vm87_vm7 = vcmp.eq.s32.totalorder %v36_v33, %v1212_v29  ;;  %vm90_vm8 = vcmp.eq.s32.totalorder %v37_v34, %v1212_v29 }
   0xc   :  { %990 = vmatprep.subr.bf16.mxu0 %v1106_v9  ;;  %858 = vmatprep.mubr.msk.bf16.mxu0 %vm857_vm2, %v1121_v36  ;;  %vm889_vm9 = vmpackc.low %vm85_vm6, %vm82_vm5  ;;  %vm88_vm10 = vcmp.eq.s32.totalorder %v36_v33, %v1216_v31  ;;  %vm91_vm11 = vcmp.eq.s32.totalorder %v37_v34, %v1216_v31  ;;  %vm94_vm15 = vcmp.eq.s32.totalorder %v38_v37, %v1216_v31  ;;  %v48_v47 = vadd.s32 112, %v1185_v17 }
   0xd   :  { %1069 = vmatpush3.bf16.msra.mxu1 %v1105_v8  ;;  %vm859_vm12 = vmpackc.low %vm83_vm4, %vm80_vm3  ;;  %1080 = vmatprep.mubr.msk.bf16.mxu1 %vm889_vm9, %v1121_v36  ;;  %vm97_vm0 = vcmp.eq.s32.totalorder %v39_v38, %v1216_v31  ;;  %vm86_vm1 = vcmp.eq.s32.totalorder %v36_v33, %v1214_v30  ;;  %vm89_vm2 = vcmp.eq.s32.totalorder %v37_v34, %v1214_v30  ;;  %v49_v48 = vadd.s32 120, %v1185_v17 }
   0xe   :  { %1070 = vmatprep.subr.bf16.mxu1 %v1108_v11  ;;  %vm861_vm13 = vmpackc.low %vm90_vm8, %vm87_vm7  ;;  %vm93_vm4 = vcmp.eq.s32.totalorder %v38_v37, %v1212_v29  ;;  %vm96_vm5 = vcmp.eq.s32.totalorder %v39_v38, %v1212_v29  ;;  %vm100_vm6 = vcmp.eq.s32.totalorder %v40_v39, %v1216_v31  ;;  %vm103_vm7 = vcmp.eq.s32.totalorder %v41_v40, %v1216_v31 }
   0xf   :  { %991 = vmatpush3.bf16.msra.mxu0 %v1107_v10  ;;  %vm891_vm14 = vmpackc.low %vm91_vm11, %vm88_vm10  ;;  %vm106_vm9 = vcmp.eq.s32.totalorder %v42_v41, %v1216_v31  ;;  %vm109_vm10 = vcmp.eq.s32.totalorder %v43_v42, %v1216_v31 }
  0x10   :  { %992 = vmatprep.subr.bf16.mxu0 %v1109_v12  ;;  %vm893_vm3 = vmpackc.low %vm97_vm0, %vm94_vm15  ;;  %vm95_vm15 = vcmp.eq.s32.totalorder %v39_v38, %v1214_v30  ;;  %vm99_vm0 = vcmp.eq.s32.totalorder %v40_v39, %v1212_v29 }
  0x11   :  { %1071 = vmatpush3.bf16.msra.mxu1 %v1108_v11  ;;  %vm863_vm8 = vmpackc.low %vm89_vm2, %vm86_vm1  ;;  %vm102_vm1 = vcmp.eq.s32.totalorder %v41_v40, %v1212_v29  ;;  %vm112_vm2 = vcmp.eq.s32.totalorder %v44_v43, %v1216_v31 }
  0x12   :  { %1072 = vmatprep.subr.bf16.mxu1 %v1111_v14  ;;  %vm865_vm11 = vmpackc.low %vm96_vm5, %vm93_vm4  ;;  %vm118_vm5 = vcmp.eq.s32.totalorder %v46_v45, %v1216_v31 }
  0x13   :  { %993 = vmatpush3.bf16.msra.mxu0 %v1110_v15 }
  0x14   :  { %994 = vmatprep.subr.bf16.mxu0 %v1112_v16 }
  0x15   :  { %1073 = vmatpush3.bf16.msra.mxu1 %v1111_v14 }
  0x16   :  { %1074 = vmatprep.subr.bf16.mxu1 %v1114_v18 }
  0x17   :  { %995 = vmatpush3.bf16.msra.mxu0 %v1113_v19 }
  0x18   :  { %996 = vmatprep.subr.bf16.mxu0 %v1115_v20 }
  0x19   :  { %1075 = vmatpush3.bf16.msra.mxu1 %v1114_v18 }
  0x1a   :  { %1076 = vmatprep.subr.bf16.mxu1 %v1117_v24 }
  0x1b   :  { %997 = vmatpush3.bf16.msra.mxu0 %v1116_v25 }
  0x1c   :  { %998 = vmatprep.subr.bf16.mxu0 %v1118_v27 }
  0x1d   :  { %1077 = vmatpush3.bf16.msra.mxu1 %v1117_v24 }
  0x1e   :  { %1078 = vmatprep.subr.bf16.mxu1 %v1120_v32 }
  0x1f   :  { %999 = vmatpush3.bf16.msra.mxu0 %v1119_v35 }
  0x21   :  { %1079 = vmatpush3.bf16.msra.mxu1 %v1120_v32 }
  0x22   :  { %860 = vmatmul.mubr.msk.bf16.vlgmr.msra.gmra.mrb[0].mxu0 %vm859_vm12, %v1121_v36  ;;  %vm895_vm12 = vmpackc.low %vm103_vm7, %vm100_vm6  ;;  %vm121_vm6 = vcmp.eq.s32.totalorder %v47_v46, %v1216_v31 }
  0x23   :  { %862 = vmatprep.mubr.msk.bf16.mxu0 %vm861_vm13, %v1121_v36  ;;  %vm897_vm13 = vmpackc.low %vm109_vm10, %vm106_vm9  ;;  %vm98_vm10 = vcmp.eq.s32.totalorder %v40_v39, %v1214_v30 }
  0x24   :  { %1081 = vmatmul.mubr.msk.bf16.vlgmr.msra.gmra.mrb[0].mxu1 %vm891_vm14, %v1121_v36  ;;  %vm92_vm14 = vcmp.eq.s32.totalorder %v38_v37, %v1214_v30  ;;  %vm869_vm7 = vmpackc.low %vm102_vm1, %vm99_vm0 }
  0x25   :  { %1084 = vmatprep.mubr.msk.bf16.mxu1 %vm893_vm3, %v1121_v36  ;;  %vm115_vm3 = vcmp.eq.s32.totalorder %v45_v44, %v1216_v31  ;;  %vm867_vm4 = vmpackc.low %vm95_vm15, %vm92_vm14  ;;  %vm124_vm14 = vcmp.eq.s32.totalorder %v48_v47, %v1216_v31  ;;  %vm127_vm15 = vcmp.eq.s32.totalorder %v49_v48, %v1216_v31 }
  0x26   :  { %vm901_vm9 = vmpackc.low %vm121_vm6, %vm118_vm5  ;;  %vm111_vm5 = vcmp.eq.s32.totalorder %v44_v43, %v1212_v29  ;;  %vm114_vm6 = vcmp.eq.s32.totalorder %v45_v44, %v1212_v29 }
  0x2a   :  { %864 = vmatmul.mubr.msk.bf16.gmra.mrb[4].mxu0 %vm863_vm8, %v1121_v36  ;;  %vm899_vm8 = vmpackc.low %vm115_vm3, %vm112_vm2  ;;  %vm104_vm3 = vcmp.eq.s32.totalorder %v42_v41, %v1214_v30 }
  0x2b   :  { %866 = vmatprep.mubr.msk.bf16.mxu0 %vm865_vm11, %v1121_v36  ;;  %vm101_vm11 = vcmp.eq.s32.totalorder %v41_v40, %v1214_v30  ;;  %vm903_vm2 = vmpackc.low %vm127_vm15, %vm124_vm14  ;;  %vm116_vm15 = vcmp.eq.s32.totalorder %v46_v45, %v1214_v30 }
  0x2c   :  { %1085 = vmatmul.mubr.msk.bf16.gmra.mrb[4].mxu1 %vm895_vm12, %v1121_v36  ;;  %vm105_vm12 = vcmp.eq.s32.totalorder %v42_v41, %v1212_v29  ;;  %vm871_vm0 = vmpackc.low %vm101_vm11, %vm98_vm10  ;;  %vm113_vm10 = vcmp.eq.s32.totalorder %v45_v44, %v1214_v30  ;;  %vm117_vm11 = vcmp.eq.s32.totalorder %v46_v45, %v1212_v29 }
  0x2d   :  { %1088 = vmatprep.mubr.msk.bf16.mxu1 %vm897_vm13, %v1121_v36  ;;  %vm108_vm13 = vcmp.eq.s32.totalorder %v43_v42, %v1212_v29 }
  0x2e   :  { %vm873_vm1 = vmpackc.low %vm108_vm13, %vm105_vm12  ;;  %vm120_vm12 = vcmp.eq.s32.totalorder %v47_v46, %v1212_v29 }
  0x2f   :  { %vm881_vm14 = vmpackc.low %vm120_vm12, %vm117_vm11 }
  0x32   :  { %868 = vmatmul.mubr.msk.bf16.gmra.mrb[8].mxu0 %vm867_vm4, %v1121_v36  ;;  %vm107_vm4 = vcmp.eq.s32.totalorder %v43_v42, %v1214_v30 }
  0x33   :  { %870 = vmatprep.mubr.msk.bf16.mxu0 %vm869_vm7, %v1121_v36  ;;  %vm875_vm7 = vmpackc.low %vm107_vm4, %vm104_vm3 }
  0x34   :  { %1089 = vmatmul.mubr.msk.bf16.gmra.mrb[8].mxu1 %vm899_vm8, %v1121_v36  ;;  %vm877_vm8 = vmpackc.low %vm114_vm6, %vm111_vm5  ;;  %vm122_vm5 = vcmp.eq.s32.totalorder %v48_v47, %v1214_v30  ;;  %vm125_vm6 = vcmp.eq.s32.totalorder %v49_v48, %v1214_v30 }
  0x35   :  { %1092 = vmatprep.mubr.msk.bf16.mxu1 %vm901_vm9, %v1121_v36  ;;  %vm110_vm9 = vcmp.eq.s32.totalorder %v44_v43, %v1214_v30 }
  0x36   :  { %vm879_vm13 = vmpackc.low %vm113_vm10, %vm110_vm9 }
  0x3a   :  { %872 = vmatmul.mubr.msk.bf16.gmra.mrb[12].mxu0 %vm871_vm0, %v1121_v36  ;;  %vm119_vm0 = vcmp.eq.s32.totalorder %v47_v46, %v1214_v30 }
  0x3b   :  { %874 = vmatprep.mubr.msk.bf16.mxu0 %vm873_vm1, %v1121_v36  ;;  %vm123_vm1 = vcmp.eq.s32.totalorder %v48_v47, %v1212_v29  ;;  %vm883_vm3 = vmpackc.low %vm119_vm0, %vm116_vm15 }
  0x3c   :  { %1093 = vmatmul.mubr.msk.bf16.gmra.mrb[12].mxu1 %vm903_vm2, %v1121_v36  ;;  %vm126_vm2 = vcmp.eq.s32.totalorder %v49_v48, %v1212_v29 }
  0x3d   :  { %vm885_vm4 = vmpackc.low %vm126_vm2, %vm123_vm1 }
  0x42   :  { %876 = vmatmul.mubr.msk.bf16.gmra.mrb[16].mxu0 %vm875_vm7, %v1121_v36  ;;  %vm887_vm7 = vmpackc.low %vm125_vm6, %vm122_vm5 }
  0x43   :  { %878 = vmatprep.mubr.msk.bf16.mxu0 %vm877_vm8, %v1121_v36 }
  0x4a   :  { %880 = vmatmul.mubr.msk.bf16.gmra.mrb[20].mxu0 %vm879_vm13, %v1121_v36 }
  0x4b   :  { %882 = vmatprep.mubr.msk.bf16.mxu0 %vm881_vm14, %v1121_v36 }
  0x52   :  { %884 = vmatmul.mubr.msk.bf16.gmra.mrb[24].mxu0 %vm883_vm3, %v1121_v36 }
  0x53   :  { %886 = vmatprep.mubr.msk.bf16.mxu0 %vm885_vm4, %v1121_v36 }
  0x5a   :  { %888 = vmatmul.mubr.msk.bf16.gmra.mrb[28].mxu0 %vm887_vm7, %v1121_v36 }
  0xf5   :  { %v1000_v49 = vpop.f32.mrb[0].mxu0 }
  0xf6   :  { %v1001_v50 = vpop.f32.mrb[1].mxu0 }
  0xf7   :  { %v1002_v51 = vadd.f32 %v1001_v50, %v1000_v49  ;;  %v1003_v52 = vpop.f32.mrb[2].mxu0  ;;  %v1082_v53 = vpop.f32.mrb[0].mxu1 }
  0xf8   :  { %v1004_v54 = vpop.f32.mrb[3].mxu0  ;;  %v587_v55 = vpop.f32.mrb[1].mxu1 }
  0xf9   :  { %v1005_v56 = vadd.f32 %v1004_v54, %v1003_v52  ;;  %v588_v57 = vadd.f32 %v1002_v51, %v587_v55  ;;  %v1083_v58 = vpop.f32.mrb[2].mxu1 }
  0xfa   :  { %v590_v59 = vpop.f32.mrb[3].mxu1 }
  0xfb   :  { %v591_v60 = vadd.f32 %v1005_v56, %v590_v59 }
  0xfd   :  { %v940_v61 = vpack.c.bf16 %v591_v60, %v588_v57  ;;  %v1006_v62 = vpop.f32.mrb[4].mxu0 }
  0xfe   :  { %v1007_v63 = vpop.f32.mrb[5].mxu0 }
  0xff   :  { %941 = vst [vmem:[%s1339_s2] sm:$0xff] %v940_v61   ;;  %v1008_v0 = vadd.f32 %v1007_v63, %v1006_v62  ;;  %v1009_v1 = vpop.f32.mrb[6].mxu0  ;;  %v1086_v2 = vpop.f32.mrb[4].mxu1 }
 0x100   :  { %v1010_v3 = vpop.f32.mrb[7].mxu0  ;;  %v603_v4 = vpop.f32.mrb[5].mxu1 }
 0x101   :  { %v596_v5 = vadd.f32 %v1082_v53, %v1008_v0  ;;  %v1011_v6 = vadd.f32 %v1010_v3, %v1009_v1  ;;  %v1087_v7 = vpop.f32.mrb[6].mxu1 }
 0x102   :  { %v606_v8 = vpop.f32.mrb[7].mxu1 }
 0x103   :  { %v599_v9 = vadd.f32 %v1083_v58, %v1011_v6 }
 0x105   :  { %v945_v10 = vpack.c.bf16 %v599_v9, %v596_v5  ;;  %v1012_v11 = vpop.f32.mrb[8].mxu0 }
 0x106   :  { %v1013_v12 = vpop.f32.mrb[9].mxu0 }
 0x107   :  { %977 = vst [vmem:[%s1339_s2 + $0x8] sm:$0xff] %v945_v10   ;;  %v1014_v13 = vadd.f32 %v1013_v12, %v1012_v11  ;;  %v1015_v14 = vpop.f32.mrb[10].mxu0  ;;  %v1090_v15 = vpop.f32.mrb[8].mxu1 }
 0x108   :  { %v1016_v16 = vpop.f32.mrb[11].mxu0  ;;  %v619_v17 = vpop.f32.mrb[9].mxu1 }
 0x109   :  { %v1017_v18 = vadd.f32 %v1016_v16, %v1015_v14  ;;  %v604_v19 = vadd.f32 %v1014_v13, %v603_v4  ;;  %v1091_v20 = vpop.f32.mrb[10].mxu1 }
 0x10a   :  { %v622_v21 = vpop.f32.mrb[11].mxu1 }
 0x10b   :  { %v607_v22 = vadd.f32 %v1017_v18, %v606_v8 }
 0x10d   :  { %v950_v23 = vpack.c.bf16 %v607_v22, %v604_v19  ;;  %v1018_v24 = vpop.f32.mrb[12].mxu0 }
 0x10e   :  { %v1019_v25 = vpop.f32.mrb[13].mxu0 }
 0x10f   :  { %978 = vst [vmem:[%s1339_s2 + $0x10] sm:$0xff] %v950_v23   ;;  %v1020_v26 = vadd.f32 %v1019_v25, %v1018_v24  ;;  %v1021_v27 = vpop.f32.mrb[14].mxu0  ;;  %v1094_v28 = vpop.f32.mrb[12].mxu1 }
 0x110   :  { %v1022_v29 = vpop.f32.mrb[15].mxu0  ;;  %v635_v30 = vpop.f32.mrb[13].mxu1 }
 0x111   :  { %v612_v31 = vadd.f32 %v1086_v2, %v1020_v26  ;;  %v1023_v32 = vadd.f32 %v1022_v29, %v1021_v27  ;;  %v1095_v33 = vpop.f32.mrb[14].mxu1 }
 0x112   :  { %v638_v34 = vpop.f32.mrb[15].mxu1 }
 0x113   :  { %v615_v35 = vadd.f32 %v1087_v7, %v1023_v32 }
 0x115   :  { %v955_v36 = vpack.c.bf16 %v615_v35, %v612_v31  ;;  %v1024_v37 = vpop.f32.mrb[16].mxu0 }
 0x116   :  { %v1025_v38 = vpop.f32.mrb[17].mxu0 }
 0x117   :  { %979 = vst [vmem:[%s1339_s2 + $0x18] sm:$0xff] %v955_v36   ;;  %v1026_v39 = vadd.f32 %v1025_v38, %v1024_v37  ;;  %v1027_v40 = vpop.f32.mrb[18].mxu0 }
 0x118   :  { %v1028_v41 = vpop.f32.mrb[19].mxu0 }
 0x119   :  { %v1029_v42 = vadd.f32 %v1028_v41, %v1027_v40  ;;  %v620_v43 = vadd.f32 %v1026_v39, %v619_v17 }
 0x11b   :  { %v623_v44 = vadd.f32 %v1029_v42, %v622_v21 }
 0x11d   :  { %v960_v45 = vpack.c.bf16 %v623_v44, %v620_v43  ;;  %v1030_v46 = vpop.f32.mrb[20].mxu0 }
 0x11e   :  { %v1031_v47 = vpop.f32.mrb[21].mxu0 }
 0x11f   :  { %980 = vst [vmem:[%s1339_s2 + $0x20] sm:$0xff] %v960_v45   ;;  %v1032_v48 = vadd.f32 %v1031_v47, %v1030_v46  ;;  %v1033_v49 = vpop.f32.mrb[22].mxu0 }
 0x120   :  { %v1034_v50 = vpop.f32.mrb[23].mxu0 }
 0x121   :  { %v628_v51 = vadd.f32 %v1090_v15, %v1032_v48  ;;  %v1035_v52 = vadd.f32 %v1034_v50, %v1033_v49 }
 0x123   :  { %v631_v53 = vadd.f32 %v1091_v20, %v1035_v52 }
 0x125   :  { %v965_v54 = vpack.c.bf16 %v631_v53, %v628_v51  ;;  %v1036_v55 = vpop.f32.mrb[24].mxu0 }
 0x126   :  { %v1037_v56 = vpop.f32.mrb[25].mxu0 }
 0x127   :  { %981 = vst [vmem:[%s1339_s2 + $0x28] sm:$0xff] %v965_v54   ;;  %v1038_v57 = vadd.f32 %v1037_v56, %v1036_v55  ;;  %v1039_v58 = vpop.f32.mrb[26].mxu0 }
 0x128   :  { %v1040_v59 = vpop.f32.mrb[27].mxu0 }
 0x129   :  { %v1041_v60 = vadd.f32 %v1040_v59, %v1039_v58  ;;  %v636_v61 = vadd.f32 %v1038_v57, %v635_v30 }
 0x12b   :  { %v639_v62 = vadd.f32 %v1041_v60, %v638_v34 }
 0x12d   :  { %v970_v63 = vpack.c.bf16 %v639_v62, %v636_v61  ;;  %v1042_v0 = vpop.f32.mrb[28].mxu0 }
 0x12e   :  { %v1043_v1 = vpop.f32.mrb[29].mxu0 }
 0x12f   :  { %982 = vst [vmem:[%s1339_s2 + $0x30] sm:$0xff] %v970_v63   ;;  %v1044_v2 = vadd.f32 %v1043_v1, %v1042_v0  ;;  %v1045_v3 = vpop.f32.mrb[30].mxu0 }
 0x130   :  { %v1046_v4 = vpop.f32.mrb[31].mxu0 }
 0x131   :  { %v644_v5 = vadd.f32 %v1094_v28, %v1044_v2  ;;  %v1047_v6 = vadd.f32 %v1046_v4, %v1045_v3 }
 0x133   :  { %v647_v7 = vadd.f32 %v1095_v33, %v1047_v6 }
 0x135   :  { %v975_v8 = vpack.c.bf16 %v647_v7, %v644_v5 }
 0x137   :  { %983 = vst [vmem:[%s1339_s2 + $0x38] sm:$0xff] %v975_v8  }

// kernel: graphnet_block.5
= control target key start
LH: loop header
LB: loop body
LE: loop exit
PB: predicated region body
PF: predicated region fallthrough
CT: control target
= control target key end

     0   :  { %s2030_s3 = inlined_call_operand.vmem [shape: bf16[128,128], index: 3, kind: input, shape index: {}]   ;;  %s2031_s1 = inlined_call_operand.vmem [shape: bf16[128,128], index: 1, kind: input, shape index: {}]   ;;  %s2032_s2 = inlined_call_operand.vmem [shape: bf16[128,128], index: 2, kind: input, shape index: {}]   ;;  %s2033_s5 = inlined_call_operand.vmem [shape: bf16[128,128], index: 5, kind: input, shape index: {}]   ;;  %s2034_s0 = inlined_call_operand.vmem [shape: f32[128,128], index: 0, kind: input, shape index: {}]   ;;  %s2035_s7 = inlined_call_operand.vmem [shape: bf16[128,128], index: 7, kind: input, shape index: {}]   ;;  %s2036_s4 = inlined_call_operand.vmem [shape: f32[1,128], index: 4, kind: input, shape index: {}]   ;;  %s2037_s6 = inlined_call_operand.vmem [shape: f32[1,128], index: 6, kind: input, shape index: {}]   ;;  %s2038_s8 = inlined_call_operand.vmem [shape: f32[1,128], index: 8, kind: input, shape index: {}]   ;;  %s2039_s9 = inlined_call_operand.vmem [shape: f32[1,128], index: 9, kind: input, shape index: {}]   ;;  %s2040_s10 = inlined_call_operand.vmem [shape: f32[1,128], index: 10, kind: input, shape index: {}]   ;;  %s2041_s11 = inlined_call_operand.vmem [shape: f32[128,128], index: 11, kind: output, shape index: {}]  }
   0x1   :  { %v1390_v0 = vld [vmem:[%s2030_s3] sm:$0xff]   ;;  %v1391_v1 = vld [vmem:[%s2030_s3 + $0x8] sm:$0xff]   ;;  %v1392_v2 = vld [vmem:[%s2030_s3 + $0x10] sm:$0xff]  }
   0x2   :  { %1245 = vmatprep.subr.bf16.mxu0 %v1390_v0  ;;  %v1393_v3 = vld [vmem:[%s2030_s3 + $0x18] sm:$0xff]   ;;  %v1398_v4 = vld [vmem:[%s2031_s1] sm:$0xff]   ;;  %v1395_v6 = vld [vmem:[%s2030_s3 + $0x28] sm:$0xff]  }
   0x3   :  { %1246 = vmatpush3.bf16.msra.mxu0 %v1390_v0  ;;  %1261 = vmatprep.mubr.bf16.mxu0 %v1398_v4  ;;  %v1394_v5 = vld [vmem:[%s2030_s3 + $0x20] sm:$0xff]   ;;  %v1396_v7 = vld [vmem:[%s2030_s3 + $0x30] sm:$0xff]   ;;  %v1397_v8 = vld [vmem:[%s2030_s3 + $0x38] sm:$0xff]  }
   0x4   :  { %1247 = vmatprep.subr.bf16.mxu0 %v1391_v1  ;;  %v1399_v9 = vld [vmem:[%s2031_s1 + $0x8] sm:$0xff]   ;;  %v1400_v10 = vld [vmem:[%s2032_s2] sm:$0xff]   ;;  %v1402_v11 = vld [vmem:[%s2031_s1 + $0x10] sm:$0xff]  }
   0x5   :  { %v1414_v12 = vld [vmem:[%s2033_s5] sm:$0xff]   ;;  %v1415_v13 = vld [vmem:[%s2033_s5 + $0x8] sm:$0xff]   ;;  %v1416_v15 = vld [vmem:[%s2033_s5 + $0x10] sm:$0xff]  }
   0x6   :  { %v1401_v14 = vld [vmem:[%s2032_s2 + $0x8] sm:$0xff]   ;;  %1309 = vmatprep.subr.bf16.mxu1 %v1414_v12  ;;  %v1404_v16 = vld [vmem:[%s2032_s2 + $0x10] sm:$0xff]   ;;  %v1403_v17 = vld [vmem:[%s2031_s1 + $0x18] sm:$0xff]  }
   0x7   :  { %1248 = vmatpush3.bf16.msra.mxu0 %v1391_v1  ;;  %1310 = vmatpush3.bf16.msra.mxu1 %v1414_v12  ;;  %v1417_v18 = vld [vmem:[%s2033_s5 + $0x18] sm:$0xff]   ;;  %v1406_v19 = vld [vmem:[%s2031_s1 + $0x20] sm:$0xff]   ;;  %v1407_v23 = vld [vmem:[%s2031_s1 + $0x28] sm:$0xff]  }
   0x8   :  { %1249 = vmatprep.subr.bf16.mxu0 %v1392_v2  ;;  %1311 = vmatprep.subr.bf16.mxu1 %v1415_v13  ;;  %v1405_v20 = vld [vmem:[%s2032_s2 + $0x18] sm:$0xff]   ;;  %v1418_v21 = vld [vmem:[%s2033_s5 + $0x20] sm:$0xff]   ;;  %v1419_v24 = vld [vmem:[%s2033_s5 + $0x28] sm:$0xff]  }
   0x9   :  { %v1408_v22 = vld [vmem:[%s2032_s2 + $0x20] sm:$0xff]   ;;  %v1410_v25 = vld [vmem:[%s2031_s1 + $0x30] sm:$0xff]   ;;  %v1409_v26 = vld [vmem:[%s2032_s2 + $0x28] sm:$0xff]  }
   0xa   :  { %v1412_v27 = vld [vmem:[%s2032_s2 + $0x30] sm:$0xff]   ;;  %v1610_v28 = vld [vmem:[%s2034_s0] sm:$0xff]  ;;  %v1615_v29 = vld [vmem:[%s2034_s0 + $0x8] sm:$0xff] }
   0xb   :  { %1250 = vmatpush3.bf16.msra.mxu0 %v1392_v2  ;;  %1312 = vmatpush3.bf16.msra.mxu1 %v1415_v13  ;;  %v1411_v30 = vld [vmem:[%s2031_s1 + $0x38] sm:$0xff]   ;;  %v55_v31 = vpack.c.bf16 %v1615_v29, %v1610_v28  ;;  %v1628_v33 = vld [vmem:[%s2034_s0 + $0x10] sm:$0xff]  ;;  %v1638_v35 = vld [vmem:[%s2034_s0 + $0x20] sm:$0xff] }
   0xc   :  { %1251 = vmatprep.subr.bf16.mxu0 %v1393_v3  ;;  %1313 = vmatprep.subr.bf16.mxu1 %v1416_v15  ;;  %v1413_v32 = vld [vmem:[%s2032_s2 + $0x38] sm:$0xff]   ;;  %v1643_v36 = vld [vmem:[%s2034_s0 + $0x28] sm:$0xff]  ;;  %v1652_v39 = vld [vmem:[%s2034_s0 + $0x30] sm:$0xff] }
   0xd   :  { %v1633_v34 = vld [vmem:[%s2034_s0 + $0x18] sm:$0xff]  ;;  %v57_v38 = vpack.c.bf16 %v1643_v36, %v1638_v35  ;;  %v1662_v41 = vld [vmem:[%s2034_s0 + $0x40] sm:$0xff]  ;;  %v1667_v42 = vld [vmem:[%s2034_s0 + $0x48] sm:$0xff] }
   0xe   :  { %v56_v37 = vpack.c.bf16 %v1633_v34, %v1628_v33  ;;  %v1657_v40 = vld [vmem:[%s2034_s0 + $0x38] sm:$0xff]  ;;  %v59_v44 = vpack.c.bf16 %v1667_v42, %v1662_v41  ;;  %v1676_v45 = vld [vmem:[%s2034_s0 + $0x50] sm:$0xff]  ;;  %v1686_v47 = vld [vmem:[%s2034_s0 + $0x60] sm:$0xff] }
   0xf   :  { %1252 = vmatpush3.bf16.msra.mxu0 %v1393_v3  ;;  %1314 = vmatpush3.bf16.msra.mxu1 %v1416_v15  ;;  %v58_v43 = vpack.c.bf16 %v1657_v40, %v1652_v39  ;;  %v1681_v46 = vld [vmem:[%s2034_s0 + $0x58] sm:$0xff]  ;;  %v1691_v48 = vld [vmem:[%s2034_s0 + $0x68] sm:$0xff]  ;;  %v1700_v51 = vld [vmem:[%s2034_s0 + $0x70] sm:$0xff] }
  0x10   :  { %1253 = vmatprep.subr.bf16.mxu0 %v1394_v5  ;;  %1315 = vmatprep.subr.bf16.mxu1 %v1417_v18  ;;  %v60_v49 = vpack.c.bf16 %v1681_v46, %v1676_v45  ;;  %v61_v50 = vpack.c.bf16 %v1691_v48, %v1686_v47  ;;  %v1705_v52 = vld [vmem:[%s2034_s0 + $0x78] sm:$0xff]  ;;  %v1420_v54 = vld [vmem:[%s2033_s5 + $0x30] sm:$0xff]   ;;  %v1422_v56 = vld [vmem:[%s2035_s7] sm:$0xff]  }
  0x11   :  { %v62_v53 = vpack.c.bf16 %v1705_v52, %v1700_v51  ;;  %v1421_v55 = vld [vmem:[%s2033_s5 + $0x38] sm:$0xff]   ;;  %v1721_v57 = vld [vmem:[%s2036_s4] ss:$0 sm:$0xff] }
  0x13   :  { %1254 = vmatpush3.bf16.msra.mxu0 %v1394_v5  ;;  %1316 = vmatpush3.bf16.msra.mxu1 %v1417_v18 }
  0x14   :  { %1255 = vmatprep.subr.bf16.mxu0 %v1395_v6  ;;  %1317 = vmatprep.subr.bf16.mxu1 %v1418_v21 }
  0x17   :  { %1256 = vmatpush3.bf16.msra.mxu0 %v1395_v6  ;;  %1318 = vmatpush3.bf16.msra.mxu1 %v1418_v21 }
  0x18   :  { %1257 = vmatprep.subr.bf16.mxu0 %v1396_v7  ;;  %1319 = vmatprep.subr.bf16.mxu1 %v1419_v24 }
  0x1b   :  { %1258 = vmatpush3.bf16.msra.mxu0 %v1396_v7  ;;  %1320 = vmatpush3.bf16.msra.mxu1 %v1419_v24 }
  0x1c   :  { %1259 = vmatprep.subr.bf16.mxu0 %v1397_v8  ;;  %1321 = vmatprep.subr.bf16.mxu1 %v1420_v54 }
  0x1f   :  { %1260 = vmatpush3.bf16.msra.mxu0 %v1397_v8  ;;  %1322 = vmatpush3.bf16.msra.mxu1 %v1420_v54 }
  0x20   :  { %1277 = vmatprep.subr.bf16.mxu0 %v1400_v10  ;;  %1323 = vmatprep.subr.bf16.mxu1 %v1421_v55 }
  0x22   :  { %1262 = vmatmul.mubr.bf16.vlgmr.msra.gmra.mrb[0].mxu0 %v1399_v9 }
  0x23   :  { %1278 = vmatpush3.bf16.msra.mxu0 %v1400_v10  ;;  %1265 = vmatprep.mubr.bf16.mxu0 %v1402_v11  ;;  %v1423_v11 = vld [vmem:[%s2035_s7 + $0x8] sm:$0xff]  }
  0x24   :  { %1279 = vmatprep.subr.bf16.mxu0 %v1401_v14  ;;  %1324 = vmatpush3.bf16.msra.mxu1 %v1421_v55 }
  0x25   :  { %1341 = vmatprep.subr.bf16.mxu1 %v1422_v56 }
  0x27   :  { %1280 = vmatpush3.bf16.msra.mxu0 %v1401_v14 }
  0x28   :  { %1281 = vmatprep.subr.bf16.mxu0 %v1404_v16 }
  0x2a   :  { %1266 = vmatmul.mubr.bf16.gmra.mrb[4].mxu0 %v1403_v17 }
  0x2b   :  { %1282 = vmatpush3.bf16.msra.mxu0 %v1404_v16  ;;  %1269 = vmatprep.mubr.bf16.mxu0 %v1406_v19  ;;  %v1424_v19 = vld [vmem:[%s2035_s7 + $0x10] sm:$0xff]  }
  0x2c   :  { %1283 = vmatprep.subr.bf16.mxu0 %v1405_v20 }
  0x2f   :  { %1284 = vmatpush3.bf16.msra.mxu0 %v1405_v20 }
  0x30   :  { %1285 = vmatprep.subr.bf16.mxu0 %v1408_v22 }
  0x32   :  { %1270 = vmatmul.mubr.bf16.gmra.mrb[8].mxu0 %v1407_v23 }
  0x33   :  { %1286 = vmatpush3.bf16.msra.mxu0 %v1408_v22  ;;  %1273 = vmatprep.mubr.bf16.mxu0 %v1410_v25 }
  0x34   :  { %1287 = vmatprep.subr.bf16.mxu0 %v1409_v26 }
  0x37   :  { %1288 = vmatpush3.bf16.msra.mxu0 %v1409_v26 }
  0x38   :  { %1289 = vmatprep.subr.bf16.mxu0 %v1412_v27 }
  0x3a   :  { %1274 = vmatmul.mubr.bf16.gmra.mrb[12].mxu0 %v1411_v30 }
  0x3b   :  { %1290 = vmatpush3.bf16.msra.mxu0 %v1412_v27  ;;  %1293 = vmatprep.mubr.bf16.mxu0 %v55_v31  ;;  %v1425_v27 = vld [vmem:[%s2035_s7 + $0x18] sm:$0xff]  }
  0x3c   :  { %1291 = vmatprep.subr.bf16.mxu0 %v1413_v32 }
  0x3f   :  { %1292 = vmatpush3.bf16.msra.mxu0 %v1413_v32 }
  0x42   :  { %1294 = vmatmul.mubr.bf16.vlgmr.msra.gmra.mrb[0].mxu0 %v56_v37 }
  0x43   :  { %1297 = vmatprep.mubr.bf16.mxu0 %v57_v38 }
  0x4a   :  { %1298 = vmatmul.mubr.bf16.gmra.mrb[4].mxu0 %v58_v43 }
  0x4b   :  { %1301 = vmatprep.mubr.bf16.mxu0 %v59_v44 }
  0x52   :  { %1302 = vmatmul.mubr.bf16.gmra.mrb[8].mxu0 %v60_v49  ;;  %v1426_v49 = vld [vmem:[%s2035_s7 + $0x20] sm:$0xff]  }
  0x53   :  { %1305 = vmatprep.mubr.bf16.mxu0 %v61_v50 }
  0x5a   :  { %1306 = vmatmul.mubr.bf16.gmra.mrb[12].mxu0 %v62_v53 }
 0x115   :  { %v1295_v58 = vpop.f32.mrb[0].mxu0 }
 0x116   :  { %v458_v59 = vadd.f32 %v1295_v58, %v1721_v57  ;;  %v386_v60 = vpop.f32.mrb[1].mxu0 }
 0x117   :  { %v456_v61 = vadd.f32 %v1721_v57, %v386_v60  ;;  %v1296_v62 = vpop.f32.mrb[2].mxu0  ;;  %v1427_v60 = vld [vmem:[%s2035_s7 + $0x28] sm:$0xff]  }
 0x118   :  { %v459_v63 = vadd.f32 %v1296_v62, %v1721_v57  ;;  %v389_v0 = vpop.f32.mrb[3].mxu0  ;;  %v474_v2 = vmax.f32 %v458_v59, 0.0 }
 0x119   :  { %v457_v1 = vadd.f32 %v1721_v57, %v389_v0  ;;  %v472_v4 = vmax.f32 %v456_v61, 0.0 }
 0x11a   :  { %v475_v3 = vmax.f32 %v459_v63, 0.0 }
 0x11b   :  { %v473_v5 = vmax.f32 %v457_v1, 0.0 }
 0x11c   :  { %v489_v6 = vpack.c.bf16 %v475_v3, %v474_v2 }
 0x11d   :  { %v1299_v7 = vpop.f32.mrb[4].mxu0  ;;  %v488_v8 = vpack.c.bf16 %v473_v5, %v472_v4 }
 0x11e   :  { %v462_v9 = vadd.f32 %v1299_v7, %v1721_v57  ;;  %v402_v10 = vpop.f32.mrb[5].mxu0 }
 0x11f   :  { %v460_v12 = vadd.f32 %v1721_v57, %v402_v10  ;;  %v1300_v13 = vpop.f32.mrb[6].mxu0  ;;  %1325 = vmatprep.mubr.bf16.mxu1 %v488_v8  ;;  %v1428_v8 = vld [vmem:[%s2035_s7 + $0x30] sm:$0xff]  }
 0x120   :  { %v463_v14 = vadd.f32 %v1300_v13, %v1721_v57  ;;  %v405_v15 = vpop.f32.mrb[7].mxu0  ;;  %1326 = vmatmul.mubr.bf16.vlgmr.msra.gmra.mrb[0].mxu1 %v489_v6  ;;  %v478_v17 = vmax.f32 %v462_v9, 0.0  ;;  %v1160_v9 = vld [vmem:[%s2037_s6] ss:$0 sm:$0xff] }
 0x121   :  { %v461_v16 = vadd.f32 %v1721_v57, %v405_v15  ;;  %1342 = vmatpush3.bf16.msra.mxu1 %v1422_v56  ;;  %v476_v20 = vmax.f32 %v460_v12, 0.0 }
 0x122   :  { %v479_v18 = vmax.f32 %v463_v14, 0.0  ;;  %1343 = vmatprep.subr.bf16.mxu1 %v1423_v11 }
 0x123   :  { %v477_v21 = vmax.f32 %v461_v16, 0.0 }
 0x124   :  { %v491_v22 = vpack.c.bf16 %v479_v18, %v478_v17 }
 0x125   :  { %v490_v23 = vpack.c.bf16 %v477_v21, %v476_v20  ;;  %v1303_v24 = vpop.f32.mrb[8].mxu0  ;;  %1344 = vmatpush3.bf16.msra.mxu1 %v1423_v11 }
 0x126   :  { %v466_v25 = vadd.f32 %v1303_v24, %v1721_v57  ;;  %v418_v26 = vpop.f32.mrb[9].mxu0  ;;  %1345 = vmatprep.subr.bf16.mxu1 %v1424_v19 }
 0x127   :  { %v464_v30 = vadd.f32 %v1721_v57, %v418_v26  ;;  %v1304_v31 = vpop.f32.mrb[10].mxu0  ;;  %1329 = vmatprep.mubr.bf16.mxu1 %v490_v23 }
 0x128   :  { %v467_v32 = vadd.f32 %v1304_v31, %v1721_v57  ;;  %v421_v37 = vpop.f32.mrb[11].mxu0  ;;  %1330 = vmatmul.mubr.bf16.gmra.mrb[4].mxu1 %v491_v22  ;;  %v482_v43 = vmax.f32 %v466_v25, 0.0 }
 0x129   :  { %v465_v38 = vadd.f32 %v1721_v57, %v421_v37  ;;  %1346 = vmatpush3.bf16.msra.mxu1 %v1424_v19  ;;  %v480_v50 = vmax.f32 %v464_v30, 0.0 }
 0x12a   :  { %v483_v44 = vmax.f32 %v467_v32, 0.0  ;;  %1347 = vmatprep.subr.bf16.mxu1 %v1425_v27 }
 0x12b   :  { %v481_v53 = vmax.f32 %v465_v38, 0.0 }
 0x12c   :  { %v493_v54 = vpack.c.bf16 %v483_v44, %v482_v43 }
 0x12d   :  { %v492_v55 = vpack.c.bf16 %v481_v53, %v480_v50  ;;  %v1307_v56 = vpop.f32.mrb[12].mxu0  ;;  %1348 = vmatpush3.bf16.msra.mxu1 %v1425_v27 }
 0x12e   :  { %v470_v58 = vadd.f32 %v1307_v56, %v1721_v57  ;;  %v434_v59 = vpop.f32.mrb[13].mxu0  ;;  %1349 = vmatprep.subr.bf16.mxu1 %v1426_v49 }
 0x12f   :  { %v468_v61 = vadd.f32 %v1721_v57, %v434_v59  ;;  %v1308_v62 = vpop.f32.mrb[14].mxu0  ;;  %1333 = vmatprep.mubr.bf16.mxu1 %v492_v55 }
 0x130   :  { %v471_v63 = vadd.f32 %v1308_v62, %v1721_v57  ;;  %v437_v0 = vpop.f32.mrb[15].mxu0  ;;  %1334 = vmatmul.mubr.bf16.gmra.mrb[8].mxu1 %v493_v54  ;;  %v486_v2 = vmax.f32 %v470_v58, 0.0 }
 0x131   :  { %v469_v1 = vadd.f32 %v1721_v57, %v437_v0  ;;  %1350 = vmatpush3.bf16.msra.mxu1 %v1426_v49  ;;  %v484_v4 = vmax.f32 %v468_v61, 0.0  ;;  %v1429_v57 = vld [vmem:[%s2035_s7 + $0x38] sm:$0xff]  }
 0x132   :  { %v487_v3 = vmax.f32 %v471_v63, 0.0  ;;  %1351 = vmatprep.subr.bf16.mxu1 %v1427_v60 }
 0x133   :  { %v485_v5 = vmax.f32 %v469_v1, 0.0 }
 0x134   :  { %v495_v6 = vpack.c.bf16 %v487_v3, %v486_v2 }
 0x135   :  { %v494_v7 = vpack.c.bf16 %v485_v5, %v484_v4  ;;  %1352 = vmatpush3.bf16.msra.mxu1 %v1427_v60 }
 0x136   :  { %1353 = vmatprep.subr.bf16.mxu1 %v1428_v8 }
 0x137   :  { %1337 = vmatprep.mubr.bf16.mxu1 %v494_v7 }
 0x138   :  { %1338 = vmatmul.mubr.bf16.gmra.mrb[12].mxu1 %v495_v6 }
 0x139   :  { %1354 = vmatpush3.bf16.msra.mxu1 %v1428_v8 }
 0x13a   :  { %1355 = vmatprep.subr.bf16.mxu1 %v1429_v57 }
 0x13d   :  { %1356 = vmatpush3.bf16.msra.mxu1 %v1429_v57 }
 0x1f3   :  { %v1327_v10 = vpop.f32.mrb[0].mxu1 }
 0x1f4   :  { %v610_v11 = vadd.f32 %v1327_v10, %v1160_v9  ;;  %v601_v12 = vpop.f32.mrb[1].mxu1 }
 0x1f5   :  { %v602_v13 = vadd.f32 %v1160_v9, %v601_v12  ;;  %v1328_v14 = vpop.f32.mrb[2].mxu1 }
 0x1f6   :  { %v613_v15 = vadd.f32 %v1328_v14, %v1160_v9  ;;  %v604_v16 = vpop.f32.mrb[3].mxu1  ;;  %v666_v18 = vmax.f32 %v610_v11, 0.0 }
 0x1f7   :  { %v605_v17 = vadd.f32 %v1160_v9, %v604_v16  ;;  %v664_v20 = vmax.f32 %v602_v13, 0.0 }
 0x1f8   :  { %v667_v19 = vmax.f32 %v613_v15, 0.0 }
 0x1f9   :  { %v665_v21 = vmax.f32 %v605_v17, 0.0 }
 0x1fa   :  { %v681_v22 = vpack.c.bf16 %v667_v19, %v666_v18  ;;  %v1169_v19 = vld [vmem:[%s2038_s8] ss:$0 sm:$0xff] }
 0x1fb   :  { %v680_v23 = vpack.c.bf16 %v665_v21, %v664_v20  ;;  %v1331_v24 = vpop.f32.mrb[4].mxu1 }
 0x1fc   :  { %v626_v25 = vadd.f32 %v1331_v24, %v1160_v9  ;;  %v617_v26 = vpop.f32.mrb[5].mxu1 }
 0x1fd   :  { %v618_v27 = vadd.f32 %v1160_v9, %v617_v26  ;;  %v1332_v30 = vpop.f32.mrb[6].mxu1  ;;  %1357 = vmatprep.mubr.bf16.mxu1 %v680_v23 }
 0x1fe   :  { %v629_v31 = vadd.f32 %v1332_v30, %v1160_v9  ;;  %v620_v32 = vpop.f32.mrb[7].mxu1  ;;  %1358 = vmatmul.mubr.bf16.vlgmr.msra.gmra.mrb[16].mxu1 %v681_v22  ;;  %v670_v38 = vmax.f32 %v626_v25, 0.0 }
 0x1ff   :  { %v621_v37 = vadd.f32 %v1160_v9, %v620_v32  ;;  %v668_v44 = vmax.f32 %v618_v27, 0.0 }
 0x200   :  { %v671_v43 = vmax.f32 %v629_v31, 0.0 }
 0x201   :  { %v669_v49 = vmax.f32 %v621_v37, 0.0 }
 0x202   :  { %v683_v50 = vpack.c.bf16 %v671_v43, %v670_v38 }
 0x203   :  { %v682_v53 = vpack.c.bf16 %v669_v49, %v668_v44  ;;  %v1335_v54 = vpop.f32.mrb[8].mxu1 }
 0x204   :  { %v642_v55 = vadd.f32 %v1335_v54, %v1160_v9  ;;  %v633_v56 = vpop.f32.mrb[9].mxu1 }
 0x205   :  { %v634_v58 = vadd.f32 %v1160_v9, %v633_v56  ;;  %v1336_v59 = vpop.f32.mrb[10].mxu1  ;;  %1361 = vmatprep.mubr.bf16.mxu1 %v682_v53 }
 0x206   :  { %v645_v60 = vadd.f32 %v1336_v59, %v1160_v9  ;;  %v636_v61 = vpop.f32.mrb[11].mxu1  ;;  %1362 = vmatmul.mubr.bf16.gmra.mrb[20].mxu1 %v683_v50  ;;  %v674_v63 = vmax.f32 %v642_v55, 0.0 }
 0x207   :  { %v637_v62 = vadd.f32 %v1160_v9, %v636_v61  ;;  %v672_v1 = vmax.f32 %v634_v58, 0.0 }
 0x208   :  { %v675_v0 = vmax.f32 %v645_v60, 0.0 }
 0x209   :  { %v673_v2 = vmax.f32 %v637_v62, 0.0 }
 0x20a   :  { %v685_v3 = vpack.c.bf16 %v675_v0, %v674_v63 }
 0x20b   :  { %v684_v4 = vpack.c.bf16 %v673_v2, %v672_v1  ;;  %v1339_v5 = vpop.f32.mrb[12].mxu1 }
 0x20c   :  { %v658_v6 = vadd.f32 %v1339_v5, %v1160_v9  ;;  %v649_v7 = vpop.f32.mrb[13].mxu1 }
 0x20d   :  { %v650_v8 = vadd.f32 %v1160_v9, %v649_v7  ;;  %v1340_v57 = vpop.f32.mrb[14].mxu1  ;;  %1365 = vmatprep.mubr.bf16.mxu1 %v684_v4  ;;  %v920_v4 = vlaneseq }
 0x20e   :  { %v661_v10 = vadd.f32 %v1340_v57, %v1160_v9  ;;  %v652_v11 = vpop.f32.mrb[15].mxu1  ;;  %1366 = vmatmul.mubr.bf16.gmra.mrb[24].mxu1 %v685_v3  ;;  %v678_v13 = vmax.f32 %v658_v6, 0.0 }
 0x20f   :  { %v653_v12 = vadd.f32 %v1160_v9, %v652_v11  ;;  %v676_v15 = vmax.f32 %v650_v8, 0.0  ;;  %v921_v5 = vand.u32 127, %v920_v4 }
 0x210   :  { %v679_v14 = vmax.f32 %v661_v10, 0.0  ;;  %v1462_v10 = vmov 0.0  }
 0x211   :  { %v677_v16 = vmax.f32 %v653_v12, 0.0  ;;  %vm922_vm0 = vcmp.lt.s32.totalorder %v921_v5, 32 }
 0x212   :  { %v687_v17 = vpack.c.bf16 %v679_v14, %v678_v13  ;;  %v1811_v11 = vsel %vm922_vm0, 1.0, %v1462_v10 }
 0x213   :  { %v686_v18 = vpack.c.bf16 %v677_v16, %v676_v15 }
 0x215   :  { %1369 = vmatprep.mubr.bf16.mxu1 %v686_v18 }
 0x216   :  { %1370 = vmatmul.mubr.bf16.gmra.mrb[28].mxu1 %v687_v17 }
 0x2d1   :  { %v1359_v20 = vpop.f32.mrb[16].mxu1 }
 0x2d2   :  { %v802_v21 = vadd.f32 %v1359_v20, %v1169_v19  ;;  %v793_v22 = vpop.f32.mrb[17].mxu1 }
 0x2d3   :  { %v1766_v23 = vadd.f32 %v1169_v19, %v793_v22  ;;  %v1360_v24 = vpop.f32.mrb[18].mxu1 }
 0x2d4   :  { %860 = vadd.xlane.f32.xlu1 %v802_v21  ;;  %v796_v9 = vpop.f32.mrb[19].mxu1  ;;  %v1769_v25 = vadd.f32 %v1360_v24, %v1169_v19 }
 0x2d5   :  { %856 = vadd.xlane.f32.xlu0 %v1766_v23  ;;  %v1771_v26 = vadd.f32 %v1169_v19, %v796_v9 }
 0x2d8   :  { %862 = vadd.xlane.f32.xlu1 %v1769_v25 }
 0x2d9   :  { %v1363_v27 = vpop.f32.mrb[20].mxu1  ;;  %858 = vadd.xlane.f32.xlu0 %v1771_v26 }
 0x2da   :  { %v1775_v30 = vadd.f32 %v1363_v27, %v1169_v19  ;;  %v809_v31 = vpop.f32.mrb[21].mxu1 }
 0x2db   :  { %v1364_v32 = vpop.f32.mrb[22].mxu1  ;;  %v1781_v43 = vadd.f32 %v1169_v19, %v809_v31 }
 0x2dc   :  { %v1777_v37 = vadd.f32 %v1364_v32, %v1169_v19  ;;  %v812_v38 = vpop.f32.mrb[23].mxu1 }
 0x2dd   :  { %868 = vadd.xlane.f32.xlu0 %v1775_v30  ;;  %v1783_v44 = vadd.f32 %v1169_v19, %v812_v38 }
 0x2de   :  { %870 = vadd.xlane.f32.xlu1 %v1777_v37 }
 0x2e1   :  { %v1367_v49 = vpop.f32.mrb[24].mxu1  ;;  %864 = vadd.xlane.f32.xlu0 %v1781_v43 }
 0x2e2   :  { %v1786_v50 = vadd.f32 %v1367_v49, %v1169_v19  ;;  %v825_v53 = vpop.f32.mrb[25].mxu1  ;;  %866 = vadd.xlane.f32.xlu1 %v1783_v44 }
 0x2e3   :  { %v1368_v54 = vpop.f32.mrb[26].mxu1  ;;  %v1793_v58 = vadd.f32 %v1169_v19, %v825_v53 }
 0x2e4   :  { %v1789_v55 = vadd.f32 %v1368_v54, %v1169_v19  ;;  %v828_v56 = vpop.f32.mrb[27].mxu1 }
 0x2e5   :  { %876 = vadd.xlane.f32.xlu0 %v1786_v50  ;;  %v1795_v59 = vadd.f32 %v1169_v19, %v828_v56 }
 0x2e6   :  { %878 = vadd.xlane.f32.xlu1 %v1789_v55 }
 0x2e9   :  { %872 = vadd.xlane.f32.xlu0 %v1793_v58  ;;  %v1371_v60 = vpop.f32.mrb[28].mxu1 }
 0x2ea   :  { %874 = vadd.xlane.f32.xlu1 %v1795_v59  ;;  %v841_v61 = vpop.f32.mrb[29].mxu1  ;;  %v1804_v2 = vadd.f32 %v1371_v60, %v1169_v19 }
 0x2eb   :  { %v1799_v62 = vadd.f32 %v1169_v19, %v841_v61  ;;  %v1372_v63 = vpop.f32.mrb[30].mxu1 }
 0x2ec   :  { %v844_v0 = vpop.f32.mrb[31].mxu1  ;;  %v1807_v3 = vadd.f32 %v1372_v63, %v1169_v19 }
 0x2ed   :  { %v1801_v1 = vadd.f32 %v1169_v19, %v844_v0  ;;  %880 = vadd.xlane.f32.xlu0 %v1799_v62 }
 0x2ef   :  { %882 = vadd.xlane.f32.xlu1 %v1801_v1 }
 0x2f1   :  { %884 = vadd.xlane.f32.xlu0 %v1804_v2 }
 0x2f3   :  { %886 = vadd.xlane.f32.xlu1 %v1807_v3 }
 0x361   :  { %v861_v6 = vpop.xlane.xlu1 %860 }
 0x362   :  { %v890_v7 = vmul.f32 0.03125, %v861_v6  ;;  %v857_v8 = vpop.xlane.xlu0 %856 }
 0x363   :  { %v888_v57 = vmul.f32 0.03125, %v857_v8 }
 0x364   :  { %v906_v12 = vsub.f32 %v802_v21, %v890_v7 }
 0x365   :  { %v904_v13 = vsub.f32 %v1766_v23, %v888_v57  ;;  %v863_v14 = vpop.xlane.xlu1 %862 }
 0x366   :  { %v891_v15 = vmul.f32 0.03125, %v863_v14  ;;  %v859_v16 = vpop.xlane.xlu0 %858  ;;  %v1815_v17 = vmul.f32 %v1811_v11, %v906_v12 }
 0x367   :  { %v889_v18 = vmul.f32 0.03125, %v859_v16  ;;  %v1821_v22 = vmul.f32 %v1811_v11, %v904_v13 }
 0x368   :  { %v907_v19 = vsub.f32 %v1769_v25, %v891_v15  ;;  %v943_v20 = vmul.f32 %v1815_v17, %v1815_v17 }
 0x369   :  { %v905_v24 = vsub.f32 %v1771_v26, %v889_v18  ;;  %v941_v25 = vmul.f32 %v1821_v22, %v1821_v22 }
 0x36a   :  { %v869_v21 = vpop.xlane.xlu0 %868  ;;  %961 = vadd.xlane.f32.xlu0 %v943_v20  ;;  %v1825_v23 = vmul.f32 %v1811_v11, %v907_v19 }
 0x36b   :  { %v894_v9 = vmul.f32 0.03125, %v869_v21  ;;  %v871_v27 = vpop.xlane.xlu1 %870  ;;  %v1832_v38 = vmul.f32 %v1811_v11, %v905_v24 }
 0x36c   :  { %v895_v31 = vmul.f32 0.03125, %v871_v27  ;;  %v944_v32 = vmul.f32 %v1825_v23, %v1825_v23 }
 0x36d   :  { %v910_v49 = vsub.f32 %v1775_v30, %v894_v9  ;;  %v942_v63 = vmul.f32 %v1832_v38, %v1832_v38 }
 0x36e   :  { %v911_v26 = vsub.f32 %v1777_v37, %v895_v31  ;;  %v865_v53 = vpop.xlane.xlu0 %864  ;;  %963 = vadd.xlane.f32.xlu1 %v944_v32  ;;  %957 = vadd.xlane.f32.xlu0 %v941_v25 }
 0x36f   :  { %v892_v54 = vmul.f32 0.03125, %v865_v53  ;;  %v867_v56 = vpop.xlane.xlu1 %866  ;;  %v1837_v60 = vmul.f32 %v1811_v11, %v910_v49 }
 0x370   :  { %v893_v61 = vmul.f32 0.03125, %v867_v56  ;;  %v1842_v0 = vmul.f32 %v1811_v11, %v911_v26 }
 0x371   :  { %v908_v4 = vsub.f32 %v1781_v43, %v892_v54  ;;  %v947_v30 = vmul.f32 %v1837_v60, %v1837_v60 }
 0x372   :  { %v909_v37 = vsub.f32 %v1783_v44, %v893_v61  ;;  %v877_v5 = vpop.xlane.xlu0 %876  ;;  %959 = vadd.xlane.f32.xlu1 %v942_v63  ;;  %v948_v10 = vmul.f32 %v1842_v0, %v1842_v0 }
 0x373   :  { %v898_v6 = vmul.f32 0.03125, %v877_v5  ;;  %v879_v7 = vpop.xlane.xlu1 %878  ;;  %969 = vadd.xlane.f32.xlu0 %v947_v30  ;;  %v1849_v8 = vmul.f32 %v1811_v11, %v908_v4 }
 0x374   :  { %v899_v57 = vmul.f32 0.03125, %v879_v7  ;;  %v1854_v12 = vmul.f32 %v1811_v11, %v909_v37 }
 0x375   :  { %v914_v43 = vsub.f32 %v1786_v50, %v898_v6  ;;  %v945_v44 = vmul.f32 %v1849_v8, %v1849_v8 }
 0x376   :  { %v915_v13 = vsub.f32 %v1789_v55, %v899_v57  ;;  %v873_v14 = vpop.xlane.xlu0 %872  ;;  %971 = vadd.xlane.f32.xlu1 %v948_v10  ;;  %v946_v20 = vmul.f32 %v1854_v12, %v1854_v12 }
 0x377   :  { %v896_v15 = vmul.f32 0.03125, %v873_v14  ;;  %v875_v16 = vpop.xlane.xlu1 %874  ;;  %965 = vadd.xlane.f32.xlu0 %v945_v44  ;;  %v1861_v18 = vmul.f32 %v1811_v11, %v914_v43 }
 0x378   :  { %v897_v19 = vmul.f32 0.03125, %v875_v16  ;;  %v1866_v24 = vmul.f32 %v1811_v11, %v915_v13 }
 0x379   :  { %v912_v50 = vsub.f32 %v1793_v58, %v896_v15  ;;  %v951_v55 = vmul.f32 %v1861_v18, %v1861_v18 }
 0x37a   :  { %v913_v21 = vsub.f32 %v1795_v59, %v897_v19  ;;  %967 = vadd.xlane.f32.xlu1 %v946_v20  ;;  %v881_v9 = vpop.xlane.xlu0 %880  ;;  %v952_v25 = vmul.f32 %v1866_v24, %v1866_v24 }
 0x37b   :  { %v900_v27 = vmul.f32 0.03125, %v881_v9  ;;  %977 = vadd.xlane.f32.xlu0 %v951_v55  ;;  %v1873_v31 = vmul.f32 %v1811_v11, %v912_v50 }
 0x37c   :  { %v883_v32 = vpop.xlane.xlu1 %882  ;;  %v1878_v49 = vmul.f32 %v1811_v11, %v913_v21 }
 0x37d   :  { %v916_v58 = vsub.f32 %v1799_v62, %v900_v27  ;;  %v901_v26 = vmul.f32 0.03125, %v883_v32  ;;  %v949_v59 = vmul.f32 %v1873_v31, %v1873_v31 }
 0x37e   :  { %979 = vadd.xlane.f32.xlu1 %v952_v25  ;;  %v885_v53 = vpop.xlane.xlu0 %884  ;;  %v950_v4 = vmul.f32 %v1878_v49, %v1878_v49 }
 0x37f   :  { %v917_v54 = vsub.f32 %v1801_v1, %v901_v26  ;;  %v902_v56 = vmul.f32 0.03125, %v885_v53  ;;  %973 = vadd.xlane.f32.xlu0 %v949_v59  ;;  %v1885_v61 = vmul.f32 %v1811_v11, %v916_v58  ;;  %v1911_v53 = vld [vmem:[%s2039_s9] ss:$0 sm:$0xff] }
 0x380   :  { %v887_v63 = vpop.xlane.xlu1 %886 }
 0x381   :  { %v918_v30 = vsub.f32 %v1804_v2, %v902_v56  ;;  %v903_v62 = vmul.f32 0.03125, %v887_v63  ;;  %v953_v37 = vmul.f32 %v1885_v61, %v1885_v61  ;;  %v1893_v5 = vmul.f32 %v1811_v11, %v917_v54 }
 0x382   :  { %975 = vadd.xlane.f32.xlu1 %v950_v4 }
 0x383   :  { %v919_v1 = vsub.f32 %v1807_v3, %v903_v62  ;;  %981 = vadd.xlane.f32.xlu0 %v953_v37  ;;  %v954_v6 = vmul.f32 %v1893_v5, %v1893_v5  ;;  %v1899_v7 = vmul.f32 %v1811_v11, %v918_v30  ;;  %v1917_v30 = vld [vmem:[%s2040_s10] ss:$0 sm:$0xff] }
 0x385   :  { %v955_v2 = vmul.f32 %v1899_v7, %v1899_v7  ;;  %v1904_v57 = vmul.f32 %v1811_v11, %v919_v1 }
 0x386   :  { %983 = vadd.xlane.f32.xlu1 %v954_v6 }
 0x387   :  { %985 = vadd.xlane.f32.xlu0 %v955_v2  ;;  %v956_v10 = vmul.f32 %v1904_v57, %v1904_v57 }
 0x38a   :  { %987 = vadd.xlane.f32.xlu1 %v956_v10 }
 0x3f7   :  { %v962_v3 = vpop.xlane.xlu0 %961 }
 0x3f8   :  { %v991_v43 = vmul.f32 0.03125, %v962_v3 }
 0x3fa   :  { %v1007_v44 = vadd.f32 1e-05, %v991_v43 }
 0x3fb   :  { %v964_v13 = vpop.xlane.xlu1 %963  ;;  %v958_v14 = vpop.xlane.xlu0 %957 }
 0x3fc   :  { %1430 = vrsqrt.f32 %v1007_v44  ;;  %v992_v15 = vmul.f32 0.03125, %v964_v13  ;;  %v989_v16 = vmul.f32 0.03125, %v958_v14 }
 0x3fe   :  { %v1008_v19 = vadd.f32 1e-05, %v992_v15  ;;  %v1005_v20 = vadd.f32 1e-05, %v989_v16 }
 0x3ff   :  { %v960_v50 = vpop.xlane.xlu1 %959 }
 0x400   :  { %1432 = vrsqrt.f32 %v1008_v19  ;;  %v990_v11 = vmul.f32 0.03125, %v960_v50  ;;  %v970_v55 = vpop.xlane.xlu0 %969 }
 0x401   :  { %1434 = vrsqrt.f32 %v1005_v20  ;;  %v995_v21 = vmul.f32 0.03125, %v970_v55 }
 0x402   :  { %v1006_v9 = vadd.f32 1e-05, %v990_v11 }
 0x403   :  { %v1011_v27 = vadd.f32 1e-05, %v995_v21  ;;  %v972_v32 = vpop.xlane.xlu1 %971 }
 0x404   :  { %1436 = vrsqrt.f32 %v1006_v9  ;;  %v996_v25 = vmul.f32 0.03125, %v972_v32  ;;  %v966_v58 = vpop.xlane.xlu0 %965 }
 0x405   :  { %1438 = vrsqrt.f32 %v1011_v27  ;;  %v993_v26 = vmul.f32 0.03125, %v966_v58 }
 0x406   :  { %v1431_v59 = vpop.eup %1430  ;;  %v1012_v54 = vadd.f32 1e-05, %v996_v25 }
 0x407   :  { %v1039_v56 = vmul.f32 %v1431_v59, %v1815_v17  ;;  %v1009_v63 = vadd.f32 1e-05, %v993_v26  ;;  %v968_v4 = vpop.xlane.xlu1 %967 }
 0x408   :  { %1440 = vrsqrt.f32 %v1012_v54  ;;  %v994_v62 = vmul.f32 0.03125, %v968_v4  ;;  %v978_v37 = vpop.xlane.xlu0 %977 }
 0x409   :  { %v1062_v1 = vmul.f32 %v1911_v53, %v1039_v56  ;;  %1442 = vrsqrt.f32 %v1009_v63  ;;  %v999_v6 = vmul.f32 0.03125, %v978_v37 }
 0x40a   :  { %v1433_v2 = vpop.eup %1432  ;;  %v1010_v10 = vadd.f32 1e-05, %v994_v62 }
 0x40b   :  { %v1435_v3 = vpop.eup %1434  ;;  %v1085_v43 = vadd.f32 %v1917_v30, %v1062_v1  ;;  %v1040_v17 = vmul.f32 %v1433_v2, %v1825_v23  ;;  %v1015_v44 = vadd.f32 1e-05, %v999_v6  ;;  %v980_v13 = vpop.xlane.xlu1 %979 }
 0x40c   :  { %v1037_v14 = vmul.f32 %v1435_v3, %v1821_v22  ;;  %1444 = vrsqrt.f32 %v1010_v10  ;;  %v1000_v15 = vmul.f32 0.03125, %v980_v13  ;;  %v974_v16 = vpop.xlane.xlu0 %973 }
 0x40d   :  { %v1101_v19 = vadd.f32 %v1085_v43, %v1628_v33  ;;  %v1063_v20 = vmul.f32 %v1911_v53, %v1040_v17  ;;  %1446 = vrsqrt.f32 %v1015_v44  ;;  %v997_v50 = vmul.f32 0.03125, %v974_v16 }
 0x40e   :  { %v1437_v11 = vpop.eup %1436  ;;  %v1060_v55 = vmul.f32 %v1911_v53, %v1037_v14  ;;  %v1016_v21 = vadd.f32 1e-05, %v1000_v15 }
 0x40f   :  { %v1439_v9 = vpop.eup %1438  ;;  %1117 = vst [vmem:[%s2041_s11 + $0x10] sm:$0xff] %v1101_v19  ;;  %v1086_v22 = vadd.f32 %v1917_v30, %v1063_v20  ;;  %v1038_v23 = vmul.f32 %v1437_v11, %v1832_v38  ;;  %v1013_v27 = vadd.f32 1e-05, %v997_v50  ;;  %v976_v32 = vpop.xlane.xlu1 %975 }
 0x410   :  { %v1083_v33 = vadd.f32 %v1917_v30, %v1060_v55  ;;  %v1043_v25 = vmul.f32 %v1439_v9, %v1837_v60  ;;  %1448 = vrsqrt.f32 %v1016_v21  ;;  %v998_v58 = vmul.f32 0.03125, %v976_v32  ;;  %v982_v26 = vpop.xlane.xlu0 %981 }
 0x411   :  { %v1102_v59 = vadd.f32 %v1086_v22, %v1633_v34  ;;  %v1061_v54 = vmul.f32 %v1911_v53, %v1038_v23  ;;  %1450 = vrsqrt.f32 %v1013_v27  ;;  %v1001_v56 = vmul.f32 0.03125, %v982_v26 }
 0x412   :  { %v1441_v63 = vpop.eup %1440  ;;  %v1099_v4 = vadd.f32 %v1083_v33, %v1610_v28  ;;  %v1066_v38 = vmul.f32 %v1911_v53, %v1043_v25  ;;  %v1014_v62 = vadd.f32 1e-05, %v998_v58 }
 0x413   :  { %v1443_v37 = vpop.eup %1442  ;;  %1118 = vst [vmem:[%s2041_s11 + $0x18] sm:$0xff] %v1102_v59  ;;  %v1084_v60 = vadd.f32 %v1917_v30, %v1061_v54  ;;  %v1044_v1 = vmul.f32 %v1441_v63, %v1842_v0  ;;  %v1017_v34 = vadd.f32 1e-05, %v1001_v56  ;;  %v984_v6 = vpop.xlane.xlu1 %983 }
 0x414   :  { %1115 = vst [vmem:[%s2041_s11] sm:$0xff] %v1099_v4  ;;  %v1089_v28 = vadd.f32 %v1917_v30, %v1066_v38  ;;  %v1041_v2 = vmul.f32 %v1443_v37, %v1849_v8  ;;  %1452 = vrsqrt.f32 %v1014_v62  ;;  %v1002_v10 = vmul.f32 0.03125, %v984_v6  ;;  %v986_v3 = vpop.xlane.xlu0 %985 }
 0x415   :  { %v1100_v43 = vadd.f32 %v1084_v60, %v1615_v29  ;;  %v1067_v17 = vmul.f32 %v1911_v53, %v1044_v1  ;;  %1454 = vrsqrt.f32 %v1017_v34  ;;  %v1003_v44 = vmul.f32 0.03125, %v986_v3 }
 0x416   :  { %v1445_v0 = vpop.eup %1444  ;;  %v1105_v13 = vadd.f32 %v1089_v28, %v1652_v39  ;;  %v1064_v14 = vmul.f32 %v1911_v53, %v1041_v2  ;;  %v1018_v15 = vadd.f32 1e-05, %v1002_v10 }
 0x417   :  { %v1447_v16 = vpop.eup %1446  ;;  %1116 = vst [vmem:[%s2041_s11 + $0x8] sm:$0xff] %v1100_v43  ;;  %v1090_v8 = vadd.f32 %v1917_v30, %v1067_v17  ;;  %v1042_v19 = vmul.f32 %v1445_v0, %v1854_v12  ;;  %v1019_v29 = vadd.f32 1e-05, %v1003_v44  ;;  %v988_v20 = vpop.xlane.xlu1 %987 }
 0x418   :  { %1121 = vst [vmem:[%s2041_s11 + $0x30] sm:$0xff] %v1105_v13  ;;  %v1087_v39 = vadd.f32 %v1917_v30, %v1064_v14  ;;  %v1047_v50 = vmul.f32 %v1447_v16, %v1861_v18  ;;  %1456 = vrsqrt.f32 %v1018_v15  ;;  %v1004_v11 = vmul.f32 0.03125, %v988_v20 }
 0x419   :  { %v1106_v55 = vadd.f32 %v1090_v8, %v1657_v40  ;;  %v1065_v21 = vmul.f32 %v1911_v53, %v1042_v19  ;;  %1458 = vrsqrt.f32 %v1019_v29 }
 0x41a   :  { %v1449_v9 = vpop.eup %1448  ;;  %v1103_v12 = vadd.f32 %v1087_v39, %v1638_v35  ;;  %v1070_v22 = vmul.f32 %v1911_v53, %v1047_v50  ;;  %v1020_v23 = vadd.f32 1e-05, %v1004_v11 }
 0x41b   :  { %v1451_v27 = vpop.eup %1450  ;;  %1122 = vst [vmem:[%s2041_s11 + $0x38] sm:$0xff] %v1106_v55  ;;  %v1088_v18 = vadd.f32 %v1917_v30, %v1065_v21  ;;  %v1048_v32 = vmul.f32 %v1449_v9, %v1866_v24 }
 0x41c   :  { %1119 = vst [vmem:[%s2041_s11 + $0x20] sm:$0xff] %v1103_v12  ;;  %v1093_v40 = vadd.f32 %v1917_v30, %v1070_v22  ;;  %v1045_v35 = vmul.f32 %v1451_v27, %v1873_v31  ;;  %1460 = vrsqrt.f32 %v1020_v23 }
 0x41d   :  { %v1104_v33 = vadd.f32 %v1088_v18, %v1643_v36  ;;  %v1071_v25 = vmul.f32 %v1911_v53, %v1048_v32 }
 0x41e   :  { %v1453_v58 = vpop.eup %1452  ;;  %v1109_v26 = vadd.f32 %v1093_v40, %v1676_v45  ;;  %v1068_v59 = vmul.f32 %v1911_v53, %v1045_v35 }
 0x41f   :  { %v1455_v54 = vpop.eup %1454  ;;  %1120 = vst [vmem:[%s2041_s11 + $0x28] sm:$0xff] %v1104_v33  ;;  %v1094_v24 = vadd.f32 %v1917_v30, %v1071_v25  ;;  %v1046_v56 = vmul.f32 %v1453_v58, %v1878_v49 }
 0x420   :  { %1125 = vst [vmem:[%s2041_s11 + $0x50] sm:$0xff] %v1109_v26  ;;  %v1091_v36 = vadd.f32 %v1917_v30, %v1068_v59  ;;  %v1049_v31 = vmul.f32 %v1455_v54, %v1885_v61 }
 0x421   :  { %v1110_v45 = vadd.f32 %v1094_v24, %v1681_v46  ;;  %v1069_v63 = vmul.f32 %v1911_v53, %v1046_v56 }
 0x422   :  { %v1457_v4 = vpop.eup %1456  ;;  %v1107_v38 = vadd.f32 %v1091_v36, %v1662_v41  ;;  %v1072_v62 = vmul.f32 %v1911_v53, %v1049_v31 }
 0x423   :  { %v1459_v37 = vpop.eup %1458  ;;  %1126 = vst [vmem:[%s2041_s11 + $0x58] sm:$0xff] %v1110_v45  ;;  %v1092_v49 = vadd.f32 %v1917_v30, %v1069_v63  ;;  %v1050_v60 = vmul.f32 %v1457_v4, %v1893_v5 }
 0x424   :  { %1123 = vst [vmem:[%s2041_s11 + $0x40] sm:$0xff] %v1107_v38  ;;  %v1095_v46 = vadd.f32 %v1917_v30, %v1072_v62  ;;  %v1051_v61 = vmul.f32 %v1459_v37, %v1899_v7 }
 0x425   :  { %v1108_v41 = vadd.f32 %v1092_v49, %v1667_v42  ;;  %v1073_v1 = vmul.f32 %v1911_v53, %v1050_v60 }
 0x426   :  { %v1461_v34 = vpop.eup %1460  ;;  %v1111_v6 = vadd.f32 %v1095_v46, %v1686_v47  ;;  %v1074_v28 = vmul.f32 %v1911_v53, %v1051_v61 }
 0x427   :  { %1124 = vst [vmem:[%s2041_s11 + $0x48] sm:$0xff] %v1108_v41  ;;  %v1096_v5 = vadd.f32 %v1917_v30, %v1073_v1  ;;  %v1052_v2 = vmul.f32 %v1461_v34, %v1904_v57 }
 0x428   :  { %1127 = vst [vmem:[%s2041_s11 + $0x60] sm:$0xff] %v1111_v6  ;;  %v1097_v42 = vadd.f32 %v1917_v30, %v1074_v28 }
 0x429   :  { %v1112_v7 = vadd.f32 %v1096_v5, %v1691_v48  ;;  %v1075_v47 = vmul.f32 %v1911_v53, %v1052_v2 }
 0x42a   :  { %v1113_v10 = vadd.f32 %v1097_v42, %v1700_v51 }
 0x42b   :  { %1128 = vst [vmem:[%s2041_s11 + $0x68] sm:$0xff] %v1112_v7  ;;  %v1098_v3 = vadd.f32 %v1917_v30, %v1075_v47 }
 0x42c   :  { %1129 = vst [vmem:[%s2041_s11 + $0x70] sm:$0xff] %v1113_v10 }
 0x42d   :  { %v1114_v57 = vadd.f32 %v1098_v3, %v1705_v52 }
 0x42f   :  { %1130 = vst [vmem:[%s2041_s11 + $0x78] sm:$0xff] %v1114_v57 }

// kernel: graphnet_block.3
= control target key start
LH: loop header
LB: loop body
LE: loop exit
PB: predicated region body
PF: predicated region fallthrough
CT: control target
= control target key end

     0   :  { %s2668_s29 = smov 0   ;;  %s3184_s0 = inlined_call_operand.vmem [shape: bf16[384,128], index: 0, kind: input, shape index: {}]   ;;  %s3185_s1 = inlined_call_operand.vmem [shape: bf16[384,128], index: 1, kind: input, shape index: {}]   ;;  %s3186_s2 = inlined_call_operand.vmem [shape: f32[384,128], index: 2, kind: input, shape index: {}]   ;;  %s3187_s3 = inlined_call_operand.vmem [shape: bf16[128,128], index: 3, kind: input, shape index: {}]   ;;  %s3188_s4 = inlined_call_operand.vmem [shape: bf16[128,128], index: 4, kind: input, shape index: {}]   ;;  %s3189_s5 = inlined_call_operand.vmem [shape: bf16[128,128], index: 5, kind: input, shape index: {}]   ;;  %s3190_s6 = inlined_call_operand.vmem [shape: f32[1,128], index: 6, kind: input, shape index: {}]   ;;  %s3191_s7 = inlined_call_operand.vmem [shape: bf16[128,128], index: 7, kind: input, shape index: {}]   ;;  %s3192_s8 = inlined_call_operand.vmem [shape: f32[1,128], index: 8, kind: input, shape index: {}]   ;;  %s3193_s9 = inlined_call_operand.vmem [shape: bf16[128,128], index: 9, kind: input, shape index: {}]   ;;  %s3194_s10 = inlined_call_operand.vmem [shape: f32[1,128], index: 10, kind: input, shape index: {}]   ;;  %s3195_s11 = inlined_call_operand.vmem [shape: f32[1,128], index: 11, kind: input, shape index: {}]   ;;  %s3196_s12 = inlined_call_operand.vmem [shape: f32[1,128], index: 12, kind: input, shape index: {}]   ;;  %s3197_s13 = inlined_call_operand.vmem [shape: bf16[384,128], index: 13, kind: output, shape index: {0}]   ;;  %s3198_s14 = inlined_call_operand.vmem [shape: f32[384,128], index: 14, kind: output, shape index: {1}]  }
   0x1 LB: > { %s2057_s30 = sadd.s32 4294967295, %s2590_s29   ;;  %p2061_p0 = scmp.ge.s32.totalorder %s2590_s29, 1  ;;  %s2590_s29 = sphi %s2668_s29, %s25_s29  }
   0x2   : > { %p438_p1 = scmp.lt.s32.totalorder %s2590_s29, 4 }
   0x4   : > { %p439_p2 = pnand %p2061_p0, %p438_p1 }
   0x5   : > { %v2496_v0 = vld [vmem:[%s3188_s4] sm:$0xff] (!%p439_p2)   ;;  %s2062_s17 = sshll.u32 (!%p439_p2), %s2057_s30, 4  ;;  %v2497_v1 = vld [vmem:[%s3188_s4 + $0x8] sm:$0xff] (!%p439_p2)   ;;  %v2498_v2 = vld [vmem:[%s3188_s4 + $0x10] sm:$0xff] (!%p439_p2)  }
   0x6   : > { %442 = sbr.rel (%p439_p2) target bundleno = 1108 (0x454), region = 72  ;;  %p500_p3 = scmp.lt.s32.totalorder (!%p439_p2), %s2062_s17, 47  ;;  %2295 = vmatprep.subr.bf16.mxu0 (!%p439_p2), %v2496_v0  ;;  %v2499_v3 = vld [vmem:[%s3188_s4 + $0x18] sm:$0xff] (!%p439_p2)   ;;  %v2500_v5 = vld [vmem:[%s3188_s4 + $0x20] sm:$0xff] (!%p439_p2)   ;;  %v2501_v6 = vld [vmem:[%s3188_s4 + $0x28] sm:$0xff] (!%p439_p2)  }
   0x7   : > { %2296 = vmatpush3.bf16.msra.mxu0 (!%p439_p2), %v2496_v0  ;;  %v2502_v7 = vld [vmem:[%s3188_s4 + $0x30] sm:$0xff] (!%p439_p2)   ;;  %v2503_v8 = vld [vmem:[%s3188_s4 + $0x38] sm:$0xff] (!%p439_p2)   ;;  %v2506_v9 = vld [vmem:[%s3187_s3] sm:$0xff] (!%p439_p2)  }
   0x8   : > { %2297 = vmatprep.subr.bf16.mxu0 (!%p439_p2), %v2497_v1  ;;  %v2507_v12 = vld [vmem:[%s3187_s3 + $0x8] sm:$0xff] (!%p439_p2)   ;;  %v2510_v13 = vld [vmem:[%s3187_s3 + $0x10] sm:$0xff] (!%p439_p2)   ;;  %v2511_v16 = vld [vmem:[%s3187_s3 + $0x18] sm:$0xff] (!%p439_p2)  }
   0x9   : > { %v2514_v18 = vld [vmem:[%s3187_s3 + $0x20] sm:$0xff] (!%p439_p2)   ;;  %v2537_v21 = vld [vmem:[%s3191_s7 + $0x8] sm:$0xff] (!%p439_p2)   ;;  %v2538_v23 = vld [vmem:[%s3191_s7 + $0x10] sm:$0xff] (!%p439_p2)  }
   0xa   : > { %v2536_v20 = vld [vmem:[%s3191_s7] sm:$0xff] (!%p439_p2)   ;;  %v2515_v22 = vld [vmem:[%s3187_s3 + $0x28] sm:$0xff] (!%p439_p2)   ;;  %v2518_v24 = vld [vmem:[%s3187_s3 + $0x30] sm:$0xff] (!%p439_p2)  }
   0xb   : > { %2298 = vmatpush3.bf16.msra.mxu0 (!%p439_p2), %v2497_v1  ;;  %2391 = vmatprep.subr.bf16.mxu1 (!%p439_p2), %v2536_v20  ;;  %v2539_v26 = vld [vmem:[%s3191_s7 + $0x18] sm:$0xff] (!%p439_p2)   ;;  %v2540_v29 = vld [vmem:[%s3191_s7 + $0x20] sm:$0xff] (!%p439_p2)   ;;  %v2541_v32 = vld [vmem:[%s3191_s7 + $0x28] sm:$0xff] (!%p439_p2)  }
   0xc   : > { %2299 = vmatprep.subr.bf16.mxu0 (!%p439_p2), %v2498_v2  ;;  %2392 = vmatpush3.bf16.msra.mxu1 (!%p439_p2), %v2536_v20  ;;  %v2519_v28 = vld [vmem:[%s3187_s3 + $0x38] sm:$0xff] (!%p439_p2)   ;;  %v2522_v30 = vld [vmem:[%s3189_s5] sm:$0xff] (!%p439_p2)   ;;  %v2523_v34 = vld [vmem:[%s3189_s5 + $0x8] sm:$0xff] (!%p439_p2)  }
   0xd   : > { %s3200_s17 = smov (!%p500_p3, %s2062_s17), 47  ;;  %2393 = vmatprep.subr.bf16.mxu1 %v2537_v21  ;;  %v2526_v35 = vld [vmem:[%s3189_s5 + $0x10] sm:$0xff]   ;;  %v2527_v38 = vld [vmem:[%s3189_s5 + $0x18] sm:$0xff]   ;;  %v2530_v39 = vld [vmem:[%s3189_s5 + $0x20] sm:$0xff]  }
   0xe   : > { %s2688_s22 = sshll.u32 %s3200_s17, 2  ;;  %s2067_s15 = sshll.u32 %s3200_s17, 3  ;;  %v2531_v42 = vld [vmem:[%s3189_s5 + $0x28] sm:$0xff]   ;;  %v2534_v43 = vld [vmem:[%s3189_s5 + $0x30] sm:$0xff]   ;;  %v2535_v48 = vld [vmem:[%s3189_s5 + $0x38] sm:$0xff]  }
   0xf   : > { %s2694_s25 = scalar_lea.vmem %s3185_s1, %s2688_s22  ;;  %2300 = vmatpush3.bf16.msra.mxu0 %v2498_v2  ;;  %s2713_s23 = scalar_lea.vmem %s3184_s0, %s2688_s22 }
  0x10   : > { %v2504_v4 = vld [vmem:[%s2694_s25] sm:$0xff]   ;;  %2301 = vmatprep.subr.bf16.mxu0 %v2499_v3  ;;  %v2505_v10 = vld [vmem:[%s2694_s25 + $0x8] sm:$0xff]   ;;  %v2508_v11 = vld [vmem:[%s2694_s25 + $0x10] sm:$0xff]   ;;  %2394 = vmatpush3.bf16.msra.mxu1 %v2537_v21  ;;  %s2798_s21 = scalar_lea.vmem %s3186_s2, %s2067_s15  ;;  %s3089_s24 = scalar_lea.vmem %s3198_s14, %s2067_s15 }
  0x11   : > { %2311 = vmatprep.mubr.bf16.mxu0 %v2504_v4  ;;  %v2509_v14 = vld [vmem:[%s2694_s25 + $0x18] sm:$0xff]   ;;  %v2512_v15 = vld [vmem:[%s2694_s25 + $0x20] sm:$0xff]   ;;  %v2513_v17 = vld [vmem:[%s2694_s25 + $0x28] sm:$0xff]   ;;  %2395 = vmatprep.subr.bf16.mxu1 %v2538_v23  ;;  %s3102_s26 = scalar_lea.vmem %s3197_s13, %s2688_s22 }
  0x12   : > { %v2516_v19 = vld [vmem:[%s2694_s25 + $0x30] sm:$0xff]   ;;  %v2517_v25 = vld [vmem:[%s2694_s25 + $0x38] sm:$0xff]   ;;  %v2520_v27 = vld [vmem:[%s2713_s23] sm:$0xff]  }
  0x13   : > { %2302 = vmatpush3.bf16.msra.mxu0 %v2499_v3  ;;  %v2521_v31 = vld [vmem:[%s2713_s23 + $0x8] sm:$0xff]   ;;  %v2524_v33 = vld [vmem:[%s2713_s23 + $0x10] sm:$0xff]   ;;  %v2525_v36 = vld [vmem:[%s2713_s23 + $0x18] sm:$0xff]  }
  0x14   : > { %2303 = vmatprep.subr.bf16.mxu0 %v2500_v5  ;;  %2396 = vmatpush3.bf16.msra.mxu1 %v2538_v23  ;;  %v2528_v37 = vld [vmem:[%s2713_s23 + $0x20] sm:$0xff]   ;;  %v2529_v40 = vld [vmem:[%s2713_s23 + $0x28] sm:$0xff]   ;;  %v2532_v41 = vld [vmem:[%s2713_s23 + $0x30] sm:$0xff]  }
  0x15   : > { %2397 = vmatprep.subr.bf16.mxu1 %v2539_v26  ;;  %v2804_v44 = vld [vmem:[%s2798_s21] sm:$0xff]  ;;  %v2807_v45 = vld [vmem:[%s2798_s21 + $0x8] sm:$0xff]  ;;  %v2533_v46 = vld [vmem:[%s2713_s23 + $0x38] sm:$0xff]  }
  0x16   : > { %v996_v47 = vpack.c.bf16 %v2807_v45, %v2804_v44  ;;  %v2816_v49 = vld [vmem:[%s2798_s21 + $0x10] sm:$0xff]  ;;  %v2819_v50 = vld [vmem:[%s2798_s21 + $0x18] sm:$0xff]  ;;  %v2822_v51 = vld [vmem:[%s2798_s21 + $0x20] sm:$0xff] }
  0x17   : > { %2304 = vmatpush3.bf16.msra.mxu0 %v2500_v5  ;;  %v2825_v52 = vld [vmem:[%s2798_s21 + $0x28] sm:$0xff]  ;;  %v997_v53 = vpack.c.bf16 %v2819_v50, %v2816_v49  ;;  %v2832_v55 = vld [vmem:[%s2798_s21 + $0x30] sm:$0xff]  ;;  %v2835_v56 = vld [vmem:[%s2798_s21 + $0x38] sm:$0xff] }
  0x18   : > { %2305 = vmatprep.subr.bf16.mxu0 %v2501_v6  ;;  %2398 = vmatpush3.bf16.msra.mxu1 %v2539_v26  ;;  %v998_v54 = vpack.c.bf16 %v2825_v52, %v2822_v51  ;;  %v2838_v57 = vld [vmem:[%s2798_s21 + $0x40] sm:$0xff]  ;;  %v2841_v58 = vld [vmem:[%s2798_s21 + $0x48] sm:$0xff]  ;;  %v999_v59 = vpack.c.bf16 %v2835_v56, %v2832_v55  ;;  %v2848_v61 = vld [vmem:[%s2798_s21 + $0x50] sm:$0xff] }
  0x19   : > { %2399 = vmatprep.subr.bf16.mxu1 %v2540_v29  ;;  %v1000_v60 = vpack.c.bf16 %v2841_v58, %v2838_v57  ;;  %v2851_v62 = vld [vmem:[%s2798_s21 + $0x58] sm:$0xff]  ;;  %v2854_v63 = vld [vmem:[%s2798_s21 + $0x60] sm:$0xff]  ;;  %v2857_v0 = vld [vmem:[%s2798_s21 + $0x68] sm:$0xff] }
  0x1a   : > { %v1001_v1 = vpack.c.bf16 %v2851_v62, %v2848_v61  ;;  %v1002_v2 = vpack.c.bf16 %v2857_v0, %v2854_v63  ;;  %v2864_v3 = vld [vmem:[%s2798_s21 + $0x70] sm:$0xff]  ;;  %v2867_v4 = vld [vmem:[%s2798_s21 + $0x78] sm:$0xff] }
  0x1b   : > { %2306 = vmatpush3.bf16.msra.mxu0 %v2501_v6  ;;  %v1003_v5 = vpack.c.bf16 %v2867_v4, %v2864_v3  ;;  %v2542_v6 = vld [vmem:[%s3191_s7 + $0x30] sm:$0xff]  }
  0x1c   : > { %2307 = vmatprep.subr.bf16.mxu0 %v2502_v7  ;;  %2400 = vmatpush3.bf16.msra.mxu1 %v2540_v29 }
  0x1d   : > { %2401 = vmatprep.subr.bf16.mxu1 %v2541_v32 }
  0x1f   : > { %2308 = vmatpush3.bf16.msra.mxu0 %v2502_v7  ;;  %v2543_v7 = vld [vmem:[%s3191_s7 + $0x38] sm:$0xff]  }
  0x20   : > { %2309 = vmatprep.subr.bf16.mxu0 %v2503_v8  ;;  %2402 = vmatpush3.bf16.msra.mxu1 %v2541_v32 }
  0x21   : > { %2403 = vmatprep.subr.bf16.mxu1 %v2542_v6 }
  0x23   : > { %2310 = vmatpush3.bf16.msra.mxu0 %v2503_v8  ;;  %v2544_v8 = vld [vmem:[%s3193_s9] sm:$0xff]  }
  0x24   : > { %2327 = vmatprep.subr.bf16.mxu0 %v2506_v9  ;;  %2404 = vmatpush3.bf16.msra.mxu1 %v2542_v6 }
  0x25   : > { %2405 = vmatprep.subr.bf16.mxu1 %v2543_v7 }
  0x26   : > { %2312 = vmatmul.mubr.bf16.vlgmr.msra.gmra.mrb[0].mxu0 %v2505_v10 }
  0x27   : > { %2328 = vmatpush3.bf16.msra.mxu0 %v2506_v9  ;;  %2315 = vmatprep.mubr.bf16.mxu0 %v2508_v11  ;;  %v2883_v9 = vld [vmem:[%s3190_s6] ss:$0 sm:$0xff] }
  0x28   : > { %2329 = vmatprep.subr.bf16.mxu0 %v2507_v12  ;;  %2406 = vmatpush3.bf16.msra.mxu1 %v2543_v7 }
  0x29   : > { %2423 = vmatprep.subr.bf16.mxu1 %v2544_v8 }
  0x2b   : > { %2330 = vmatpush3.bf16.msra.mxu0 %v2507_v12 }
  0x2c   : > { %2331 = vmatprep.subr.bf16.mxu0 %v2510_v13 }
  0x2e   : > { %2316 = vmatmul.mubr.bf16.gmra.mrb[4].mxu0 %v2509_v14 }
  0x2f   : > { %2332 = vmatpush3.bf16.msra.mxu0 %v2510_v13  ;;  %2319 = vmatprep.mubr.bf16.mxu0 %v2512_v15 }
  0x30   : > { %2333 = vmatprep.subr.bf16.mxu0 %v2511_v16 }
  0x33   : > { %2334 = vmatpush3.bf16.msra.mxu0 %v2511_v16 }
  0x34   : > { %2335 = vmatprep.subr.bf16.mxu0 %v2514_v18 }
  0x36   : > { %2320 = vmatmul.mubr.bf16.gmra.mrb[8].mxu0 %v2513_v17 }
  0x37   : > { %2336 = vmatpush3.bf16.msra.mxu0 %v2514_v18  ;;  %2323 = vmatprep.mubr.bf16.mxu0 %v2516_v19 }
  0x38   : > { %2337 = vmatprep.subr.bf16.mxu0 %v2515_v22 }
  0x3b   : > { %2338 = vmatpush3.bf16.msra.mxu0 %v2515_v22 }
  0x3c   : > { %2339 = vmatprep.subr.bf16.mxu0 %v2518_v24 }
  0x3e   : > { %2324 = vmatmul.mubr.bf16.gmra.mrb[12].mxu0 %v2517_v25 }
  0x3f   : > { %2340 = vmatpush3.bf16.msra.mxu0 %v2518_v24  ;;  %2343 = vmatprep.mubr.bf16.mxu0 %v2520_v27  ;;  %v2545_v27 = vld [vmem:[%s3193_s9 + $0x8] sm:$0xff]  }
  0x40   : > { %2341 = vmatprep.subr.bf16.mxu0 %v2519_v28 }
  0x43   : > { %2342 = vmatpush3.bf16.msra.mxu0 %v2519_v28 }
  0x44   : > { %2359 = vmatprep.subr.bf16.mxu0 %v2522_v30 }
  0x46   : > { %2344 = vmatmul.mubr.bf16.vlgmr.msra.gmra.mrb[0].mxu0 %v2521_v31 }
  0x47   : > { %2360 = vmatpush3.bf16.msra.mxu0 %v2522_v30  ;;  %2347 = vmatprep.mubr.bf16.mxu0 %v2524_v33 }
  0x48   : > { %2361 = vmatprep.subr.bf16.mxu0 %v2523_v34 }
  0x4b   : > { %2362 = vmatpush3.bf16.msra.mxu0 %v2523_v34 }
  0x4c   : > { %2363 = vmatprep.subr.bf16.mxu0 %v2526_v35 }
  0x4e   : > { %2348 = vmatmul.mubr.bf16.gmra.mrb[4].mxu0 %v2525_v36 }
  0x4f   : > { %2364 = vmatpush3.bf16.msra.mxu0 %v2526_v35  ;;  %2351 = vmatprep.mubr.bf16.mxu0 %v2528_v37  ;;  %v2546_v35 = vld [vmem:[%s3193_s9 + $0x10] sm:$0xff]  }
  0x50   : > { %2365 = vmatprep.subr.bf16.mxu0 %v2527_v38 }
  0x53   : > { %2366 = vmatpush3.bf16.msra.mxu0 %v2527_v38 }
  0x54   : > { %2367 = vmatprep.subr.bf16.mxu0 %v2530_v39 }
  0x56   : > { %2352 = vmatmul.mubr.bf16.gmra.mrb[8].mxu0 %v2529_v40 }
  0x57   : > { %2368 = vmatpush3.bf16.msra.mxu0 %v2530_v39  ;;  %2355 = vmatprep.mubr.bf16.mxu0 %v2532_v41 }
  0x58   : > { %2369 = vmatprep.subr.bf16.mxu0 %v2531_v42 }
  0x5b   : > { %2370 = vmatpush3.bf16.msra.mxu0 %v2531_v42 }
  0x5c   : > { %2371 = vmatprep.subr.bf16.mxu0 %v2534_v43 }
  0x5e   : > { %2356 = vmatmul.mubr.bf16.gmra.mrb[12].mxu0 %v2533_v46 }
  0x5f   : > { %2372 = vmatpush3.bf16.msra.mxu0 %v2534_v43  ;;  %2375 = vmatprep.mubr.bf16.mxu0 %v996_v47  ;;  %v2547_v43 = vld [vmem:[%s3193_s9 + $0x18] sm:$0xff]  }
  0x60   : > { %2373 = vmatprep.subr.bf16.mxu0 %v2535_v48 }
  0x63   : > { %2374 = vmatpush3.bf16.msra.mxu0 %v2535_v48 }
  0x66   : > { %2376 = vmatmul.mubr.bf16.vlgmr.msra.gmra.mrb[0].mxu0 %v997_v53 }
  0x67   : > { %2379 = vmatprep.mubr.bf16.mxu0 %v998_v54 }
  0x6e   : > { %2380 = vmatmul.mubr.bf16.gmra.mrb[4].mxu0 %v999_v59 }
  0x6f   : > { %2383 = vmatprep.mubr.bf16.mxu0 %v1000_v60 }
  0x76   : > { %2384 = vmatmul.mubr.bf16.gmra.mrb[8].mxu0 %v1001_v1  ;;  %v2548_v1 = vld [vmem:[%s3193_s9 + $0x20] sm:$0xff]  }
  0x77   : > { %2387 = vmatprep.mubr.bf16.mxu0 %v1002_v2 }
  0x7e   : > { %2388 = vmatmul.mubr.bf16.gmra.mrb[12].mxu0 %v1003_v5 }
 0x139   : > { %v2377_v10 = vpop.f32.mrb[0].mxu0 }
 0x13a   : > { %v1190_v11 = vadd.f32 %v2377_v10, %v2883_v9  ;;  %v1102_v12 = vpop.f32.mrb[1].mxu0 }
 0x13b   : > { %v1188_v13 = vadd.f32 %v2883_v9, %v1102_v12  ;;  %v2378_v14 = vpop.f32.mrb[2].mxu0  ;;  %v2549_v12 = vld [vmem:[%s3193_s9 + $0x28] sm:$0xff]  }
 0x13c   : > { %v1191_v15 = vadd.f32 %v2378_v14, %v2883_v9  ;;  %v1105_v16 = vpop.f32.mrb[3].mxu0  ;;  %v1206_v18 = vmax.f32 %v1190_v11, 0.0 }
 0x13d   : > { %v1189_v17 = vadd.f32 %v2883_v9, %v1105_v16  ;;  %v1204_v20 = vmax.f32 %v1188_v13, 0.0 }
 0x13e   : > { %v1207_v19 = vmax.f32 %v1191_v15, 0.0 }
 0x13f   : > { %v1205_v21 = vmax.f32 %v1189_v17, 0.0 }
 0x140   : > { %v1221_v22 = vpack.c.bf16 %v1207_v19, %v1206_v18 }
 0x141   : > { %v2381_v23 = vpop.f32.mrb[4].mxu0  ;;  %v1220_v24 = vpack.c.bf16 %v1205_v21, %v1204_v20 }
 0x142   : > { %v1194_v25 = vadd.f32 %v2381_v23, %v2883_v9  ;;  %v1118_v26 = vpop.f32.mrb[5].mxu0 }
 0x143   : > { %v1192_v28 = vadd.f32 %v2883_v9, %v1118_v26  ;;  %v2382_v29 = vpop.f32.mrb[6].mxu0  ;;  %2407 = vmatprep.mubr.bf16.mxu1 %v1220_v24  ;;  %v2550_v24 = vld [vmem:[%s3193_s9 + $0x30] sm:$0xff]  }
 0x144   : > { %v1195_v30 = vadd.f32 %v2382_v29, %v2883_v9  ;;  %v1121_v31 = vpop.f32.mrb[7].mxu0  ;;  %2408 = vmatmul.mubr.bf16.vlgmr.msra.gmra.mrb[0].mxu1 %v1221_v22  ;;  %v1210_v33 = vmax.f32 %v1194_v25, 0.0  ;;  %v2113_v25 = vld [vmem:[%s3192_s8] ss:$0 sm:$0xff] }
 0x145   : > { %v1193_v32 = vadd.f32 %v2883_v9, %v1121_v31  ;;  %2424 = vmatpush3.bf16.msra.mxu1 %v2544_v8  ;;  %v1208_v36 = vmax.f32 %v1192_v28, 0.0 }
 0x146   : > { %v1211_v34 = vmax.f32 %v1195_v30, 0.0  ;;  %2425 = vmatprep.subr.bf16.mxu1 %v2545_v27 }
 0x147   : > { %v1209_v37 = vmax.f32 %v1193_v32, 0.0 }
 0x148   : > { %v1223_v38 = vpack.c.bf16 %v1211_v34, %v1210_v33 }
 0x149   : > { %v1222_v39 = vpack.c.bf16 %v1209_v37, %v1208_v36  ;;  %v2385_v40 = vpop.f32.mrb[8].mxu0  ;;  %2426 = vmatpush3.bf16.msra.mxu1 %v2545_v27 }
 0x14a   : > { %v1198_v41 = vadd.f32 %v2385_v40, %v2883_v9  ;;  %v1134_v42 = vpop.f32.mrb[9].mxu0  ;;  %2427 = vmatprep.subr.bf16.mxu1 %v2546_v35 }
 0x14b   : > { %v1196_v46 = vadd.f32 %v2883_v9, %v1134_v42  ;;  %v2386_v47 = vpop.f32.mrb[10].mxu0  ;;  %2411 = vmatprep.mubr.bf16.mxu1 %v1222_v39 }
 0x14c   : > { %v1199_v48 = vadd.f32 %v2386_v47, %v2883_v9  ;;  %v1137_v53 = vpop.f32.mrb[11].mxu0  ;;  %2412 = vmatmul.mubr.bf16.gmra.mrb[4].mxu1 %v1223_v38  ;;  %v1214_v59 = vmax.f32 %v1198_v41, 0.0 }
 0x14d   : > { %v1197_v54 = vadd.f32 %v2883_v9, %v1137_v53  ;;  %2428 = vmatpush3.bf16.msra.mxu1 %v2546_v35  ;;  %v1212_v2 = vmax.f32 %v1196_v46, 0.0 }
 0x14e   : > { %v1215_v60 = vmax.f32 %v1199_v48, 0.0  ;;  %2429 = vmatprep.subr.bf16.mxu1 %v2547_v43 }
 0x14f   : > { %v1213_v5 = vmax.f32 %v1197_v54, 0.0 }
 0x150   : > { %v1225_v6 = vpack.c.bf16 %v1215_v60, %v1214_v59 }
 0x151   : > { %v1224_v7 = vpack.c.bf16 %v1213_v5, %v1212_v2  ;;  %v2389_v8 = vpop.f32.mrb[12].mxu0  ;;  %2430 = vmatpush3.bf16.msra.mxu1 %v2547_v43 }
 0x152   : > { %v1202_v10 = vadd.f32 %v2389_v8, %v2883_v9  ;;  %v1150_v11 = vpop.f32.mrb[13].mxu0  ;;  %2431 = vmatprep.subr.bf16.mxu1 %v2548_v1 }
 0x153   : > { %v1200_v13 = vadd.f32 %v2883_v9, %v1150_v11  ;;  %v2390_v14 = vpop.f32.mrb[14].mxu0  ;;  %2415 = vmatprep.mubr.bf16.mxu1 %v1224_v7 }
 0x154   : > { %v1203_v15 = vadd.f32 %v2390_v14, %v2883_v9  ;;  %v1153_v16 = vpop.f32.mrb[15].mxu0  ;;  %2416 = vmatmul.mubr.bf16.gmra.mrb[8].mxu1 %v1225_v6  ;;  %v1218_v18 = vmax.f32 %v1202_v10, 0.0 }
 0x155   : > { %v1201_v17 = vadd.f32 %v2883_v9, %v1153_v16  ;;  %2432 = vmatpush3.bf16.msra.mxu1 %v2548_v1  ;;  %v1216_v20 = vmax.f32 %v1200_v13, 0.0  ;;  %v2551_v9 = vld [vmem:[%s3193_s9 + $0x38] sm:$0xff]  }
 0x156   : > { %v1219_v19 = vmax.f32 %v1203_v15, 0.0  ;;  %2433 = vmatprep.subr.bf16.mxu1 %v2549_v12 }
 0x157   : > { %v1217_v21 = vmax.f32 %v1201_v17, 0.0 }
 0x158   : > { %v1227_v22 = vpack.c.bf16 %v1219_v19, %v1218_v18 }
 0x159   : > { %v1226_v23 = vpack.c.bf16 %v1217_v21, %v1216_v20  ;;  %2434 = vmatpush3.bf16.msra.mxu1 %v2549_v12 }
 0x15a   : > { %2435 = vmatprep.subr.bf16.mxu1 %v2550_v24 }
 0x15b   : > { %2419 = vmatprep.mubr.bf16.mxu1 %v1226_v23 }
 0x15c   : > { %2420 = vmatmul.mubr.bf16.gmra.mrb[12].mxu1 %v1227_v22 }
 0x15d   : > { %2436 = vmatpush3.bf16.msra.mxu1 %v2550_v24 }
 0x15e   : > { %2437 = vmatprep.subr.bf16.mxu1 %v2551_v9 }
 0x161   : > { %2438 = vmatpush3.bf16.msra.mxu1 %v2551_v9 }
 0x217   : > { %v2409_v26 = vpop.f32.mrb[0].mxu1 }
 0x218   : > { %v1342_v27 = vadd.f32 %v2409_v26, %v2113_v25  ;;  %v1333_v28 = vpop.f32.mrb[1].mxu1 }
 0x219   : > { %v1334_v29 = vadd.f32 %v2113_v25, %v1333_v28  ;;  %v2410_v30 = vpop.f32.mrb[2].mxu1 }
 0x21a   : > { %v1345_v31 = vadd.f32 %v2410_v30, %v2113_v25  ;;  %v1336_v32 = vpop.f32.mrb[3].mxu1  ;;  %v1398_v34 = vmax.f32 %v1342_v27, 0.0 }
 0x21b   : > { %v1337_v33 = vadd.f32 %v2113_v25, %v1336_v32  ;;  %v1396_v36 = vmax.f32 %v1334_v29, 0.0 }
 0x21c   : > { %v1399_v35 = vmax.f32 %v1345_v31, 0.0 }
 0x21d   : > { %v1397_v37 = vmax.f32 %v1337_v33, 0.0 }
 0x21e   : > { %v1413_v38 = vpack.c.bf16 %v1399_v35, %v1398_v34  ;;  %v2122_v35 = vld [vmem:[%s3194_s10] ss:$0 sm:$0xff] }
 0x21f   : > { %v1412_v39 = vpack.c.bf16 %v1397_v37, %v1396_v36  ;;  %v2413_v40 = vpop.f32.mrb[4].mxu1 }
 0x220   : > { %v1358_v41 = vadd.f32 %v2413_v40, %v2113_v25  ;;  %v1349_v42 = vpop.f32.mrb[5].mxu1 }
 0x221   : > { %v1350_v43 = vadd.f32 %v2113_v25, %v1349_v42  ;;  %v2414_v46 = vpop.f32.mrb[6].mxu1  ;;  %2439 = vmatprep.mubr.bf16.mxu1 %v1412_v39 }
 0x222   : > { %v1361_v47 = vadd.f32 %v2414_v46, %v2113_v25  ;;  %v1352_v48 = vpop.f32.mrb[7].mxu1  ;;  %2440 = vmatmul.mubr.bf16.vlgmr.msra.gmra.mrb[16].mxu1 %v1413_v38  ;;  %v1402_v54 = vmax.f32 %v1358_v41, 0.0 }
 0x223   : > { %v1353_v53 = vadd.f32 %v2113_v25, %v1352_v48  ;;  %v1400_v60 = vmax.f32 %v1350_v43, 0.0 }
 0x224   : > { %v1403_v59 = vmax.f32 %v1361_v47, 0.0 }
 0x225   : > { %v1401_v1 = vmax.f32 %v1353_v53, 0.0 }
 0x226   : > { %v1415_v2 = vpack.c.bf16 %v1403_v59, %v1402_v54 }
 0x227   : > { %v1414_v5 = vpack.c.bf16 %v1401_v1, %v1400_v60  ;;  %v2417_v6 = vpop.f32.mrb[8].mxu1 }
 0x228   : > { %v1374_v7 = vadd.f32 %v2417_v6, %v2113_v25  ;;  %v1365_v8 = vpop.f32.mrb[9].mxu1 }
 0x229   : > { %v1366_v10 = vadd.f32 %v2113_v25, %v1365_v8  ;;  %v2418_v11 = vpop.f32.mrb[10].mxu1  ;;  %2443 = vmatprep.mubr.bf16.mxu1 %v1414_v5 }
 0x22a   : > { %v1377_v12 = vadd.f32 %v2418_v11, %v2113_v25  ;;  %v1368_v13 = vpop.f32.mrb[11].mxu1  ;;  %2444 = vmatmul.mubr.bf16.gmra.mrb[20].mxu1 %v1415_v2  ;;  %v1406_v15 = vmax.f32 %v1374_v7, 0.0 }
 0x22b   : > { %v1369_v14 = vadd.f32 %v2113_v25, %v1368_v13  ;;  %v1404_v17 = vmax.f32 %v1366_v10, 0.0 }
 0x22c   : > { %v1407_v16 = vmax.f32 %v1377_v12, 0.0 }
 0x22d   : > { %v1405_v18 = vmax.f32 %v1369_v14, 0.0 }
 0x22e   : > { %v1417_v19 = vpack.c.bf16 %v1407_v16, %v1406_v15 }
 0x22f   : > { %v1416_v20 = vpack.c.bf16 %v1405_v18, %v1404_v17  ;;  %v2421_v21 = vpop.f32.mrb[12].mxu1 }
 0x230   : > { %v1390_v22 = vadd.f32 %v2421_v21, %v2113_v25  ;;  %v1381_v23 = vpop.f32.mrb[13].mxu1 }
 0x231   : > { %v1382_v24 = vadd.f32 %v2113_v25, %v1381_v23  ;;  %v2422_v9 = vpop.f32.mrb[14].mxu1  ;;  %2447 = vmatprep.mubr.bf16.mxu1 %v1416_v20  ;;  %v1652_v20 = vlaneseq }
 0x232   : > { %v1393_v26 = vadd.f32 %v2422_v9, %v2113_v25  ;;  %v1384_v27 = vpop.f32.mrb[15].mxu1  ;;  %2448 = vmatmul.mubr.bf16.gmra.mrb[24].mxu1 %v1417_v19  ;;  %v1410_v29 = vmax.f32 %v1390_v22, 0.0 }
 0x233   : > { %v1385_v28 = vadd.f32 %v2113_v25, %v1384_v27  ;;  %v1408_v31 = vmax.f32 %v1382_v24, 0.0  ;;  %v1653_v21 = vand.u32 127, %v1652_v20 }
 0x234   : > { %v1411_v30 = vmax.f32 %v1393_v26, 0.0  ;;  %v2592_v26 = vmov 0.0  }
 0x235   : > { %v1409_v32 = vmax.f32 %v1385_v28, 0.0  ;;  %vm1654_vm0 = vcmp.lt.s32.totalorder %v1653_v21, 32 }
 0x236   : > { %v1419_v33 = vpack.c.bf16 %v1411_v30, %v1410_v29  ;;  %v2973_v27 = vsel %vm1654_vm0, 1.0, %v2592_v26 }
 0x237   : > { %v1418_v34 = vpack.c.bf16 %v1409_v32, %v1408_v31 }
 0x239   : > { %2451 = vmatprep.mubr.bf16.mxu1 %v1418_v34 }
 0x23a   : > { %2452 = vmatmul.mubr.bf16.gmra.mrb[28].mxu1 %v1419_v33 }
 0x2f5   : > { %v2441_v36 = vpop.f32.mrb[16].mxu1 }
 0x2f6   : > { %v1534_v37 = vadd.f32 %v2441_v36, %v2122_v35  ;;  %v1525_v38 = vpop.f32.mrb[17].mxu1 }
 0x2f7   : > { %v2928_v39 = vadd.f32 %v2122_v35, %v1525_v38  ;;  %v2442_v40 = vpop.f32.mrb[18].mxu1 }
 0x2f8   : > { %1592 = vadd.xlane.f32.xlu1 %v1534_v37  ;;  %v1528_v25 = vpop.f32.mrb[19].mxu1  ;;  %v2931_v41 = vadd.f32 %v2442_v40, %v2122_v35 }
 0x2f9   : > { %1588 = vadd.xlane.f32.xlu0 %v2928_v39  ;;  %v2933_v42 = vadd.f32 %v2122_v35, %v1528_v25 }
 0x2fc   : > { %1594 = vadd.xlane.f32.xlu1 %v2931_v41 }
 0x2fd   : > { %v2445_v43 = vpop.f32.mrb[20].mxu1  ;;  %1590 = vadd.xlane.f32.xlu0 %v2933_v42 }
 0x2fe   : > { %v2937_v46 = vadd.f32 %v2445_v43, %v2122_v35  ;;  %v1541_v47 = vpop.f32.mrb[21].mxu1 }
 0x2ff   : > { %v2446_v48 = vpop.f32.mrb[22].mxu1  ;;  %v2943_v59 = vadd.f32 %v2122_v35, %v1541_v47 }
 0x300   : > { %v2939_v53 = vadd.f32 %v2446_v48, %v2122_v35  ;;  %v1544_v54 = vpop.f32.mrb[23].mxu1 }
 0x301   : > { %1600 = vadd.xlane.f32.xlu0 %v2937_v46  ;;  %v2945_v60 = vadd.f32 %v2122_v35, %v1544_v54 }
 0x302   : > { %1602 = vadd.xlane.f32.xlu1 %v2939_v53 }
 0x305   : > { %v2449_v1 = vpop.f32.mrb[24].mxu1  ;;  %1596 = vadd.xlane.f32.xlu0 %v2943_v59 }
 0x306   : > { %v2948_v2 = vadd.f32 %v2449_v1, %v2122_v35  ;;  %v1557_v5 = vpop.f32.mrb[25].mxu1  ;;  %1598 = vadd.xlane.f32.xlu1 %v2945_v60 }
 0x307   : > { %v2450_v6 = vpop.f32.mrb[26].mxu1  ;;  %v2955_v10 = vadd.f32 %v2122_v35, %v1557_v5 }
 0x308   : > { %v2951_v7 = vadd.f32 %v2450_v6, %v2122_v35  ;;  %v1560_v8 = vpop.f32.mrb[27].mxu1 }
 0x309   : > { %1608 = vadd.xlane.f32.xlu0 %v2948_v2  ;;  %v2957_v11 = vadd.f32 %v2122_v35, %v1560_v8 }
 0x30a   : > { %1610 = vadd.xlane.f32.xlu1 %v2951_v7 }
 0x30d   : > { %1604 = vadd.xlane.f32.xlu0 %v2955_v10  ;;  %v2453_v12 = vpop.f32.mrb[28].mxu1 }
 0x30e   : > { %1606 = vadd.xlane.f32.xlu1 %v2957_v11  ;;  %v1573_v13 = vpop.f32.mrb[29].mxu1  ;;  %v2966_v18 = vadd.f32 %v2453_v12, %v2122_v35 }
 0x30f   : > { %v2961_v14 = vadd.f32 %v2122_v35, %v1573_v13  ;;  %v2454_v15 = vpop.f32.mrb[30].mxu1 }
 0x310   : > { %v1576_v16 = vpop.f32.mrb[31].mxu1  ;;  %v2969_v19 = vadd.f32 %v2454_v15, %v2122_v35 }
 0x311   : > { %v2963_v17 = vadd.f32 %v2122_v35, %v1576_v16  ;;  %1612 = vadd.xlane.f32.xlu0 %v2961_v14 }
 0x313   : > { %1614 = vadd.xlane.f32.xlu1 %v2963_v17 }
 0x315   : > { %1616 = vadd.xlane.f32.xlu0 %v2966_v18 }
 0x317   : > { %1618 = vadd.xlane.f32.xlu1 %v2969_v19 }
 0x385   : > { %v1593_v22 = vpop.xlane.xlu1 %1592 }
 0x386   : > { %v1622_v23 = vmul.f32 0.03125, %v1593_v22  ;;  %v1589_v24 = vpop.xlane.xlu0 %1588 }
 0x387   : > { %v1620_v9 = vmul.f32 0.03125, %v1589_v24 }
 0x388   : > { %v1638_v28 = vsub.f32 %v1534_v37, %v1622_v23 }
 0x389   : > { %v1636_v29 = vsub.f32 %v2928_v39, %v1620_v9  ;;  %v1595_v30 = vpop.xlane.xlu1 %1594 }
 0x38a   : > { %v1623_v31 = vmul.f32 0.03125, %v1595_v30  ;;  %v1591_v32 = vpop.xlane.xlu0 %1590  ;;  %v2977_v33 = vmul.f32 %v2973_v27, %v1638_v28 }
 0x38b   : > { %v1621_v34 = vmul.f32 0.03125, %v1591_v32  ;;  %v2983_v38 = vmul.f32 %v2973_v27, %v1636_v29 }
 0x38c   : > { %v1639_v35 = vsub.f32 %v2931_v41, %v1623_v31  ;;  %v1675_v36 = vmul.f32 %v2977_v33, %v2977_v33 }
 0x38d   : > { %v1637_v40 = vsub.f32 %v2933_v42, %v1621_v34  ;;  %v1673_v41 = vmul.f32 %v2983_v38, %v2983_v38 }
 0x38e   : > { %v1601_v37 = vpop.xlane.xlu0 %1600  ;;  %1693 = vadd.xlane.f32.xlu0 %v1675_v36  ;;  %v2987_v39 = vmul.f32 %v2973_v27, %v1639_v35 }
 0x38f   : > { %v1626_v25 = vmul.f32 0.03125, %v1601_v37  ;;  %v1603_v43 = vpop.xlane.xlu1 %1602  ;;  %v2994_v54 = vmul.f32 %v2973_v27, %v1637_v40 }
 0x390   : > { %v1627_v47 = vmul.f32 0.03125, %v1603_v43  ;;  %v1676_v48 = vmul.f32 %v2987_v39, %v2987_v39 }
 0x391   : > { %v1642_v1 = vsub.f32 %v2937_v46, %v1626_v25  ;;  %v1674_v15 = vmul.f32 %v2994_v54, %v2994_v54 }
 0x392   : > { %v1643_v42 = vsub.f32 %v2939_v53, %v1627_v47  ;;  %v1597_v5 = vpop.xlane.xlu0 %1596  ;;  %1695 = vadd.xlane.f32.xlu1 %v1676_v48  ;;  %1689 = vadd.xlane.f32.xlu0 %v1673_v41 }
 0x393   : > { %v1624_v6 = vmul.f32 0.03125, %v1597_v5  ;;  %v1599_v8 = vpop.xlane.xlu1 %1598  ;;  %v2999_v12 = vmul.f32 %v2973_v27, %v1642_v1 }
 0x394   : > { %v1625_v13 = vmul.f32 0.03125, %v1599_v8  ;;  %v3004_v16 = vmul.f32 %v2973_v27, %v1643_v42 }
 0x395   : > { %v1640_v20 = vsub.f32 %v2943_v59, %v1624_v6  ;;  %v1679_v46 = vmul.f32 %v2999_v12, %v2999_v12 }
 0x396   : > { %v1641_v53 = vsub.f32 %v2945_v60, %v1625_v13  ;;  %v1609_v21 = vpop.xlane.xlu0 %1608  ;;  %1691 = vadd.xlane.f32.xlu1 %v1674_v15  ;;  %v1680_v26 = vmul.f32 %v3004_v16, %v3004_v16 }
 0x397   : > { %v1630_v22 = vmul.f32 0.03125, %v1609_v21  ;;  %v1611_v23 = vpop.xlane.xlu1 %1610  ;;  %1701 = vadd.xlane.f32.xlu0 %v1679_v46  ;;  %v3011_v24 = vmul.f32 %v2973_v27, %v1640_v20 }
 0x398   : > { %v1631_v9 = vmul.f32 0.03125, %v1611_v23  ;;  %v3016_v28 = vmul.f32 %v2973_v27, %v1641_v53 }
 0x399   : > { %v1646_v59 = vsub.f32 %v2948_v2, %v1630_v22  ;;  %v1677_v60 = vmul.f32 %v3011_v24, %v3011_v24 }
 0x39a   : > { %v1647_v29 = vsub.f32 %v2951_v7, %v1631_v9  ;;  %v1605_v30 = vpop.xlane.xlu0 %1604  ;;  %1703 = vadd.xlane.f32.xlu1 %v1680_v26  ;;  %v1678_v36 = vmul.f32 %v3016_v28, %v3016_v28 }
 0x39b   : > { %v1628_v31 = vmul.f32 0.03125, %v1605_v30  ;;  %v1607_v32 = vpop.xlane.xlu1 %1606  ;;  %1697 = vadd.xlane.f32.xlu0 %v1677_v60  ;;  %v3023_v34 = vmul.f32 %v2973_v27, %v1646_v59 }
 0x39c   : > { %v1629_v35 = vmul.f32 0.03125, %v1607_v32  ;;  %v3028_v40 = vmul.f32 %v2973_v27, %v1647_v29 }
 0x39d   : > { %v1644_v2 = vsub.f32 %v2955_v10, %v1628_v31  ;;  %v1683_v7 = vmul.f32 %v3023_v34, %v3023_v34 }
 0x39e   : > { %v1645_v37 = vsub.f32 %v2957_v11, %v1629_v35  ;;  %1699 = vadd.xlane.f32.xlu1 %v1678_v36  ;;  %v1613_v25 = vpop.xlane.xlu0 %1612  ;;  %v1684_v41 = vmul.f32 %v3028_v40, %v3028_v40 }
 0x39f   : > { %v1632_v43 = vmul.f32 0.03125, %v1613_v25  ;;  %1709 = vadd.xlane.f32.xlu0 %v1683_v7  ;;  %v3035_v47 = vmul.f32 %v2973_v27, %v1644_v2 }
 0x3a0   : > { %v1615_v48 = vpop.xlane.xlu1 %1614  ;;  %v3040_v1 = vmul.f32 %v2973_v27, %v1645_v37 }
 0x3a1   : > { %v1648_v10 = vsub.f32 %v2961_v14, %v1632_v43  ;;  %v1633_v42 = vmul.f32 0.03125, %v1615_v48  ;;  %v1681_v11 = vmul.f32 %v3035_v47, %v3035_v47 }
 0x3a2   : > { %1711 = vadd.xlane.f32.xlu1 %v1684_v41  ;;  %v1617_v5 = vpop.xlane.xlu0 %1616  ;;  %v1682_v20 = vmul.f32 %v3040_v1, %v3040_v1 }
 0x3a3   : > { %v1649_v6 = vsub.f32 %v2963_v17, %v1633_v42  ;;  %v1634_v8 = vmul.f32 0.03125, %v1617_v5  ;;  %1705 = vadd.xlane.f32.xlu0 %v1681_v11  ;;  %v3047_v13 = vmul.f32 %v2973_v27, %v1648_v10  ;;  %v3073_v5 = vld [vmem:[%s3195_s11] ss:$0 sm:$0xff] }
 0x3a4   : > { %v1619_v15 = vpop.xlane.xlu1 %1618 }
 0x3a5   : > { %v1650_v46 = vsub.f32 %v2966_v18, %v1634_v8  ;;  %v1635_v14 = vmul.f32 0.03125, %v1619_v15  ;;  %v1685_v53 = vmul.f32 %v3047_v13, %v3047_v13  ;;  %v3055_v21 = vmul.f32 %v2973_v27, %v1649_v6 }
 0x3a6   : > { %1707 = vadd.xlane.f32.xlu1 %v1682_v20 }
 0x3a7   : > { %v1651_v17 = vsub.f32 %v2969_v19, %v1635_v14  ;;  %1713 = vadd.xlane.f32.xlu0 %v1685_v53  ;;  %v1686_v22 = vmul.f32 %v3055_v21, %v3055_v21  ;;  %v3061_v23 = vmul.f32 %v2973_v27, %v1650_v46  ;;  %v3079_v46 = vld [vmem:[%s3196_s12] ss:$0 sm:$0xff] }
 0x3a9   : > { %v1687_v18 = vmul.f32 %v3061_v23, %v3061_v23  ;;  %v3066_v9 = vmul.f32 %v2973_v27, %v1651_v17 }
 0x3aa   : > { %1715 = vadd.xlane.f32.xlu1 %v1686_v22 }
 0x3ab   : > { %1717 = vadd.xlane.f32.xlu0 %v1687_v18  ;;  %v1688_v26 = vmul.f32 %v3066_v9, %v3066_v9 }
 0x3ae   : > { %1719 = vadd.xlane.f32.xlu1 %v1688_v26 }
 0x41b   : > { %v1694_v19 = vpop.xlane.xlu0 %1693 }
 0x41c   : > { %v1723_v59 = vmul.f32 0.03125, %v1694_v19 }
 0x41e   : > { %v1739_v60 = vadd.f32 1e-05, %v1723_v59 }
 0x41f   : > { %v1696_v29 = vpop.xlane.xlu1 %1695  ;;  %v1690_v30 = vpop.xlane.xlu0 %1689 }
 0x420   : > { %2552 = vrsqrt.f32 %v1739_v60  ;;  %v1724_v31 = vmul.f32 0.03125, %v1696_v29  ;;  %v1721_v32 = vmul.f32 0.03125, %v1690_v30 }
 0x422   : > { %v1740_v35 = vadd.f32 1e-05, %v1724_v31  ;;  %v1737_v36 = vadd.f32 1e-05, %v1721_v32 }
 0x423   : > { %v1692_v2 = vpop.xlane.xlu1 %1691 }
 0x424   : > { %2554 = vrsqrt.f32 %v1740_v35  ;;  %v1722_v27 = vmul.f32 0.03125, %v1692_v2  ;;  %v1702_v7 = vpop.xlane.xlu0 %1701 }
 0x425   : > { %2556 = vrsqrt.f32 %v1737_v36  ;;  %v1727_v37 = vmul.f32 0.03125, %v1702_v7 }
 0x426   : > { %v1738_v25 = vadd.f32 1e-05, %v1722_v27 }
 0x427   : > { %v1743_v43 = vadd.f32 1e-05, %v1727_v37  ;;  %v1704_v48 = vpop.xlane.xlu1 %1703 }
 0x428   : > { %2558 = vrsqrt.f32 %v1738_v25  ;;  %v1728_v41 = vmul.f32 0.03125, %v1704_v48  ;;  %v1698_v10 = vpop.xlane.xlu0 %1697 }
 0x429   : > { %2560 = vrsqrt.f32 %v1743_v43  ;;  %v1725_v42 = vmul.f32 0.03125, %v1698_v10 }
 0x42a   : > { %v2553_v11 = vpop.eup %2552  ;;  %v1744_v6 = vadd.f32 1e-05, %v1728_v41 }
 0x42b   : > { %v1771_v8 = vmul.f32 %v2553_v11, %v2977_v33  ;;  %v1741_v15 = vadd.f32 1e-05, %v1725_v42  ;;  %v1700_v20 = vpop.xlane.xlu1 %1699 }
 0x42c   : > { %2562 = vrsqrt.f32 %v1744_v6  ;;  %v1726_v14 = vmul.f32 0.03125, %v1700_v20  ;;  %v1710_v53 = vpop.xlane.xlu0 %1709 }
 0x42d   : > { %v1794_v17 = vmul.f32 %v3073_v5, %v1771_v8  ;;  %2564 = vrsqrt.f32 %v1741_v15  ;;  %v1731_v22 = vmul.f32 0.03125, %v1710_v53 }
 0x42e   : > { %v2555_v18 = vpop.eup %2554  ;;  %v1742_v26 = vadd.f32 1e-05, %v1726_v14 }
 0x42f   : > { %v2557_v19 = vpop.eup %2556  ;;  %v1817_v33 = vadd.f32 %v3079_v46, %v1794_v17  ;;  %v1772_v59 = vmul.f32 %v2555_v18, %v2987_v39  ;;  %v1747_v60 = vadd.f32 1e-05, %v1731_v22  ;;  %v1712_v29 = vpop.xlane.xlu1 %1711 }
 0x430   : > { %v1769_v30 = vmul.f32 %v2557_v19, %v2983_v38  ;;  %2566 = vrsqrt.f32 %v1742_v26  ;;  %v1732_v31 = vmul.f32 0.03125, %v1712_v29  ;;  %v1706_v32 = vpop.xlane.xlu0 %1705 }
 0x431   : > { %v1913_v35 = vadd.f32 %v1817_v33, %v2816_v49  ;;  %v1795_v36 = vmul.f32 %v3073_v5, %v1772_v59  ;;  %2568 = vrsqrt.f32 %v1747_v60  ;;  %v1729_v39 = vmul.f32 0.03125, %v1706_v32 }
 0x432   : > { %v2559_v2 = vpop.eup %2558  ;;  %v1792_v27 = vmul.f32 %v3073_v5, %v1769_v30  ;;  %v1748_v7 = vadd.f32 1e-05, %v1732_v31 }
 0x433   : > { %v2561_v37 = vpop.eup %2560  ;;  %1929 = vst [vmem:[%s3089_s24 + $0x10] sm:$0xff] %v1913_v35  ;;  %v1818_v25 = vadd.f32 %v3079_v46, %v1795_v36  ;;  %v1770_v38 = vmul.f32 %v2559_v2, %v2994_v54  ;;  %v1745_v43 = vadd.f32 1e-05, %v1729_v39  ;;  %v1708_v48 = vpop.xlane.xlu1 %1707 }
 0x434   : > { %v1815_v49 = vadd.f32 %v3079_v46, %v1792_v27  ;;  %v1775_v41 = vmul.f32 %v2561_v37, %v2999_v12  ;;  %2570 = vrsqrt.f32 %v1748_v7  ;;  %v1730_v10 = vmul.f32 0.03125, %v1708_v48  ;;  %v1714_v42 = vpop.xlane.xlu0 %1713 }
 0x435   : > { %v2176_v11 = vpack.c.bf16 %v1818_v25, %v1817_v33  ;;  %v1914_v54 = vadd.f32 %v1818_v25, %v2819_v50  ;;  %v1793_v6 = vmul.f32 %v3073_v5, %v1770_v38  ;;  %2572 = vrsqrt.f32 %v1745_v43 }
 0x436   : > { %v2563_v8 = vpop.eup %2562  ;;  %v1911_v15 = vadd.f32 %v1815_v49, %v2804_v44  ;;  %v1798_v20 = vmul.f32 %v3073_v5, %v1775_v41  ;;  %v1746_v14 = vadd.f32 1e-05, %v1730_v10  ;;  %v1733_v53 = vmul.f32 0.03125, %v1714_v42 }
 0x437   : > { %v2565_v17 = vpop.eup %2564  ;;  %2208 = vst [vmem:[%s3102_s26 + $0x8] sm:$0xff] %v2176_v11   ;;  %1930 = vst [vmem:[%s3089_s24 + $0x18] sm:$0xff] %v1914_v54  ;;  %v1816_v12 = vadd.f32 %v3079_v46, %v1793_v6  ;;  %v1776_v22 = vmul.f32 %v2563_v8, %v3004_v16  ;;  %v1716_v18 = vpop.xlane.xlu1 %1715 }
 0x438   : > { %1927 = vst [vmem:[%s3089_s24] sm:$0xff] %v1911_v15  ;;  %v1821_v50 = vadd.f32 %v3079_v46, %v1798_v20  ;;  %v1773_v26 = vmul.f32 %v2565_v17, %v3011_v24  ;;  %2574 = vrsqrt.f32 %v1746_v14  ;;  %v1749_v44 = vadd.f32 1e-05, %v1733_v53  ;;  %v1718_v19 = vpop.xlane.xlu0 %1717 }
 0x439   : > { %v2171_v33 = vpack.c.bf16 %v1816_v12, %v1815_v49  ;;  %v1912_v59 = vadd.f32 %v1816_v12, %v2807_v45  ;;  %v1799_v60 = vmul.f32 %v3073_v5, %v1776_v22  ;;  %v1734_v29 = vmul.f32 0.03125, %v1716_v18 }
 0x43a   : > { %v2567_v30 = vpop.eup %2566  ;;  %v1917_v16 = vadd.f32 %v1821_v50, %v2832_v55  ;;  %v1796_v31 = vmul.f32 %v3073_v5, %v1773_v26  ;;  %2576 = vrsqrt.f32 %v1749_v44  ;;  %v1735_v32 = vmul.f32 0.03125, %v1718_v19 }
 0x43b   : > { %v2569_v35 = vpop.eup %2568  ;;  %2172 = vst [vmem:[%s3102_s26] sm:$0xff] %v2171_v33   ;;  %1928 = vst [vmem:[%s3089_s24 + $0x8] sm:$0xff] %v1912_v59  ;;  %v1822_v24 = vadd.f32 %v3079_v46, %v1799_v60  ;;  %v1774_v36 = vmul.f32 %v2567_v30, %v3016_v28  ;;  %v1750_v39 = vadd.f32 1e-05, %v1734_v29  ;;  %v1720_v2 = vpop.xlane.xlu1 %1719 }
 0x43c   : > { %1933 = vst [vmem:[%s3089_s24 + $0x30] sm:$0xff] %v1917_v16  ;;  %v1819_v45 = vadd.f32 %v3079_v46, %v1796_v31  ;;  %v1779_v55 = vmul.f32 %v2569_v35, %v3023_v34  ;;  %v1751_v27 = vadd.f32 1e-05, %v1735_v32  ;;  %v1736_v7 = vmul.f32 0.03125, %v1720_v2 }
 0x43d   : > { %v2186_v37 = vpack.c.bf16 %v1822_v24, %v1821_v50  ;;  %v1918_v25 = vadd.f32 %v1822_v24, %v2835_v56  ;;  %v1797_v38 = vmul.f32 %v3073_v5, %v1774_v36  ;;  %2578 = vrsqrt.f32 %v1750_v39 }
 0x43e   : > { %v2571_v43 = vpop.eup %2570  ;;  %v1915_v28 = vadd.f32 %v1819_v45, %v2822_v51  ;;  %v1802_v48 = vmul.f32 %v3073_v5, %v1779_v55  ;;  %2580 = vrsqrt.f32 %v1751_v27  ;;  %v1752_v49 = vadd.f32 1e-05, %v1736_v7 }
 0x43f   : > { %v2573_v41 = vpop.eup %2572  ;;  %2210 = vst [vmem:[%s3102_s26 + $0x18] sm:$0xff] %v2186_v37   ;;  %1934 = vst [vmem:[%s3089_s24 + $0x38] sm:$0xff] %v1918_v25  ;;  %v1820_v34 = vadd.f32 %v3079_v46, %v1797_v38  ;;  %v1780_v10 = vmul.f32 %v2571_v43, %v3028_v40 }
 0x440   : > { %1931 = vst [vmem:[%s3089_s24 + $0x20] sm:$0xff] %v1915_v28  ;;  %v1825_v56 = vadd.f32 %v3079_v46, %v1802_v48  ;;  %v1777_v42 = vmul.f32 %v2573_v41, %v3035_v47  ;;  %2582 = vrsqrt.f32 %v1752_v49 }
 0x441   : > { %v2181_v51 = vpack.c.bf16 %v1820_v34, %v1819_v45  ;;  %v1916_v11 = vadd.f32 %v1820_v34, %v2825_v52  ;;  %v1803_v54 = vmul.f32 %v3073_v5, %v1780_v10 }
 0x442   : > { %v2575_v6 = vpop.eup %2574  ;;  %v1921_v8 = vadd.f32 %v1825_v56, %v2848_v61  ;;  %v1800_v15 = vmul.f32 %v3073_v5, %v1777_v42 }
 0x443   : > { %2209 = vst [vmem:[%s3102_s26 + $0x10] sm:$0xff] %v2181_v51   ;;  %1932 = vst [vmem:[%s3089_s24 + $0x28] sm:$0xff] %v1916_v11  ;;  %v1826_v40 = vadd.f32 %v3079_v46, %v1803_v54  ;;  %v1778_v47 = vmul.f32 %v2575_v6, %v3040_v1 }
 0x444   : > { %v2577_v20 = vpop.eup %2576  ;;  %1937 = vst [vmem:[%s3089_s24 + $0x50] sm:$0xff] %v1921_v8  ;;  %v1823_v52 = vadd.f32 %v3079_v46, %v1800_v15 }
 0x445   : > { %v2196_v14 = vpack.c.bf16 %v1826_v40, %v1825_v56  ;;  %v1922_v53 = vadd.f32 %v1826_v40, %v2851_v62  ;;  %v1801_v17 = vmul.f32 %v3073_v5, %v1778_v47  ;;  %v1781_v61 = vmul.f32 %v2577_v20, %v3047_v13 }
 0x446   : > { %v1919_v12 = vadd.f32 %v1823_v52, %v2838_v57 }
 0x447   : > { %v2579_v22 = vpop.eup %2578  ;;  %2212 = vst [vmem:[%s3102_s26 + $0x28] sm:$0xff] %v2196_v14   ;;  %1938 = vst [vmem:[%s3089_s24 + $0x58] sm:$0xff] %v1922_v53  ;;  %v1824_v1 = vadd.f32 %v3079_v46, %v1801_v17  ;;  %v1804_v18 = vmul.f32 %v3073_v5, %v1781_v61 }
 0x448   : > { %v2581_v50 = vpop.eup %2580  ;;  %1935 = vst [vmem:[%s3089_s24 + $0x40] sm:$0xff] %v1919_v12  ;;  %v1782_v62 = vmul.f32 %v2579_v22, %v3055_v21 }
 0x449   : > { %v2191_v26 = vpack.c.bf16 %v1824_v1, %v1823_v52  ;;  %v1920_v44 = vadd.f32 %v1824_v1, %v2841_v58  ;;  %v1827_v13 = vadd.f32 %v3079_v46, %v1804_v18  ;;  %v1783_v57 = vmul.f32 %v2581_v50, %v3061_v23 }
 0x44a   : > { %v2583_v19 = vpop.eup %2582  ;;  %v1805_v33 = vmul.f32 %v3073_v5, %v1782_v62 }
 0x44b   : > { %2211 = vst [vmem:[%s3102_s26 + $0x20] sm:$0xff] %v2191_v26   ;;  %1936 = vst [vmem:[%s3089_s24 + $0x48] sm:$0xff] %v1920_v44  ;;  %v1923_v59 = vadd.f32 %v1827_v13, %v2854_v63  ;;  %v1806_v21 = vmul.f32 %v3073_v5, %v1783_v57  ;;  %v1784_v58 = vmul.f32 %v2583_v19, %v3066_v9 }
 0x44c   : > { %v1828_v60 = vadd.f32 %v3079_v46, %v1805_v33 }
 0x44d   : > { %1939 = vst [vmem:[%s3089_s24 + $0x60] sm:$0xff] %v1923_v59  ;;  %v1829_v23 = vadd.f32 %v3079_v46, %v1806_v21  ;;  %v1807_v29 = vmul.f32 %v3073_v5, %v1784_v58 }
 0x44e   : > { %v2201_v30 = vpack.c.bf16 %v1828_v60, %v1827_v13  ;;  %v1924_v16 = vadd.f32 %v1828_v60, %v2857_v0 }
 0x44f   : > { %v1925_v31 = vadd.f32 %v1829_v23, %v2864_v3  ;;  %v1830_v63 = vadd.f32 %v3079_v46, %v1807_v29 }
 0x450   : > { %2213 = vst [vmem:[%s3102_s26 + $0x30] sm:$0xff] %v2201_v30   ;;  %1940 = vst [vmem:[%s3089_s24 + $0x68] sm:$0xff] %v1924_v16 }
 0x451   : > { %1941 = vst [vmem:[%s3089_s24 + $0x70] sm:$0xff] %v1925_v31  ;;  %v2206_v32 = vpack.c.bf16 %v1830_v63, %v1829_v23  ;;  %v1926_v9 = vadd.f32 %v1830_v63, %v2867_v4 }
 0x453   : > { %2214 = vst [vmem:[%s3102_s26 + $0x38] sm:$0xff] %v2206_v32   ;;  %1942 = vst [vmem:[%s3089_s24 + $0x78] sm:$0xff] %v1926_v9 }
 0x454 PF: > { %s25_s29 = sadd.s32 1, %s2590_s29  }
 0x455   : > { %p22_p4 = scmp.ge.s32.totalorder %s25_s29, 5  }
 0x457   :  { %24 = sbr.rel (!%p22_p4) target bundleno = 1 (0x1), region = 120 }

</bundles_post_ra>
